<compile_context>
chip_gen: v6e
topology: v6e:2x2x1
jax: 0.10.0
libtpu: 0.0.40
codegen_flags: <defaults>
</compile_context>

<pallas_src>
import math
from functools import partial

import jax
import jax.numpy as jnp
from jax.experimental import pallas as pl
from jax.experimental.pallas import tpu as pltpu


# -----------------------------------------------------------------------------
# Stored-layout helpers (padded, flattened, lane-dense activation format)
# -----------------------------------------------------------------------------
def _guard(Wp):
    """Zero-guard width (lanes) on each side of the padded-flat image."""
    return ((Wp + 1 + 127) // 128) * 128


def _offsets(K, Wp):
    """Flat lane offsets of the K*K conv taps (row-major, centre tap = 0)."""
    c = K // 2
    return [(dy - c) * Wp + (dx - c) for dy in range(K) for dx in range(K)]


def to_stored(img):
    """(N, C, H, W) -> (N, C, G + (H+2)*(W+2) + G) bf16 padded-flat form."""
    N, C, H, W = img.shape
    Hp, Wp = H + 2, W + 2
    G = _guard(Wp)
    xp = jnp.pad(img.astype(jnp.float32), ((0, 0), (0, 0), (1, 1), (1, 1)))
    flat = xp.reshape(N, C, Hp * Wp)
    flat = jnp.pad(flat, ((0, 0), (0, 0), (G, G)))
    return flat.astype(jnp.bfloat16)


def from_stored(x_st, H, W):
    """(N, C, L) stored form -> (N, C, H+2, W+2) padded image, f32."""
    N, C, _ = x_st.shape
    Hp, Wp = H + 2, W + 2
    P = Hp * Wp
    G = _guard(Wp)
    return x_st[:, :, G:G + P].reshape(N, C, Hp, Wp).astype(jnp.float32)


def _ring_mask(H, W):
    """(1, Hp*Wp) f32 mask: 1 on the H x W interior, 0 on the padding ring."""
    Hp, Wp = H + 2, W + 2
    m = jnp.zeros((Hp, Wp), jnp.float32).at[1:-1, 1:-1].set(1.0)
    return m.reshape(1, Hp * Wp)


def _fold_scale_shift(bias, cout, bn):
    """Fold conv bias and eval-mode BatchNorm into per-channel scale/shift."""
    if bn is not None:
        gamma, beta, mean, var, eps = bn
        s = gamma / jnp.sqrt(var + eps)
        scale = s
        shift = bias * s + beta - mean * s
    else:
        scale = jnp.ones((cout,), jnp.float32)
        shift = bias
    return (scale.reshape(cout, 1).astype(jnp.float32),
            shift.reshape(cout, 1).astype(jnp.float32))


def _stacked_weight(w):
    """(K, K, Cin, Cout) -> (Cout, K*K*Cin) bf16, tap-major (matches the rhs)."""
    K, _, Cin, Cout = w.shape
    return (jnp.transpose(w, (3, 0, 1, 2))
            .reshape(Cout, K * K * Cin).astype(jnp.bfloat16))


def pixel_shuffle_nchw(x, r):
    """PyTorch nn.PixelShuffle semantics: (N, C*r*r, H, W) -> (N, C, H*r, W*r)."""
    N, Crr, H, W = x.shape
    C = Crr // (r * r)
    x = x.reshape(N, C, r, r, H, W)
    x = jnp.transpose(x, (0, 1, 4, 2, 5, 3))
    return x.reshape(N, C, H * r, W * r)


# -----------------------------------------------------------------------------
# Pallas kernels
# -----------------------------------------------------------------------------
def _conv_mxu(x_full, w_ref, offsets, G, P):
    """x_full: (Cin, L) bf16 stored form.  Returns (Cout_tile, P) f32.

    Builds the (K*K*Cin, P) stacked-shifted-window matrix from static lane
    slices (in-kernel im2col) and runs a single bf16 MXU matmul with f32 acc.
    """
    pieces = [x_full[:, G + o:G + o + P] for o in offsets]
    rhs = pieces[0] if len(pieces) == 1 else jnp.concatenate(pieces, axis=0)
    return jnp.dot(w_ref[...], rhs, preferred_element_type=jnp.float32)


def _store_stored(o_ref, y, G, P):
    """Write (Cout_tile, P) result into the stored form (zero guards kept)."""
    cout = y.shape[0]
    zg = jnp.zeros((cout, G), o_ref.dtype)
    o_ref[0, :, 0:G] = zg
    o_ref[0, :, G + P:] = zg
    o_ref[0, :, G:G + P] = y.astype(o_ref.dtype)


def _conv_kernel(x_ref, w_ref, scale_ref, shift_ref, *rest,
                 offsets, G, P, has_mask, has_prelu, has_res):
    rest = list(rest)
    o_ref = rest.pop()
    mask_ref = rest.pop(0) if has_mask else None
    alpha_ref = rest.pop(0) if has_prelu else None
    res_ref = rest.pop(0) if has_res else None

    y = _conv_mxu(x_ref[0], w_ref, offsets, G, P)           # (Ct, P) f32
    y = y * scale_ref[...] + shift_ref[...]                 # bias + BN(eval)
    if has_prelu:
        a = alpha_ref[0, 0]                                 # scalar from SMEM
        y = jnp.where(y >= 0, y, y * a)
    if has_res:
        y = y + res_ref[0, :, G:G + P].astype(jnp.float32)
    if has_mask:
        y = y * mask_ref[...]                               # keep zero ring
    _store_stored(o_ref, y, G, P)


def _resblock_kernel(x_ref, w1_ref, s1_ref, t1_ref, alpha_ref,
                     w2_ref, s2_ref, t2_ref, mask_ref, o_ref,
                     *, offsets, G, P):
    """Fused ResBlock: x + BN2(conv2(PReLU(BN1(conv1(x)))))."""
    x = x_ref[0]                                            # (F, L) bf16
    mask = mask_ref[...]                                    # (1, P) f32

    # conv1 + BN1 + PReLU -- intermediate never leaves VMEM.
    h = _conv_mxu(x, w1_ref, offsets, G, P)
    h = h * s1_ref[...] + t1_ref[...]
    a = alpha_ref[0, 0]
    h = jnp.where(h >= 0, h, h * a)
    h = (h * mask).astype(jnp.bfloat16)                     # zero ring = padding

    F = h.shape[0]
    zg = jnp.zeros((F, G), jnp.bfloat16)
    h_full = jnp.concatenate([zg, h, zg], axis=1)           # (F, L) stored form

    # conv2 + BN2 + residual add.
    y = _conv_mxu(h_full, w2_ref, offsets, G, P)
    y = y * s2_ref[...] + t2_ref[...]
    y = y + x[:, G:G + P].astype(jnp.float32)
    y = y * mask
    _store_stored(o_ref, y, G, P)


# -----------------------------------------------------------------------------
# pallas_call wrappers
# -----------------------------------------------------------------------------
def conv_block(x_st, spatial, w, bias, *, bn=None, prelu_alpha=None,
               residual=None, apply_mask=True):
    """One conv layer on stored-form activations: PReLU?(BN?(conv(x)))[+res]."""
    N, Cin, L = x_st.shape
    H, W = spatial
    Hp, Wp = H + 2, W + 2
    P = Hp * Wp
    G = _guard(Wp)
    assert L == P + 2 * G, (L, P, G)
    K, Cout = int(w.shape[0]), int(w.shape[-1])
    assert int(w.shape[2]) == Cin, (w.shape, Cin)
    offsets = _offsets(K, Wp)

    w_mat = _stacked_weight(w)
    scale, shift = _fold_scale_shift(bias, Cout, bn)

    has_prelu = prelu_alpha is not None
    has_res = residual is not None

    # Output-channel tiling: >1 parallel grid step on the wide pix-shuffle
    # convs (megacore), while keeping weight/output blocks 8-row aligned.
    ct = Cout // 2 if (Cout >= 32 and Cout % 16 == 0) else Cout
    grid = (N, Cout // ct)

    inputs = [x_st, w_mat, scale, shift]
    in_specs = [
        pl.BlockSpec((1, Cin, L), lambda n, j: (n, 0, 0)),
        pl.BlockSpec((ct, K * K * Cin), lambda n, j: (j, 0)),
        pl.BlockSpec((ct, 1), lambda n, j: (j, 0)),
        pl.BlockSpec((ct, 1), lambda n, j: (j, 0)),
    ]
    if apply_mask:
        inputs.append(_ring_mask(H, W))
        in_specs.append(pl.BlockSpec((1, P), lambda n, j: (0, 0)))
    if has_prelu:
        inputs.append(jnp.asarray(prelu_alpha, jnp.float32).reshape(1, 1))
        in_specs.append(pl.BlockSpec(memory_space=pltpu.MemorySpace.SMEM))
    if has_res:
        inputs.append(residual)
        in_specs.append(pl.BlockSpec((1, ct, L), lambda n, j: (n, j, 0)))

    flops = int(2 * N * P * (K * K * Cin) * Cout)
    bytes_accessed = int(
        N * Cin * L * 2 + w_mat.size * 2 + (scale.size + shift.size) * 4 +
        N * Cout * L * 2 + (residual.size * 2 if has_res else 0) +
        (P * 4 if apply_mask else 0))

    kernel = partial(_conv_kernel, offsets=offsets, G=G, P=P,
                     has_mask=apply_mask, has_prelu=has_prelu, has_res=has_res)

    return pl.pallas_call(
        kernel,
        grid=grid,
        in_specs=in_specs,
        out_specs=pl.BlockSpec((1, ct, L), lambda n, j: (n, j, 0)),
        out_shape=jax.ShapeDtypeStruct((N, Cout, L), jnp.bfloat16),
        compiler_params=pltpu.CompilerParams(
            dimension_semantics=("parallel", "parallel")),
        cost_estimate=pl.CostEstimate(flops=flops, transcendentals=0,
                                      bytes_accessed=bytes_accessed),
    )(*inputs)


def res_block(x_st, spatial, rb):
    """Fused ResBlock: both convs in one pallas_call (intermediate in VMEM)."""
    N, F, L = x_st.shape
    H, W = spatial
    Hp, Wp = H + 2, W + 2
    P = Hp * Wp
    G = _guard(Wp)
    assert L == P + 2 * G
    offsets = _offsets(3, Wp)

    w1 = _stacked_weight(rb["w1"])
    w2 = _stacked_weight(rb["w2"])
    s1, t1 = _fold_scale_shift(rb["b1"], F, rb["bn1"])
    s2, t2 = _fold_scale_shift(rb["b2"], F, rb["bn2"])
    alpha = jnp.asarray(rb["prelu"], jnp.float32).reshape(1, 1)
    mask = _ring_mask(H, W)

    flops = int(2 * 2 * N * P * (9 * F) * F)
    bytes_accessed = int(2 * N * F * L * 2 + (w1.size + w2.size) * 2 +
                         4 * F * 4 + P * 4)

    kernel = partial(_resblock_kernel, offsets=offsets, G=G, P=P)
    full = lambda n: (0, 0)
    return pl.pallas_call(
        kernel,
        grid=(N,),
        in_specs=[
            pl.BlockSpec((1, F, L), lambda n: (n, 0, 0)),
            pl.BlockSpec((F, 9 * F), full),
            pl.BlockSpec((F, 1), full),
            pl.BlockSpec((F, 1), full),
            pl.BlockSpec(memory_space=pltpu.MemorySpace.SMEM),
            pl.BlockSpec((F, 9 * F), full),
            pl.BlockSpec((F, 1), full),
            pl.BlockSpec((F, 1), full),
            pl.BlockSpec((1, P), full),
        ],
        out_specs=pl.BlockSpec((1, F, L), lambda n: (n, 0, 0)),
        out_shape=jax.ShapeDtypeStruct((N, F, L), jnp.bfloat16),
        compiler_params=pltpu.CompilerParams(dimension_semantics=("parallel",)),
        cost_estimate=pl.CostEstimate(flops=flops, transcendentals=0,
                                      bytes_accessed=bytes_accessed),
    )(x_st, w1, s1, t1, alpha, w2, s2, t2, mask)


# -----------------------------------------------------------------------------
# Parameters (deterministic, synthetic)
# -----------------------------------------------------------------------------
def init_params(key, num_resblocks, num_features, scaling_factor):
    F = num_features
    n_pix = int(math.log2(scaling_factor))
    keys = iter(jax.random.split(key, 512))

    def conv_w(cin, cout, k):
        return 0.05 * jax.random.normal(next(keys), (k, k, cin, cout), jnp.float32)

    def vec(c, s=0.01):
        return s * jax.random.normal(next(keys), (c,), jnp.float32)

    def bn(c):
        gamma = 1.0 + vec(c)
        beta = vec(c)
        mean = vec(c)
        var = 1.0 + jnp.abs(vec(c))
        return (gamma, beta, mean, var, 1e-5)

    params = {
        "conv1_w": conv_w(3, F, 3), "conv1_b": vec(F),
        "prelu": jnp.float32(0.25),
        "res": [],
        "conv2_w": conv_w(F, F, 3), "conv2_b": vec(F), "bn": bn(F),
        "pix": [],
        "conv3_w": conv_w(F, 3, 1), "conv3_b": vec(3),
    }
    for _ in range(num_resblocks):
        params["res"].append(dict(
            w1=conv_w(F, F, 3), b1=vec(F), bn1=bn(F), prelu=jnp.float32(0.25),
            w2=conv_w(F, F, 3), b2=vec(F), bn2=bn(F)))
    for _ in range(n_pix):
        params["pix"].append(dict(
            w=conv_w(F, 4 * F, 3), b=vec(4 * F), prelu=jnp.float32(0.25)))
    return params


# -----------------------------------------------------------------------------
# SRResNet forward (Pallas kernels + layout glue)
# -----------------------------------------------------------------------------
def srresnet_forward(x_nchw, params):
    N, C0, H, W = x_nchw.shape

    # Pad the 3 input channels (and conv1's Cin) to a multiple of 8 so every
    # in-kernel sublane concat is 8-row aligned; padded channels are zero.
    pad_c = (-C0) % 8
    x_in = jnp.pad(x_nchw, ((0, 0), (0, pad_c), (0, 0), (0, 0)))
    w1p = jnp.pad(params["conv1_w"], ((0, 0), (0, 0), (0, pad_c), (0, 0)))

    x_st = to_stored(x_in)

    # fea_0 = PReLU(conv1(x))
    fea0 = conv_block(x_st, (H, W), w1p, params["conv1_b"],
                      prelu_alpha=params["prelu"])

    # Residual blocks: each fused into a single kernel.
    fea = fea0
    for rb in params["res"]:
        fea = res_block(fea, (H, W), rb)

    # fea = fea_0 + BN(conv2(fea))
    fea = conv_block(fea, (H, W), params["conv2_w"], params["conv2_b"],
                     bn=params["bn"], residual=fea0)

    # PixShuffleBlocks: conv(C -> 4C) -> PixelShuffle(2) -> PReLU.
    # Scalar-alpha PReLU commutes with the PixelShuffle permutation, so it is
    # fused into the conv kernel; the permutation itself stays layout glue.
    h, w = H, W
    for pb in params["pix"]:
        t = conv_block(fea, (h, w), pb["w"], pb["b"], prelu_alpha=pb["prelu"])
        img = from_stored(t, h, w)[:, :, 1:-1, 1:-1]          # (N, 4F, h, w)
        img = pixel_shuffle_nchw(img, 2)                      # (N, F, 2h, 2w)
        h, w = 2 * h, 2 * w
        fea = to_stored(img)

    # conv3: kernel_size=1 with padding=1 -> output spatial (h+2, w+2); the
    # stored form's zero ring IS that padding, so the kernel runs over every
    # padded position unmasked (border rows come out as pure bias), which
    # faithfully reproduces the PyTorch module's quirk.
    out_st = conv_block(fea, (h, w), params["conv3_w"], params["conv3_b"],
                        apply_mask=False)
    return from_stored(out_st, h, w)                          # (N, 3, h+2, w+2)


# -----------------------------------------------------------------------------
# Pure-JAX reference (mirrors the kernels' bf16 rounding points)
# -----------------------------------------------------------------------------
def srresnet_reference(x_nchw, params):
    f32 = jnp.float32

    def b16(t):
        return t.astype(jnp.bfloat16).astype(f32)

    def conv(x, w, bias, pad, bn=None, alpha=None):
        if bn is not None:
            gamma, beta, mean, var, eps = bn
            s = gamma / jnp.sqrt(var + eps)
            t = bias * s + beta - mean * s
        else:
            s = jnp.ones_like(bias)
            t = bias
        y = jax.lax.conv_general_dilated(
            x, b16(w), (1, 1), ((pad, pad), (pad, pad)),
            dimension_numbers=("NCHW", "HWIO", "NCHW"))
        y = y * s.reshape(1, -1, 1, 1) + t.reshape(1, -1, 1, 1)
        if alpha is not None:
            y = jnp.where(y >= 0, y, y * alpha)
        return y

    x = b16(x_nchw.astype(f32))
    fea0 = b16(conv(x, params["conv1_w"], params["conv1_b"], 1,
                    alpha=params["prelu"]))
    fea = fea0
    for rb in params["res"]:
        hmid = b16(conv(fea, rb["w1"], rb["b1"], 1, bn=rb["bn1"],
                        alpha=rb["prelu"]))
        fea = b16(conv(hmid, rb["w2"], rb["b2"], 1, bn=rb["bn2"]) + fea)
    fea = b16(conv(fea, params["conv2_w"], params["conv2_b"], 1,
                   bn=params["bn"]) + fea0)
    for pb in params["pix"]:
        t = b16(conv(fea, pb["w"], pb["b"], 1, alpha=pb["prelu"]))
        fea = pixel_shuffle_nchw(t, 2)
    return b16(conv(fea, params["conv3_w"], params["conv3_b"], 1))


if __name__ == "__main__":
    key = jax.random.PRNGKey(0)
    pkey, xkey = jax.random.split(key)

    num_resblocks, num_features, scaling_factor = 2, 8, 4
    params = init_params(pkey, num_resblocks, num_features, scaling_factor)

    x = jax.random.normal(xkey, (2, 3, 16, 16), jnp.float32)   # NCHW like PyTorch

    y = jax.block_until_ready(jax.jit(srresnet_forward)(x, params))

    expected = (2, 3, 16 * scaling_factor + 2, 16 * scaling_factor + 2)
    assert y.shape == expected, (y.shape, expected)
    assert bool(jnp.all(jnp.isfinite(y)))

    # Numerical check against a pure-JAX reference with matching bf16 rounding.
    y_ref = jax.block_until_ready(jax.jit(srresnet_reference)(x, params))
    rel_err = float(jnp.max(jnp.abs(y - y_ref))) / (
        float(jnp.max(jnp.abs(y_ref))) + 1e-8)
    assert rel_err < 1e-2, rel_err

    print("KERNEL_OK")
</pallas_src>

<mosaic_0001>
module attributes {stable_mosaic.version = 11 : i64} {
  func.func @_conv_kernel(%arg0: i32, %arg1: i32, %arg2: memref<1x8x580xbf16, #tpu.memory_space<vmem>>, %arg3: memref<8x72xbf16, #tpu.memory_space<vmem>>, %arg4: memref<8x1xf32, #tpu.memory_space<vmem>>, %arg5: memref<8x1xf32, #tpu.memory_space<vmem>>, %arg6: memref<1x324xf32, #tpu.memory_space<vmem>>, %arg7: memref<1x1xf32, #tpu.memory_space<smem>>, %arg8: memref<1x8x580xbf16, #tpu.memory_space<vmem>>) attributes {dimension_semantics = [#tpu.dimension_semantics<parallel>, #tpu.dimension_semantics<parallel>], iteration_bounds = array<i64: 2, 1>, scalar_prefetch = 0 : i64, scratch_operands = 0 : i64, tpu.core_type = #tpu.core_type<tc>, window_params = [{transform_indices = @transform_0, window_bounds = array<i64: 1, 8, 580>}, {transform_indices = @transform_1, window_bounds = array<i64: 8, 72>}, {transform_indices = @transform_2, window_bounds = array<i64: 8, 1>}, {transform_indices = @transform_3, window_bounds = array<i64: 8, 1>}, {pipeline_mode = #tpu.pipeline_mode<synchronous>, transform_indices = @transform_4, window_bounds = array<i64: 1, 324>}, {transform_indices = @transform_5, window_bounds = array<i64: 1, 1>}, {transform_indices = @transform_6, window_bounds = array<i64: 1, 8, 580>}]} {
    %c0 = arith.constant 0 : index
    %c0_0 = arith.constant 0 : index
    %c0_1 = arith.constant 0 : index
    %0 = vector.load %arg2[%c0, %c0_0, %c0_1] : memref<1x8x580xbf16, #tpu.memory_space<vmem>>, vector<1x8x580xbf16>
    %1 = vector.shape_cast %0 : vector<1x8x580xbf16> to vector<8x580xbf16>
    %2 = vector.extract_strided_slice %1 {offsets = [0, 109], sizes = [8, 324], strides = [1, 1]} : vector<8x580xbf16> to vector<8x324xbf16>
    %3 = vector.extract_strided_slice %1 {offsets = [0, 110], sizes = [8, 324], strides = [1, 1]} : vector<8x580xbf16> to vector<8x324xbf16>
    %4 = vector.extract_strided_slice %1 {offsets = [0, 111], sizes = [8, 324], strides = [1, 1]} : vector<8x580xbf16> to vector<8x324xbf16>
    %5 = vector.extract_strided_slice %1 {offsets = [0, 127], sizes = [8, 324], strides = [1, 1]} : vector<8x580xbf16> to vector<8x324xbf16>
    %6 = vector.extract_strided_slice %1 {offsets = [0, 128], sizes = [8, 324], strides = [1, 1]} : vector<8x580xbf16> to vector<8x324xbf16>
    %7 = vector.extract_strided_slice %1 {offsets = [0, 129], sizes = [8, 324], strides = [1, 1]} : vector<8x580xbf16> to vector<8x324xbf16>
    %8 = vector.extract_strided_slice %1 {offsets = [0, 145], sizes = [8, 324], strides = [1, 1]} : vector<8x580xbf16> to vector<8x324xbf16>
    %9 = vector.extract_strided_slice %1 {offsets = [0, 146], sizes = [8, 324], strides = [1, 1]} : vector<8x580xbf16> to vector<8x324xbf16>
    %10 = vector.extract_strided_slice %1 {offsets = [0, 147], sizes = [8, 324], strides = [1, 1]} : vector<8x580xbf16> to vector<8x324xbf16>
    %11 = tpu.concatenate %2, %3, %4, %5, %6, %7, %8, %9, %10 in 0 : vector<8x324xbf16>, vector<8x324xbf16>, vector<8x324xbf16>, vector<8x324xbf16>, vector<8x324xbf16>, vector<8x324xbf16>, vector<8x324xbf16>, vector<8x324xbf16>, vector<8x324xbf16> -> vector<72x324xbf16>
    %c0_2 = arith.constant 0 : index
    %c0_3 = arith.constant 0 : index
    %12 = vector.load %arg3[%c0_2, %c0_3] : memref<8x72xbf16, #tpu.memory_space<vmem>>, vector<8x72xbf16>
    %cst = arith.constant dense<0.000000e+00> : vector<8x324xf32>
    %13 = tpu.matmul %12, %11, %cst {dimension_numbers = #tpu.dot_dimension_numbers<[1], [0], [0], [1], [0, 0, 1, 1], [], []>} : vector<8x72xbf16>, vector<72x324xbf16>, vector<8x324xf32> -> vector<8x324xf32>
    %c0_4 = arith.constant 0 : index
    %c0_5 = arith.constant 0 : index
    %14 = vector.load %arg4[%c0_4, %c0_5] : memref<8x1xf32, #tpu.memory_space<vmem>>, vector<8x1xf32>
    %15 = vector.broadcast %14 : vector<8x1xf32> to vector<8x324xf32>
    %16 = arith.mulf %13, %15 : vector<8x324xf32>
    %c0_6 = arith.constant 0 : index
    %c0_7 = arith.constant 0 : index
    %17 = vector.load %arg5[%c0_6, %c0_7] : memref<8x1xf32, #tpu.memory_space<vmem>>, vector<8x1xf32>
    %18 = vector.broadcast %17 : vector<8x1xf32> to vector<8x324xf32>
    %19 = arith.addf %16, %18 : vector<8x324xf32>
    %c0_8 = arith.constant 0 : index
    %c0_9 = arith.constant 0 : index
    %20 = memref.load %arg7[%c0_8, %c0_9] : memref<1x1xf32, #tpu.memory_space<smem>>
    %cst_10 = arith.constant 0.000000e+00 : f32
    %21 = vector.broadcast %cst_10 : f32 to vector<8x324xf32>
    %22 = arith.cmpf oge, %19, %21 : vector<8x324xf32>
    %23 = vector.broadcast %20 : f32 to vector<8x324xf32>
    %24 = arith.mulf %19, %23 : vector<8x324xf32>
    %25 = arith.select %22, %19, %24 : vector<8x324xi1>, vector<8x324xf32>
    %c0_11 = arith.constant 0 : index
    %c0_12 = arith.constant 0 : index
    %26 = vector.load %arg6[%c0_11, %c0_12] : memref<1x324xf32, #tpu.memory_space<vmem>>, vector<1x324xf32>
    %27 = vector.broadcast %26 : vector<1x324xf32> to vector<8x324xf32>
    %28 = arith.mulf %25, %27 : vector<8x324xf32>
    %cst_13 = arith.constant 0.000000e+00 : bf16
    %29 = vector.broadcast %cst_13 : bf16 to vector<8x128xbf16>
    %c0_14 = arith.constant 0 : index
    %c0_15 = arith.constant 0 : index
    %c0_16 = arith.constant 0 : index
    %30 = vector.load %arg8[%c0_14, %c0_15, %c0_16] : memref<1x8x580xbf16, #tpu.memory_space<vmem>>, vector<1x8x128xbf16>
    %31 = vector.shape_cast %30 : vector<1x8x128xbf16> to vector<8x128xbf16>
    %32 = vector.shape_cast %29 : vector<8x128xbf16> to vector<1x8x128xbf16>
    tpu.vector_store %arg8[%c0_14, %c0_15, %c0_16], %32 {strides = array<i32>} : memref<1x8x580xbf16, #tpu.memory_space<vmem>>, vector<1x8x128xbf16>,
    %c0_17 = arith.constant 0 : index
    %c0_18 = arith.constant 0 : index
    %c452 = arith.constant 452 : index
    %33 = vector.load %arg8[%c0_17, %c0_18, %c452] : memref<1x8x580xbf16, #tpu.memory_space<vmem>>, vector<1x8x128xbf16>
    %34 = vector.shape_cast %33 : vector<1x8x128xbf16> to vector<8x128xbf16>
    %35 = vector.shape_cast %29 : vector<8x128xbf16> to vector<1x8x128xbf16>
    tpu.vector_store %arg8[%c0_17, %c0_18, %c452], %35 {strides = array<i32>} : memref<1x8x580xbf16, #tpu.memory_space<vmem>>, vector<1x8x128xbf16>,
    %36 = arith.truncf %28 : vector<8x324xf32> to vector<8x324xbf16>
    %c0_19 = arith.constant 0 : index
    %c0_20 = arith.constant 0 : index
    %c128 = arith.constant 128 : index
    %37 = vector.load %arg8[%c0_19, %c0_20, %c128] : memref<1x8x580xbf16, #tpu.memory_space<vmem>>, vector<1x8x324xbf16>
    %38 = vector.shape_cast %37 : vector<1x8x324xbf16> to vector<8x324xbf16>
    %39 = vector.shape_cast %36 : vector<8x324xbf16> to vector<1x8x324xbf16>
    tpu.vector_store %arg8[%c0_19, %c0_20, %c128], %39 {strides = array<i32>} : memref<1x8x580xbf16, #tpu.memory_space<vmem>>, vector<1x8x324xbf16>,
    return
  }
  func.func @transform_0(%arg0: i32, %arg1: i32) -> (i32, i32, i32) {
    %c0_i32 = arith.constant 0 : i32
    %c0_i32_0 = arith.constant 0 : i32
    %c0_i32_1 = arith.constant 0 : i32
    return %arg0, %c0_i32, %c0_i32_0 : i32, i32, i32
  }
  func.func @transform_1(%arg0: i32, %arg1: i32) -> (i32, i32) {
    %c0_i32 = arith.constant 0 : i32
    %c0_i32_0 = arith.constant 0 : i32
    return %arg1, %c0_i32 : i32, i32
  }
  func.func @transform_2(%arg0: i32, %arg1: i32) -> (i32, i32) {
    %c0_i32 = arith.constant 0 : i32
    %c0_i32_0 = arith.constant 0 : i32
    return %arg1, %c0_i32 : i32, i32
  }
  func.func @transform_3(%arg0: i32, %arg1: i32) -> (i32, i32) {
    %c0_i32 = arith.constant 0 : i32
    %c0_i32_0 = arith.constant 0 : i32
    return %arg1, %c0_i32 : i32, i32
  }
  func.func @transform_4(%arg0: i32, %arg1: i32) -> (i32, i32) {
    %c0_i32 = arith.constant 0 : i32
    %c0_i32_0 = arith.constant 0 : i32
    %c0_i32_1 = arith.constant 0 : i32
    return %c0_i32, %c0_i32_0 : i32, i32
  }
  func.func @transform_5(%arg0: i32, %arg1: i32) -> (i32, i32) {
    %c0_i32 = arith.constant 0 : i32
    %c0_i32_0 = arith.constant 0 : i32
    %c0_i32_1 = arith.constant 0 : i32
    return %c0_i32, %c0_i32_0 : i32, i32
  }
  func.func @transform_6(%arg0: i32, %arg1: i32) -> (i32, i32, i32) {
    %c0_i32 = arith.constant 0 : i32
    %c0_i32_0 = arith.constant 0 : i32
    return %arg0, %arg1, %c0_i32 : i32, i32, i32
  }
}

module attributes {stable_mosaic.version = 11 : i64} {
  func.func @_conv_kernel(%arg0: i32, %arg1: i32, %arg2: memref<1x8x580xbf16, #tpu.memory_space<vmem>>, %arg3: memref<8x72xbf16, #tpu.memory_space<vmem>>, %arg4: memref<8x1xf32, #tpu.memory_space<vmem>>, %arg5: memref<8x1xf32, #tpu.memory_space<vmem>>, %arg6: memref<1x324xf32, #tpu.memory_space<vmem>>, %arg7: memref<1x8x580xbf16, #tpu.memory_space<vmem>>, %arg8: memref<1x8x580xbf16, #tpu.memory_space<vmem>>) attributes {dimension_semantics = [#tpu.dimension_semantics<parallel>, #tpu.dimension_semantics<parallel>], iteration_bounds = array<i64: 2, 1>, scalar_prefetch = 0 : i64, scratch_operands = 0 : i64, tpu.core_type = #tpu.core_type<tc>, window_params = [{transform_indices = @transform_0, window_bounds = array<i64: 1, 8, 580>}, {transform_indices = @transform_1, window_bounds = array<i64: 8, 72>}, {transform_indices = @transform_2, window_bounds = array<i64: 8, 1>}, {transform_indices = @transform_3, window_bounds = array<i64: 8, 1>}, {pipeline_mode = #tpu.pipeline_mode<synchronous>, transform_indices = @transform_4, window_bounds = array<i64: 1, 324>}, {transform_indices = @transform_5, window_bounds = array<i64: 1, 8, 580>}, {transform_indices = @transform_6, window_bounds = array<i64: 1, 8, 580>}]} {
    %c0 = arith.constant 0 : index
    %c0_0 = arith.constant 0 : index
    %c0_1 = arith.constant 0 : index
    %0 = vector.load %arg2[%c0, %c0_0, %c0_1] : memref<1x8x580xbf16, #tpu.memory_space<vmem>>, vector<1x8x580xbf16>
    %1 = vector.shape_cast %0 : vector<1x8x580xbf16> to vector<8x580xbf16>
    %2 = vector.extract_strided_slice %1 {offsets = [0, 109], sizes = [8, 324], strides = [1, 1]} : vector<8x580xbf16> to vector<8x324xbf16>
    %3 = vector.extract_strided_slice %1 {offsets = [0, 110], sizes = [8, 324], strides = [1, 1]} : vector<8x580xbf16> to vector<8x324xbf16>
    %4 = vector.extract_strided_slice %1 {offsets = [0, 111], sizes = [8, 324], strides = [1, 1]} : vector<8x580xbf16> to vector<8x324xbf16>
    %5 = vector.extract_strided_slice %1 {offsets = [0, 127], sizes = [8, 324], strides = [1, 1]} : vector<8x580xbf16> to vector<8x324xbf16>
    %6 = vector.extract_strided_slice %1 {offsets = [0, 128], sizes = [8, 324], strides = [1, 1]} : vector<8x580xbf16> to vector<8x324xbf16>
    %7 = vector.extract_strided_slice %1 {offsets = [0, 129], sizes = [8, 324], strides = [1, 1]} : vector<8x580xbf16> to vector<8x324xbf16>
    %8 = vector.extract_strided_slice %1 {offsets = [0, 145], sizes = [8, 324], strides = [1, 1]} : vector<8x580xbf16> to vector<8x324xbf16>
    %9 = vector.extract_strided_slice %1 {offsets = [0, 146], sizes = [8, 324], strides = [1, 1]} : vector<8x580xbf16> to vector<8x324xbf16>
    %10 = vector.extract_strided_slice %1 {offsets = [0, 147], sizes = [8, 324], strides = [1, 1]} : vector<8x580xbf16> to vector<8x324xbf16>
    %11 = tpu.concatenate %2, %3, %4, %5, %6, %7, %8, %9, %10 in 0 : vector<8x324xbf16>, vector<8x324xbf16>, vector<8x324xbf16>, vector<8x324xbf16>, vector<8x324xbf16>, vector<8x324xbf16>, vector<8x324xbf16>, vector<8x324xbf16>, vector<8x324xbf16> -> vector<72x324xbf16>
    %c0_2 = arith.constant 0 : index
    %c0_3 = arith.constant 0 : index
    %12 = vector.load %arg3[%c0_2, %c0_3] : memref<8x72xbf16, #tpu.memory_space<vmem>>, vector<8x72xbf16>
    %cst = arith.constant dense<0.000000e+00> : vector<8x324xf32>
    %13 = tpu.matmul %12, %11, %cst {dimension_numbers = #tpu.dot_dimension_numbers<[1], [0], [0], [1], [0, 0, 1, 1], [], []>} : vector<8x72xbf16>, vector<72x324xbf16>, vector<8x324xf32> -> vector<8x324xf32>
    %c0_4 = arith.constant 0 : index
    %c0_5 = arith.constant 0 : index
    %14 = vector.load %arg4[%c0_4, %c0_5] : memref<8x1xf32, #tpu.memory_space<vmem>>, vector<8x1xf32>
    %15 = vector.broadcast %14 : vector<8x1xf32> to vector<8x324xf32>
    %16 = arith.mulf %13, %15 : vector<8x324xf32>
    %c0_6 = arith.constant 0 : index
    %c0_7 = arith.constant 0 : index
    %17 = vector.load %arg5[%c0_6, %c0_7] : memref<8x1xf32, #tpu.memory_space<vmem>>, vector<8x1xf32>
    %18 = vector.broadcast %17 : vector<8x1xf32> to vector<8x324xf32>
    %19 = arith.addf %16, %18 : vector<8x324xf32>
    %c0_8 = arith.constant 0 : index
    %c0_9 = arith.constant 0 : index
    %c128 = arith.constant 128 : index
    %20 = vector.load %arg7[%c0_8, %c0_9, %c128] : memref<1x8x580xbf16, #tpu.memory_space<vmem>>, vector<1x8x324xbf16>
    %21 = vector.shape_cast %20 : vector<1x8x324xbf16> to vector<8x324xbf16>
    %22 = arith.extf %21 : vector<8x324xbf16> to vector<8x324xf32>
    %23 = arith.addf %19, %22 : vector<8x324xf32>
    %c0_10 = arith.constant 0 : index
    %c0_11 = arith.constant 0 : index
    %24 = vector.load %arg6[%c0_10, %c0_11] : memref<1x324xf32, #tpu.memory_space<vmem>>, vector<1x324xf32>
    %25 = vector.broadcast %24 : vector<1x324xf32> to vector<8x324xf32>
    %26 = arith.mulf %23, %25 : vector<8x324xf32>
    %cst_12 = arith.constant 0.000000e+00 : bf16
    %27 = vector.broadcast %cst_12 : bf16 to vector<8x128xbf16>
    %c0_13 = arith.constant 0 : index
    %c0_14 = arith.constant 0 : index
    %c0_15 = arith.constant 0 : index
    %28 = vector.load %arg8[%c0_13, %c0_14, %c0_15] : memref<1x8x580xbf16, #tpu.memory_space<vmem>>, vector<1x8x128xbf16>
    %29 = vector.shape_cast %28 : vector<1x8x128xbf16> to vector<8x128xbf16>
    %30 = vector.shape_cast %27 : vector<8x128xbf16> to vector<1x8x128xbf16>
    tpu.vector_store %arg8[%c0_13, %c0_14, %c0_15], %30 {strides = array<i32>} : memref<1x8x580xbf16, #tpu.memory_space<vmem>>, vector<1x8x128xbf16>,
    %c0_16 = arith.constant 0 : index
    %c0_17 = arith.constant 0 : index
    %c452 = arith.constant 452 : index
    %31 = vector.load %arg8[%c0_16, %c0_17, %c452] : memref<1x8x580xbf16, #tpu.memory_space<vmem>>, vector<1x8x128xbf16>
    %32 = vector.shape_cast %31 : vector<1x8x128xbf16> to vector<8x128xbf16>
    %33 = vector.shape_cast %27 : vector<8x128xbf16> to vector<1x8x128xbf16>
    tpu.vector_store %arg8[%c0_16, %c0_17, %c452], %33 {strides = array<i32>} : memref<1x8x580xbf16, #tpu.memory_space<vmem>>, vector<1x8x128xbf16>,
    %34 = arith.truncf %26 : vector<8x324xf32> to vector<8x324xbf16>
    %c0_18 = arith.constant 0 : index
    %c0_19 = arith.constant 0 : index
    %c128_20 = arith.constant 128 : index
    %35 = vector.load %arg8[%c0_18, %c0_19, %c128_20] : memref<1x8x580xbf16, #tpu.memory_space<vmem>>, vector<1x8x324xbf16>
    %36 = vector.shape_cast %35 : vector<1x8x324xbf16> to vector<8x324xbf16>
    %37 = vector.shape_cast %34 : vector<8x324xbf16> to vector<1x8x324xbf16>
    tpu.vector_store %arg8[%c0_18, %c0_19, %c128_20], %37 {strides = array<i32>} : memref<1x8x580xbf16, #tpu.memory_space<vmem>>, vector<1x8x324xbf16>,
    return
  }
  func.func @transform_0(%arg0: i32, %arg1: i32) -> (i32, i32, i32) {
    %c0_i32 = arith.constant 0 : i32
    %c0_i32_0 = arith.constant 0 : i32
    %c0_i32_1 = arith.constant 0 : i32
    return %arg0, %c0_i32, %c0_i32_0 : i32, i32, i32
  }
  func.func @transform_1(%arg0: i32, %arg1: i32) -> (i32, i32) {
    %c0_i32 = arith.constant 0 : i32
    %c0_i32_0 = arith.constant 0 : i32
    return %arg1, %c0_i32 : i32, i32
  }
  func.func @transform_2(%arg0: i32, %arg1: i32) -> (i32, i32) {
    %c0_i32 = arith.constant 0 : i32
    %c0_i32_0 = arith.constant 0 : i32
    return %arg1, %c0_i32 : i32, i32
  }
  func.func @transform_3(%arg0: i32, %arg1: i32) -> (i32, i32) {
    %c0_i32 = arith.constant 0 : i32
    %c0_i32_0 = arith.constant 0 : i32
    return %arg1, %c0_i32 : i32, i32
  }
  func.func @transform_4(%arg0: i32, %arg1: i32) -> (i32, i32) {
    %c0_i32 = arith.constant 0 : i32
    %c0_i32_0 = arith.constant 0 : i32
    %c0_i32_1 = arith.constant 0 : i32
    return %c0_i32, %c0_i32_0 : i32, i32
  }
  func.func @transform_5(%arg0: i32, %arg1: i32) -> (i32, i32, i32) {
    %c0_i32 = arith.constant 0 : i32
    %c0_i32_0 = arith.constant 0 : i32
    return %arg0, %arg1, %c0_i32 : i32, i32, i32
  }
  func.func @transform_6(%arg0: i32, %arg1: i32) -> (i32, i32, i32) {
    %c0_i32 = arith.constant 0 : i32
    %c0_i32_0 = arith.constant 0 : i32
    return %arg0, %arg1, %c0_i32 : i32, i32, i32
  }
}

module attributes {stable_mosaic.version = 11 : i64} {
  func.func @_resblock_kernel(%arg0: i32, %arg1: memref<1x8x580xbf16, #tpu.memory_space<vmem>>, %arg2: memref<8x72xbf16, #tpu.memory_space<vmem>>, %arg3: memref<8x1xf32, #tpu.memory_space<vmem>>, %arg4: memref<8x1xf32, #tpu.memory_space<vmem>>, %arg5: memref<1x1xf32, #tpu.memory_space<smem>>, %arg6: memref<8x72xbf16, #tpu.memory_space<vmem>>, %arg7: memref<8x1xf32, #tpu.memory_space<vmem>>, %arg8: memref<8x1xf32, #tpu.memory_space<vmem>>, %arg9: memref<1x324xf32, #tpu.memory_space<vmem>>, %arg10: memref<1x8x580xbf16, #tpu.memory_space<vmem>>) attributes {dimension_semantics = [#tpu.dimension_semantics<parallel>], iteration_bounds = array<i64: 2>, scalar_prefetch = 0 : i64, scratch_operands = 0 : i64, tpu.core_type = #tpu.core_type<tc>, window_params = [{transform_indices = @transform_0, window_bounds = array<i64: 1, 8, 580>}, {pipeline_mode = #tpu.pipeline_mode<synchronous>, transform_indices = @transform_1, window_bounds = array<i64: 8, 72>}, {pipeline_mode = #tpu.pipeline_mode<synchronous>, transform_indices = @transform_2, window_bounds = array<i64: 8, 1>}, {pipeline_mode = #tpu.pipeline_mode<synchronous>, transform_indices = @transform_3, window_bounds = array<i64: 8, 1>}, {transform_indices = @transform_4, window_bounds = array<i64: 1, 1>}, {pipeline_mode = #tpu.pipeline_mode<synchronous>, transform_indices = @transform_5, window_bounds = array<i64: 8, 72>}, {pipeline_mode = #tpu.pipeline_mode<synchronous>, transform_indices = @transform_6, window_bounds = array<i64: 8, 1>}, {pipeline_mode = #tpu.pipeline_mode<synchronous>, transform_indices = @transform_7, window_bounds = array<i64: 8, 1>}, {pipeline_mode = #tpu.pipeline_mode<synchronous>, transform_indices = @transform_8, window_bounds = array<i64: 1, 324>}, {transform_indices = @transform_9, window_bounds = array<i64: 1, 8, 580>}]} {
    %c0 = arith.constant 0 : index
    %c0_0 = arith.constant 0 : index
    %c0_1 = arith.constant 0 : index
    %0 = vector.load %arg1[%c0, %c0_0, %c0_1] : memref<1x8x580xbf16, #tpu.memory_space<vmem>>, vector<1x8x580xbf16>
    %1 = vector.shape_cast %0 : vector<1x8x580xbf16> to vector<8x580xbf16>
    %c0_2 = arith.constant 0 : index
    %c0_3 = arith.constant 0 : index
    %2 = vector.load %arg9[%c0_2, %c0_3] : memref<1x324xf32, #tpu.memory_space<vmem>>, vector<1x324xf32>
    %3 = vector.extract_strided_slice %1 {offsets = [0, 109], sizes = [8, 324], strides = [1, 1]} : vector<8x580xbf16> to vector<8x324xbf16>
    %4 = vector.extract_strided_slice %1 {offsets = [0, 110], sizes = [8, 324], strides = [1, 1]} : vector<8x580xbf16> to vector<8x324xbf16>
    %5 = vector.extract_strided_slice %1 {offsets = [0, 111], sizes = [8, 324], strides = [1, 1]} : vector<8x580xbf16> to vector<8x324xbf16>
    %6 = vector.extract_strided_slice %1 {offsets = [0, 127], sizes = [8, 324], strides = [1, 1]} : vector<8x580xbf16> to vector<8x324xbf16>
    %7 = vector.extract_strided_slice %1 {offsets = [0, 128], sizes = [8, 324], strides = [1, 1]} : vector<8x580xbf16> to vector<8x324xbf16>
    %8 = vector.extract_strided_slice %1 {offsets = [0, 129], sizes = [8, 324], strides = [1, 1]} : vector<8x580xbf16> to vector<8x324xbf16>
    %9 = vector.extract_strided_slice %1 {offsets = [0, 145], sizes = [8, 324], strides = [1, 1]} : vector<8x580xbf16> to vector<8x324xbf16>
    %10 = vector.extract_strided_slice %1 {offsets = [0, 146], sizes = [8, 324], strides = [1, 1]} : vector<8x580xbf16> to vector<8x324xbf16>
    %11 = vector.extract_strided_slice %1 {offsets = [0, 147], sizes = [8, 324], strides = [1, 1]} : vector<8x580xbf16> to vector<8x324xbf16>
    %12 = tpu.concatenate %3, %4, %5, %6, %7, %8, %9, %10, %11 in 0 : vector<8x324xbf16>, vector<8x324xbf16>, vector<8x324xbf16>, vector<8x324xbf16>, vector<8x324xbf16>, vector<8x324xbf16>, vector<8x324xbf16>, vector<8x324xbf16>, vector<8x324xbf16> -> vector<72x324xbf16>
    %c0_4 = arith.constant 0 : index
    %c0_5 = arith.constant 0 : index
    %13 = vector.load %arg2[%c0_4, %c0_5] : memref<8x72xbf16, #tpu.memory_space<vmem>>, vector<8x72xbf16>
    %cst = arith.constant dense<0.000000e+00> : vector<8x324xf32>
    %14 = tpu.matmul %13, %12, %cst {dimension_numbers = #tpu.dot_dimension_numbers<[1], [0], [0], [1], [0, 0, 1, 1], [], []>} : vector<8x72xbf16>, vector<72x324xbf16>, vector<8x324xf32> -> vector<8x324xf32>
    %c0_6 = arith.constant 0 : index
    %c0_7 = arith.constant 0 : index
    %15 = vector.load %arg3[%c0_6, %c0_7] : memref<8x1xf32, #tpu.memory_space<vmem>>, vector<8x1xf32>
    %16 = vector.broadcast %15 : vector<8x1xf32> to vector<8x324xf32>
    %17 = arith.mulf %14, %16 : vector<8x324xf32>
    %c0_8 = arith.constant 0 : index
    %c0_9 = arith.constant 0 : index
    %18 = vector.load %arg4[%c0_8, %c0_9] : memref<8x1xf32, #tpu.memory_space<vmem>>, vector<8x1xf32>
    %19 = vector.broadcast %18 : vector<8x1xf32> to vector<8x324xf32>
    %20 = arith.addf %17, %19 : vector<8x324xf32>
    %c0_10 = arith.constant 0 : index
    %c0_11 = arith.constant 0 : index
    %21 = memref.load %arg5[%c0_10, %c0_11] : memref<1x1xf32, #tpu.memory_space<smem>>
    %cst_12 = arith.constant 0.000000e+00 : f32
    %22 = vector.broadcast %cst_12 : f32 to vector<8x324xf32>
    %23 = arith.cmpf oge, %20, %22 : vector<8x324xf32>
    %24 = vector.broadcast %21 : f32 to vector<8x324xf32>
    %25 = arith.mulf %20, %24 : vector<8x324xf32>
    %26 = arith.select %23, %20, %25 : vector<8x324xi1>, vector<8x324xf32>
    %27 = vector.broadcast %2 : vector<1x324xf32> to vector<8x324xf32>
    %28 = arith.mulf %26, %27 : vector<8x324xf32>
    %29 = arith.truncf %28 : vector<8x324xf32> to vector<8x324xbf16>
    %cst_13 = arith.constant 0.000000e+00 : bf16
    %30 = vector.broadcast %cst_13 : bf16 to vector<8x128xbf16>
    %31 = tpu.concatenate %30, %29, %30 in 1 : vector<8x128xbf16>, vector<8x324xbf16>, vector<8x128xbf16> -> vector<8x580xbf16>
    %32 = vector.extract_strided_slice %31 {offsets = [0, 109], sizes = [8, 324], strides = [1, 1]} : vector<8x580xbf16> to vector<8x324xbf16>
    %33 = vector.extract_strided_slice %31 {offsets = [0, 110], sizes = [8, 324], strides = [1, 1]} : vector<8x580xbf16> to vector<8x324xbf16>
    %34 = vector.extract_strided_slice %31 {offsets = [0, 111], sizes = [8, 324], strides = [1, 1]} : vector<8x580xbf16> to vector<8x324xbf16>
    %35 = vector.extract_strided_slice %31 {offsets = [0, 127], sizes = [8, 324], strides = [1, 1]} : vector<8x580xbf16> to vector<8x324xbf16>
    %36 = vector.extract_strided_slice %31 {offsets = [0, 128], sizes = [8, 324], strides = [1, 1]} : vector<8x580xbf16> to vector<8x324xbf16>
    %37 = vector.extract_strided_slice %31 {offsets = [0, 129], sizes = [8, 324], strides = [1, 1]} : vector<8x580xbf16> to vector<8x324xbf16>
    %38 = vector.extract_strided_slice %31 {offsets = [0, 145], sizes = [8, 324], strides = [1, 1]} : vector<8x580xbf16> to vector<8x324xbf16>
    %39 = vector.extract_strided_slice %31 {offsets = [0, 146], sizes = [8, 324], strides = [1, 1]} : vector<8x580xbf16> to vector<8x324xbf16>
    %40 = vector.extract_strided_slice %31 {offsets = [0, 147], sizes = [8, 324], strides = [1, 1]} : vector<8x580xbf16> to vector<8x324xbf16>
    %41 = tpu.concatenate %32, %33, %34, %35, %36, %37, %38, %39, %40 in 0 : vector<8x324xbf16>, vector<8x324xbf16>, vector<8x324xbf16>, vector<8x324xbf16>, vector<8x324xbf16>, vector<8x324xbf16>, vector<8x324xbf16>, vector<8x324xbf16>, vector<8x324xbf16> -> vector<72x324xbf16>
    %c0_14 = arith.constant 0 : index
    %c0_15 = arith.constant 0 : index
    %42 = vector.load %arg6[%c0_14, %c0_15] : memref<8x72xbf16, #tpu.memory_space<vmem>>, vector<8x72xbf16>
    %cst_16 = arith.constant dense<0.000000e+00> : vector<8x324xf32>
    %43 = tpu.matmul %42, %41, %cst_16 {dimension_numbers = #tpu.dot_dimension_numbers<[1], [0], [0], [1], [0, 0, 1, 1], [], []>} : vector<8x72xbf16>, vector<72x324xbf16>, vector<8x324xf32> -> vector<8x324xf32>
    %c0_17 = arith.constant 0 : index
    %c0_18 = arith.constant 0 : index
    %44 = vector.load %arg7[%c0_17, %c0_18] : memref<8x1xf32, #tpu.memory_space<vmem>>, vector<8x1xf32>
    %45 = vector.broadcast %44 : vector<8x1xf32> to vector<8x324xf32>
    %46 = arith.mulf %43, %45 : vector<8x324xf32>
    %c0_19 = arith.constant 0 : index
    %c0_20 = arith.constant 0 : index
    %47 = vector.load %arg8[%c0_19, %c0_20] : memref<8x1xf32, #tpu.memory_space<vmem>>, vector<8x1xf32>
    %48 = vector.broadcast %47 : vector<8x1xf32> to vector<8x324xf32>
    %49 = arith.addf %46, %48 : vector<8x324xf32>
    %50 = vector.extract_strided_slice %1 {offsets = [0, 128], sizes = [8, 324], strides = [1, 1]} : vector<8x580xbf16> to vector<8x324xbf16>
    %51 = arith.extf %50 : vector<8x324xbf16> to vector<8x324xf32>
    %52 = arith.addf %49, %51 : vector<8x324xf32>
    %53 = vector.broadcast %2 : vector<1x324xf32> to vector<8x324xf32>
    %54 = arith.mulf %52, %53 : vector<8x324xf32>
    %cst_21 = arith.constant 0.000000e+00 : bf16
    %55 = vector.broadcast %cst_21 : bf16 to vector<8x128xbf16>
    %c0_22 = arith.constant 0 : index
    %c0_23 = arith.constant 0 : index
    %c0_24 = arith.constant 0 : index
    %56 = vector.load %arg10[%c0_22, %c0_23, %c0_24] : memref<1x8x580xbf16, #tpu.memory_space<vmem>>, vector<1x8x128xbf16>
    %57 = vector.shape_cast %56 : vector<1x8x128xbf16> to vector<8x128xbf16>
    %58 = vector.shape_cast %55 : vector<8x128xbf16> to vector<1x8x128xbf16>
    tpu.vector_store %arg10[%c0_22, %c0_23, %c0_24], %58 {strides = array<i32>} : memref<1x8x580xbf16, #tpu.memory_space<vmem>>, vector<1x8x128xbf16>,
    %c0_25 = arith.constant 0 : index
    %c0_26 = arith.constant 0 : index
    %c452 = arith.constant 452 : index
    %59 = vector.load %arg10[%c0_25, %c0_26, %c452] : memref<1x8x580xbf16, #tpu.memory_space<vmem>>, vector<1x8x128xbf16>
    %60 = vector.shape_cast %59 : vector<1x8x128xbf16> to vector<8x128xbf16>
    %61 = vector.shape_cast %55 : vector<8x128xbf16> to vector<1x8x128xbf16>
    tpu.vector_store %arg10[%c0_25, %c0_26, %c452], %61 {strides = array<i32>} : memref<1x8x580xbf16, #tpu.memory_space<vmem>>, vector<1x8x128xbf16>,
    %62 = arith.truncf %54 : vector<8x324xf32> to vector<8x324xbf16>
    %c0_27 = arith.constant 0 : index
    %c0_28 = arith.constant 0 : index
    %c128 = arith.constant 128 : index
    %63 = vector.load %arg10[%c0_27, %c0_28, %c128] : memref<1x8x580xbf16, #tpu.memory_space<vmem>>, vector<1x8x324xbf16>
    %64 = vector.shape_cast %63 : vector<1x8x324xbf16> to vector<8x324xbf16>
    %65 = vector.shape_cast %62 : vector<8x324xbf16> to vector<1x8x324xbf16>
    tpu.vector_store %arg10[%c0_27, %c0_28, %c128], %65 {strides = array<i32>} : memref<1x8x580xbf16, #tpu.memory_space<vmem>>, vector<1x8x324xbf16>,
    return
  }
  func.func @transform_0(%arg0: i32) -> (i32, i32, i32) {
    %c0_i32 = arith.constant 0 : i32
    %c0_i32_0 = arith.constant 0 : i32
    %c0_i32_1 = arith.constant 0 : i32
    return %arg0, %c0_i32, %c0_i32_0 : i32, i32, i32
  }
  func.func @transform_1(%arg0: i32) -> (i32, i32) {
    %c0_i32 = arith.constant 0 : i32
    %c0_i32_0 = arith.constant 0 : i32
    %c0_i32_1 = arith.constant 0 : i32
    return %c0_i32, %c0_i32_0 : i32, i32
  }
  func.func @transform_2(%arg0: i32) -> (i32, i32) {
    %c0_i32 = arith.constant 0 : i32
    %c0_i32_0 = arith.constant 0 : i32
    %c0_i32_1 = arith.constant 0 : i32
    return %c0_i32, %c0_i32_0 : i32, i32
  }
  func.func @transform_3(%arg0: i32) -> (i32, i32) {
    %c0_i32 = arith.constant 0 : i32
    %c0_i32_0 = arith.constant 0 : i32
    %c0_i32_1 = arith.constant 0 : i32
    return %c0_i32, %c0_i32_0 : i32, i32
  }
  func.func @transform_4(%arg0: i32) -> (i32, i32) {
    %c0_i32 = arith.constant 0 : i32
    %c0_i32_0 = arith.constant 0 : i32
    %c0_i32_1 = arith.constant 0 : i32
    return %c0_i32, %c0_i32_0 : i32, i32
  }
  func.func @transform_5(%arg0: i32) -> (i32, i32) {
    %c0_i32 = arith.constant 0 : i32
    %c0_i32_0 = arith.constant 0 : i32
    %c0_i32_1 = arith.constant 0 : i32
    return %c0_i32, %c0_i32_0 : i32, i32
  }
  func.func @transform_6(%arg0: i32) -> (i32, i32) {
    %c0_i32 = arith.constant 0 : i32
    %c0_i32_0 = arith.constant 0 : i32
    %c0_i32_1 = arith.constant 0 : i32
    return %c0_i32, %c0_i32_0 : i32, i32
  }
  func.func @transform_7(%arg0: i32) -> (i32, i32) {
    %c0_i32 = arith.constant 0 : i32
    %c0_i32_0 = arith.constant 0 : i32
    %c0_i32_1 = arith.constant 0 : i32
    return %c0_i32, %c0_i32_0 : i32, i32
  }
  func.func @transform_8(%arg0: i32) -> (i32, i32) {
    %c0_i32 = arith.constant 0 : i32
    %c0_i32_0 = arith.constant 0 : i32
    %c0_i32_1 = arith.constant 0 : i32
    return %c0_i32, %c0_i32_0 : i32, i32
  }
  func.func @transform_9(%arg0: i32) -> (i32, i32, i32) {
    %c0_i32 = arith.constant 0 : i32
    %c0_i32_0 = arith.constant 0 : i32
    %c0_i32_1 = arith.constant 0 : i32
    return %arg0, %c0_i32, %c0_i32_0 : i32, i32, i32
  }
}

module attributes {stable_mosaic.version = 11 : i64} {
  func.func @_conv_kernel(%arg0: i32, %arg1: i32, %arg2: memref<1x8x580xbf16, #tpu.memory_space<vmem>>, %arg3: memref<16x72xbf16, #tpu.memory_space<vmem>>, %arg4: memref<16x1xf32, #tpu.memory_space<vmem>>, %arg5: memref<16x1xf32, #tpu.memory_space<vmem>>, %arg6: memref<1x324xf32, #tpu.memory_space<vmem>>, %arg7: memref<1x1xf32, #tpu.memory_space<smem>>, %arg8: memref<1x16x580xbf16, #tpu.memory_space<vmem>>) attributes {dimension_semantics = [#tpu.dimension_semantics<parallel>, #tpu.dimension_semantics<parallel>], iteration_bounds = array<i64: 2, 2>, scalar_prefetch = 0 : i64, scratch_operands = 0 : i64, tpu.core_type = #tpu.core_type<tc>, window_params = [{transform_indices = @transform_0, window_bounds = array<i64: 1, 8, 580>}, {transform_indices = @transform_1, window_bounds = array<i64: 16, 72>}, {transform_indices = @transform_2, window_bounds = array<i64: 16, 1>}, {transform_indices = @transform_3, window_bounds = array<i64: 16, 1>}, {pipeline_mode = #tpu.pipeline_mode<synchronous>, transform_indices = @transform_4, window_bounds = array<i64: 1, 324>}, {transform_indices = @transform_5, window_bounds = array<i64: 1, 1>}, {transform_indices = @transform_6, window_bounds = array<i64: 1, 16, 580>}]} {
    %c0 = arith.constant 0 : index
    %c0_0 = arith.constant 0 : index
    %c0_1 = arith.constant 0 : index
    %0 = vector.load %arg2[%c0, %c0_0, %c0_1] : memref<1x8x580xbf16, #tpu.memory_space<vmem>>, vector<1x8x580xbf16>
    %1 = vector.shape_cast %0 : vector<1x8x580xbf16> to vector<8x580xbf16>
    %2 = vector.extract_strided_slice %1 {offsets = [0, 109], sizes = [8, 324], strides = [1, 1]} : vector<8x580xbf16> to vector<8x324xbf16>
    %3 = vector.extract_strided_slice %1 {offsets = [0, 110], sizes = [8, 324], strides = [1, 1]} : vector<8x580xbf16> to vector<8x324xbf16>
    %4 = vector.extract_strided_slice %1 {offsets = [0, 111], sizes = [8, 324], strides = [1, 1]} : vector<8x580xbf16> to vector<8x324xbf16>
    %5 = vector.extract_strided_slice %1 {offsets = [0, 127], sizes = [8, 324], strides = [1, 1]} : vector<8x580xbf16> to vector<8x324xbf16>
    %6 = vector.extract_strided_slice %1 {offsets = [0, 128], sizes = [8, 324], strides = [1, 1]} : vector<8x580xbf16> to vector<8x324xbf16>
    %7 = vector.extract_strided_slice %1 {offsets = [0, 129], sizes = [8, 324], strides = [1, 1]} : vector<8x580xbf16> to vector<8x324xbf16>
    %8 = vector.extract_strided_slice %1 {offsets = [0, 145], sizes = [8, 324], strides = [1, 1]} : vector<8x580xbf16> to vector<8x324xbf16>
    %9 = vector.extract_strided_slice %1 {offsets = [0, 146], sizes = [8, 324], strides = [1, 1]} : vector<8x580xbf16> to vector<8x324xbf16>
    %10 = vector.extract_strided_slice %1 {offsets = [0, 147], sizes = [8, 324], strides = [1, 1]} : vector<8x580xbf16> to vector<8x324xbf16>
    %11 = tpu.concatenate %2, %3, %4, %5, %6, %7, %8, %9, %10 in 0 : vector<8x324xbf16>, vector<8x324xbf16>, vector<8x324xbf16>, vector<8x324xbf16>, vector<8x324xbf16>, vector<8x324xbf16>, vector<8x324xbf16>, vector<8x324xbf16>, vector<8x324xbf16> -> vector<72x324xbf16>
    %c0_2 = arith.constant 0 : index
    %c0_3 = arith.constant 0 : index
    %12 = vector.load %arg3[%c0_2, %c0_3] : memref<16x72xbf16, #tpu.memory_space<vmem>>, vector<16x72xbf16>
    %cst = arith.constant dense<0.000000e+00> : vector<16x324xf32>
    %13 = tpu.matmul %12, %11, %cst {dimension_numbers = #tpu.dot_dimension_numbers<[1], [0], [0], [1], [0, 0, 1, 1], [], []>} : vector<16x72xbf16>, vector<72x324xbf16>, vector<16x324xf32> -> vector<16x324xf32>
    %c0_4 = arith.constant 0 : index
    %c0_5 = arith.constant 0 : index
    %14 = vector.load %arg4[%c0_4, %c0_5] : memref<16x1xf32, #tpu.memory_space<vmem>>, vector<16x1xf32>
    %15 = vector.broadcast %14 : vector<16x1xf32> to vector<16x324xf32>
    %16 = arith.mulf %13, %15 : vector<16x324xf32>
    %c0_6 = arith.constant 0 : index
    %c0_7 = arith.constant 0 : index
    %17 = vector.load %arg5[%c0_6, %c0_7] : memref<16x1xf32, #tpu.memory_space<vmem>>, vector<16x1xf32>
    %18 = vector.broadcast %17 : vector<16x1xf32> to vector<16x324xf32>
    %19 = arith.addf %16, %18 : vector<16x324xf32>
    %c0_8 = arith.constant 0 : index
    %c0_9 = arith.constant 0 : index
    %20 = memref.load %arg7[%c0_8, %c0_9] : memref<1x1xf32, #tpu.memory_space<smem>>
    %cst_10 = arith.constant 0.000000e+00 : f32
    %21 = vector.broadcast %cst_10 : f32 to vector<16x324xf32>
    %22 = arith.cmpf oge, %19, %21 : vector<16x324xf32>
    %23 = vector.broadcast %20 : f32 to vector<16x324xf32>
    %24 = arith.mulf %19, %23 : vector<16x324xf32>
    %25 = arith.select %22, %19, %24 : vector<16x324xi1>, vector<16x324xf32>
    %c0_11 = arith.constant 0 : index
    %c0_12 = arith.constant 0 : index
    %26 = vector.load %arg6[%c0_11, %c0_12] : memref<1x324xf32, #tpu.memory_space<vmem>>, vector<1x324xf32>
    %27 = vector.broadcast %26 : vector<1x324xf32> to vector<16x324xf32>
    %28 = arith.mulf %25, %27 : vector<16x324xf32>
    %cst_13 = arith.constant 0.000000e+00 : bf16
    %29 = vector.broadcast %cst_13 : bf16 to vector<16x128xbf16>
    %c0_14 = arith.constant 0 : index
    %c0_15 = arith.constant 0 : index
    %c0_16 = arith.constant 0 : index
    %30 = vector.load %arg8[%c0_14, %c0_15, %c0_16] : memref<1x16x580xbf16, #tpu.memory_space<vmem>>, vector<1x16x128xbf16>
    %31 = vector.shape_cast %30 : vector<1x16x128xbf16> to vector<16x128xbf16>
    %32 = vector.shape_cast %29 : vector<16x128xbf16> to vector<1x16x128xbf16>
    tpu.vector_store %arg8[%c0_14, %c0_15, %c0_16], %32 {strides = array<i32>} : memref<1x16x580xbf16, #tpu.memory_space<vmem>>, vector<1x16x128xbf16>,
    %c0_17 = arith.constant 0 : index
    %c0_18 = arith.constant 0 : index
    %c452 = arith.constant 452 : index
    %33 = vector.load %arg8[%c0_17, %c0_18, %c452] : memref<1x16x580xbf16, #tpu.memory_space<vmem>>, vector<1x16x128xbf16>
    %34 = vector.shape_cast %33 : vector<1x16x128xbf16> to vector<16x128xbf16>
    %35 = vector.shape_cast %29 : vector<16x128xbf16> to vector<1x16x128xbf16>
    tpu.vector_store %arg8[%c0_17, %c0_18, %c452], %35 {strides = array<i32>} : memref<1x16x580xbf16, #tpu.memory_space<vmem>>, vector<1x16x128xbf16>,
    %36 = arith.truncf %28 : vector<16x324xf32> to vector<16x324xbf16>
    %c0_19 = arith.constant 0 : index
    %c0_20 = arith.constant 0 : index
    %c128 = arith.constant 128 : index
    %37 = vector.load %arg8[%c0_19, %c0_20, %c128] : memref<1x16x580xbf16, #tpu.memory_space<vmem>>, vector<1x16x324xbf16>
    %38 = vector.shape_cast %37 : vector<1x16x324xbf16> to vector<16x324xbf16>
    %39 = vector.shape_cast %36 : vector<16x324xbf16> to vector<1x16x324xbf16>
    tpu.vector_store %arg8[%c0_19, %c0_20, %c128], %39 {strides = array<i32>} : memref<1x16x580xbf16, #tpu.memory_space<vmem>>, vector<1x16x324xbf16>,
    return
  }
  func.func @transform_0(%arg0: i32, %arg1: i32) -> (i32, i32, i32) {
    %c0_i32 = arith.constant 0 : i32
    %c0_i32_0 = arith.constant 0 : i32
    %c0_i32_1 = arith.constant 0 : i32
    return %arg0, %c0_i32, %c0_i32_0 : i32, i32, i32
  }
  func.func @transform_1(%arg0: i32, %arg1: i32) -> (i32, i32) {
    %c0_i32 = arith.constant 0 : i32
    %c0_i32_0 = arith.constant 0 : i32
    return %arg1, %c0_i32 : i32, i32
  }
  func.func @transform_2(%arg0: i32, %arg1: i32) -> (i32, i32) {
    %c0_i32 = arith.constant 0 : i32
    %c0_i32_0 = arith.constant 0 : i32
    return %arg1, %c0_i32 : i32, i32
  }
  func.func @transform_3(%arg0: i32, %arg1: i32) -> (i32, i32) {
    %c0_i32 = arith.constant 0 : i32
    %c0_i32_0 = arith.constant 0 : i32
    return %arg1, %c0_i32 : i32, i32
  }
  func.func @transform_4(%arg0: i32, %arg1: i32) -> (i32, i32) {
    %c0_i32 = arith.constant 0 : i32
    %c0_i32_0 = arith.constant 0 : i32
    %c0_i32_1 = arith.constant 0 : i32
    return %c0_i32, %c0_i32_0 : i32, i32
  }
  func.func @transform_5(%arg0: i32, %arg1: i32) -> (i32, i32) {
    %c0_i32 = arith.constant 0 : i32
    %c0_i32_0 = arith.constant 0 : i32
    %c0_i32_1 = arith.constant 0 : i32
    return %c0_i32, %c0_i32_0 : i32, i32
  }
  func.func @transform_6(%arg0: i32, %arg1: i32) -> (i32, i32, i32) {
    %c0_i32 = arith.constant 0 : i32
    %c0_i32_0 = arith.constant 0 : i32
    return %arg0, %arg1, %c0_i32 : i32, i32, i32
  }
}

module attributes {stable_mosaic.version = 11 : i64} {
  func.func @_conv_kernel(%arg0: i32, %arg1: i32, %arg2: memref<1x8x1412xbf16, #tpu.memory_space<vmem>>, %arg3: memref<16x72xbf16, #tpu.memory_space<vmem>>, %arg4: memref<16x1xf32, #tpu.memory_space<vmem>>, %arg5: memref<16x1xf32, #tpu.memory_space<vmem>>, %arg6: memref<1x1156xf32, #tpu.memory_space<vmem>>, %arg7: memref<1x1xf32, #tpu.memory_space<smem>>, %arg8: memref<1x16x1412xbf16, #tpu.memory_space<vmem>>) attributes {dimension_semantics = [#tpu.dimension_semantics<parallel>, #tpu.dimension_semantics<parallel>], iteration_bounds = array<i64: 2, 2>, scalar_prefetch = 0 : i64, scratch_operands = 0 : i64, tpu.core_type = #tpu.core_type<tc>, window_params = [{transform_indices = @transform_0, window_bounds = array<i64: 1, 8, 1412>}, {transform_indices = @transform_1, window_bounds = array<i64: 16, 72>}, {transform_indices = @transform_2, window_bounds = array<i64: 16, 1>}, {transform_indices = @transform_3, window_bounds = array<i64: 16, 1>}, {pipeline_mode = #tpu.pipeline_mode<synchronous>, transform_indices = @transform_4, window_bounds = array<i64: 1, 1156>}, {transform_indices = @transform_5, window_bounds = array<i64: 1, 1>}, {transform_indices = @transform_6, window_bounds = array<i64: 1, 16, 1412>}]} {
    %c0 = arith.constant 0 : index
    %c0_0 = arith.constant 0 : index
    %c0_1 = arith.constant 0 : index
    %0 = vector.load %arg2[%c0, %c0_0, %c0_1] : memref<1x8x1412xbf16, #tpu.memory_space<vmem>>, vector<1x8x1412xbf16>
    %1 = vector.shape_cast %0 : vector<1x8x1412xbf16> to vector<8x1412xbf16>
    %2 = vector.extract_strided_slice %1 {offsets = [0, 93], sizes = [8, 1156], strides = [1, 1]} : vector<8x1412xbf16> to vector<8x1156xbf16>
    %3 = vector.extract_strided_slice %1 {offsets = [0, 94], sizes = [8, 1156], strides = [1, 1]} : vector<8x1412xbf16> to vector<8x1156xbf16>
    %4 = vector.extract_strided_slice %1 {offsets = [0, 95], sizes = [8, 1156], strides = [1, 1]} : vector<8x1412xbf16> to vector<8x1156xbf16>
    %5 = vector.extract_strided_slice %1 {offsets = [0, 127], sizes = [8, 1156], strides = [1, 1]} : vector<8x1412xbf16> to vector<8x1156xbf16>
    %6 = vector.extract_strided_slice %1 {offsets = [0, 128], sizes = [8, 1156], strides = [1, 1]} : vector<8x1412xbf16> to vector<8x1156xbf16>
    %7 = vector.extract_strided_slice %1 {offsets = [0, 129], sizes = [8, 1156], strides = [1, 1]} : vector<8x1412xbf16> to vector<8x1156xbf16>
    %8 = vector.extract_strided_slice %1 {offsets = [0, 161], sizes = [8, 1156], strides = [1, 1]} : vector<8x1412xbf16> to vector<8x1156xbf16>
    %9 = vector.extract_strided_slice %1 {offsets = [0, 162], sizes = [8, 1156], strides = [1, 1]} : vector<8x1412xbf16> to vector<8x1156xbf16>
    %10 = vector.extract_strided_slice %1 {offsets = [0, 163], sizes = [8, 1156], strides = [1, 1]} : vector<8x1412xbf16> to vector<8x1156xbf16>
    %11 = tpu.concatenate %2, %3, %4, %5, %6, %7, %8, %9, %10 in 0 : vector<8x1156xbf16>, vector<8x1156xbf16>, vector<8x1156xbf16>, vector<8x1156xbf16>, vector<8x1156xbf16>, vector<8x1156xbf16>, vector<8x1156xbf16>, vector<8x1156xbf16>, vector<8x1156xbf16> -> vector<72x1156xbf16>
    %c0_2 = arith.constant 0 : index
    %c0_3 = arith.constant 0 : index
    %12 = vector.load %arg3[%c0_2, %c0_3] : memref<16x72xbf16, #tpu.memory_space<vmem>>, vector<16x72xbf16>
    %cst = arith.constant dense<0.000000e+00> : vector<16x1156xf32>
    %13 = tpu.matmul %12, %11, %cst {dimension_numbers = #tpu.dot_dimension_numbers<[1], [0], [0], [1], [0, 0, 1, 1], [], []>} : vector<16x72xbf16>, vector<72x1156xbf16>, vector<16x1156xf32> -> vector<16x1156xf32>
    %c0_4 = arith.constant 0 : index
    %c0_5 = arith.constant 0 : index
    %14 = vector.load %arg4[%c0_4, %c0_5] : memref<16x1xf32, #tpu.memory_space<vmem>>, vector<16x1xf32>
    %15 = vector.broadcast %14 : vector<16x1xf32> to vector<16x1156xf32>
    %16 = arith.mulf %13, %15 : vector<16x1156xf32>
    %c0_6 = arith.constant 0 : index
    %c0_7 = arith.constant 0 : index
    %17 = vector.load %arg5[%c0_6, %c0_7] : memref<16x1xf32, #tpu.memory_space<vmem>>, vector<16x1xf32>
    %18 = vector.broadcast %17 : vector<16x1xf32> to vector<16x1156xf32>
    %19 = arith.addf %16, %18 : vector<16x1156xf32>
    %c0_8 = arith.constant 0 : index
    %c0_9 = arith.constant 0 : index
    %20 = memref.load %arg7[%c0_8, %c0_9] : memref<1x1xf32, #tpu.memory_space<smem>>
    %cst_10 = arith.constant 0.000000e+00 : f32
    %21 = vector.broadcast %cst_10 : f32 to vector<16x1156xf32>
    %22 = arith.cmpf oge, %19, %21 : vector<16x1156xf32>
    %23 = vector.broadcast %20 : f32 to vector<16x1156xf32>
    %24 = arith.mulf %19, %23 : vector<16x1156xf32>
    %25 = arith.select %22, %19, %24 : vector<16x1156xi1>, vector<16x1156xf32>
    %c0_11 = arith.constant 0 : index
    %c0_12 = arith.constant 0 : index
    %26 = vector.load %arg6[%c0_11, %c0_12] : memref<1x1156xf32, #tpu.memory_space<vmem>>, vector<1x1156xf32>
    %27 = vector.broadcast %26 : vector<1x1156xf32> to vector<16x1156xf32>
    %28 = arith.mulf %25, %27 : vector<16x1156xf32>
    %cst_13 = arith.constant 0.000000e+00 : bf16
    %29 = vector.broadcast %cst_13 : bf16 to vector<16x128xbf16>
    %c0_14 = arith.constant 0 : index
    %c0_15 = arith.constant 0 : index
    %c0_16 = arith.constant 0 : index
    %30 = vector.load %arg8[%c0_14, %c0_15, %c0_16] : memref<1x16x1412xbf16, #tpu.memory_space<vmem>>, vector<1x16x128xbf16>
    %31 = vector.shape_cast %30 : vector<1x16x128xbf16> to vector<16x128xbf16>
    %32 = vector.shape_cast %29 : vector<16x128xbf16> to vector<1x16x128xbf16>
    tpu.vector_store %arg8[%c0_14, %c0_15, %c0_16], %32 {strides = array<i32>} : memref<1x16x1412xbf16, #tpu.memory_space<vmem>>, vector<1x16x128xbf16>,
    %c0_17 = arith.constant 0 : index
    %c0_18 = arith.constant 0 : index
    %c1284 = arith.constant 1284 : index
    %33 = vector.load %arg8[%c0_17, %c0_18, %c1284] : memref<1x16x1412xbf16, #tpu.memory_space<vmem>>, vector<1x16x128xbf16>
    %34 = vector.shape_cast %33 : vector<1x16x128xbf16> to vector<16x128xbf16>
    %35 = vector.shape_cast %29 : vector<16x128xbf16> to vector<1x16x128xbf16>
    tpu.vector_store %arg8[%c0_17, %c0_18, %c1284], %35 {strides = array<i32>} : memref<1x16x1412xbf16, #tpu.memory_space<vmem>>, vector<1x16x128xbf16>,
    %36 = arith.truncf %28 : vector<16x1156xf32> to vector<16x1156xbf16>
    %c0_19 = arith.constant 0 : index
    %c0_20 = arith.constant 0 : index
    %c128 = arith.constant 128 : index
    %37 = vector.load %arg8[%c0_19, %c0_20, %c128] : memref<1x16x1412xbf16, #tpu.memory_space<vmem>>, vector<1x16x1156xbf16>
    %38 = vector.shape_cast %37 : vector<1x16x1156xbf16> to vector<16x1156xbf16>
    %39 = vector.shape_cast %36 : vector<16x1156xbf16> to vector<1x16x1156xbf16>
    tpu.vector_store %arg8[%c0_19, %c0_20, %c128], %39 {strides = array<i32>} : memref<1x16x1412xbf16, #tpu.memory_space<vmem>>, vector<1x16x1156xbf16>,
    return
  }
  func.func @transform_0(%arg0: i32, %arg1: i32) -> (i32, i32, i32) {
    %c0_i32 = arith.constant 0 : i32
    %c0_i32_0 = arith.constant 0 : i32
    %c0_i32_1 = arith.constant 0 : i32
    return %arg0, %c0_i32, %c0_i32_0 : i32, i32, i32
  }
  func.func @transform_1(%arg0: i32, %arg1: i32) -> (i32, i32) {
    %c0_i32 = arith.constant 0 : i32
    %c0_i32_0 = arith.constant 0 : i32
    return %arg1, %c0_i32 : i32, i32
  }
  func.func @transform_2(%arg0: i32, %arg1: i32) -> (i32, i32) {
    %c0_i32 = arith.constant 0 : i32
    %c0_i32_0 = arith.constant 0 : i32
    return %arg1, %c0_i32 : i32, i32
  }
  func.func @transform_3(%arg0: i32, %arg1: i32) -> (i32, i32) {
    %c0_i32 = arith.constant 0 : i32
    %c0_i32_0 = arith.constant 0 : i32
    return %arg1, %c0_i32 : i32, i32
  }
  func.func @transform_4(%arg0: i32, %arg1: i32) -> (i32, i32) {
    %c0_i32 = arith.constant 0 : i32
    %c0_i32_0 = arith.constant 0 : i32
    %c0_i32_1 = arith.constant 0 : i32
    return %c0_i32, %c0_i32_0 : i32, i32
  }
  func.func @transform_5(%arg0: i32, %arg1: i32) -> (i32, i32) {
    %c0_i32 = arith.constant 0 : i32
    %c0_i32_0 = arith.constant 0 : i32
    %c0_i32_1 = arith.constant 0 : i32
    return %c0_i32, %c0_i32_0 : i32, i32
  }
  func.func @transform_6(%arg0: i32, %arg1: i32) -> (i32, i32, i32) {
    %c0_i32 = arith.constant 0 : i32
    %c0_i32_0 = arith.constant 0 : i32
    return %arg0, %arg1, %c0_i32 : i32, i32, i32
  }
}

module attributes {stable_mosaic.version = 11 : i64} {
  func.func @_conv_kernel(%arg0: i32, %arg1: i32, %arg2: memref<1x8x4612xbf16, #tpu.memory_space<vmem>>, %arg3: memref<3x8xbf16, #tpu.memory_space<vmem>>, %arg4: memref<3x1xf32, #tpu.memory_space<vmem>>, %arg5: memref<3x1xf32, #tpu.memory_space<vmem>>, %arg6: memref<1x3x4612xbf16, #tpu.memory_space<vmem>>) attributes {dimension_semantics = [#tpu.dimension_semantics<parallel>, #tpu.dimension_semantics<parallel>], iteration_bounds = array<i64: 2, 1>, scalar_prefetch = 0 : i64, scratch_operands = 0 : i64, tpu.core_type = #tpu.core_type<tc>, window_params = [{transform_indices = @transform_0, window_bounds = array<i64: 1, 8, 4612>}, {transform_indices = @transform_1, window_bounds = array<i64: 3, 8>}, {transform_indices = @transform_2, window_bounds = array<i64: 3, 1>}, {transform_indices = @transform_3, window_bounds = array<i64: 3, 1>}, {transform_indices = @transform_4, window_bounds = array<i64: 1, 3, 4612>}]} {
    %c0 = arith.constant 0 : index
    %c0_0 = arith.constant 0 : index
    %c0_1 = arith.constant 0 : index
    %0 = vector.load %arg2[%c0, %c0_0, %c0_1] : memref<1x8x4612xbf16, #tpu.memory_space<vmem>>, vector<1x8x4612xbf16>
    %1 = vector.shape_cast %0 : vector<1x8x4612xbf16> to vector<8x4612xbf16>
    %2 = vector.extract_strided_slice %1 {offsets = [0, 128], sizes = [8, 4356], strides = [1, 1]} : vector<8x4612xbf16> to vector<8x4356xbf16>
    %c0_2 = arith.constant 0 : index
    %c0_3 = arith.constant 0 : index
    %3 = vector.load %arg3[%c0_2, %c0_3] : memref<3x8xbf16, #tpu.memory_space<vmem>>, vector<3x8xbf16>
    %cst = arith.constant dense<0.000000e+00> : vector<3x4356xf32>
    %4 = tpu.matmul %3, %2, %cst {dimension_numbers = #tpu.dot_dimension_numbers<[1], [0], [0], [1], [0, 0, 1, 1], [], []>} : vector<3x8xbf16>, vector<8x4356xbf16>, vector<3x4356xf32> -> vector<3x4356xf32>
    %c0_4 = arith.constant 0 : index
    %c0_5 = arith.constant 0 : index
    %5 = vector.load %arg4[%c0_4, %c0_5] : memref<3x1xf32, #tpu.memory_space<vmem>>, vector<3x1xf32>
    %6 = vector.broadcast %5 : vector<3x1xf32> to vector<3x4356xf32>
    %7 = arith.mulf %4, %6 : vector<3x4356xf32>
    %c0_6 = arith.constant 0 : index
    %c0_7 = arith.constant 0 : index
    %8 = vector.load %arg5[%c0_6, %c0_7] : memref<3x1xf32, #tpu.memory_space<vmem>>, vector<3x1xf32>
    %9 = vector.broadcast %8 : vector<3x1xf32> to vector<3x4356xf32>
    %10 = arith.addf %7, %9 : vector<3x4356xf32>
    %cst_8 = arith.constant 0.000000e+00 : bf16
    %11 = vector.broadcast %cst_8 : bf16 to vector<3x128xbf16>
    %c0_9 = arith.constant 0 : index
    %c0_10 = arith.constant 0 : index
    %c0_11 = arith.constant 0 : index
    %12 = vector.load %arg6[%c0_9, %c0_10, %c0_11] : memref<1x3x4612xbf16, #tpu.memory_space<vmem>>, vector<1x3x128xbf16>
    %13 = vector.shape_cast %12 : vector<1x3x128xbf16> to vector<3x128xbf16>
    %14 = vector.shape_cast %11 : vector<3x128xbf16> to vector<1x3x128xbf16>
    tpu.vector_store %arg6[%c0_9, %c0_10, %c0_11], %14 {strides = array<i32>} : memref<1x3x4612xbf16, #tpu.memory_space<vmem>>, vector<1x3x128xbf16>,
    %c0_12 = arith.constant 0 : index
    %c0_13 = arith.constant 0 : index
    %c4484 = arith.constant 4484 : index
    %15 = vector.load %arg6[%c0_12, %c0_13, %c4484] : memref<1x3x4612xbf16, #tpu.memory_space<vmem>>, vector<1x3x128xbf16>
    %16 = vector.shape_cast %15 : vector<1x3x128xbf16> to vector<3x128xbf16>
    %17 = vector.shape_cast %11 : vector<3x128xbf16> to vector<1x3x128xbf16>
    tpu.vector_store %arg6[%c0_12, %c0_13, %c4484], %17 {strides = array<i32>} : memref<1x3x4612xbf16, #tpu.memory_space<vmem>>, vector<1x3x128xbf16>,
    %18 = arith.truncf %10 : vector<3x4356xf32> to vector<3x4356xbf16>
    %c0_14 = arith.constant 0 : index
    %c0_15 = arith.constant 0 : index
    %c128 = arith.constant 128 : index
    %19 = vector.load %arg6[%c0_14, %c0_15, %c128] : memref<1x3x4612xbf16, #tpu.memory_space<vmem>>, vector<1x3x4356xbf16>
    %20 = vector.shape_cast %19 : vector<1x3x4356xbf16> to vector<3x4356xbf16>
    %21 = vector.shape_cast %18 : vector<3x4356xbf16> to vector<1x3x4356xbf16>
    tpu.vector_store %arg6[%c0_14, %c0_15, %c128], %21 {strides = array<i32>} : memref<1x3x4612xbf16, #tpu.memory_space<vmem>>, vector<1x3x4356xbf16>,
    return
  }
  func.func @transform_0(%arg0: i32, %arg1: i32) -> (i32, i32, i32) {
    %c0_i32 = arith.constant 0 : i32
    %c0_i32_0 = arith.constant 0 : i32
    %c0_i32_1 = arith.constant 0 : i32
    return %arg0, %c0_i32, %c0_i32_0 : i32, i32, i32
  }
  func.func @transform_1(%arg0: i32, %arg1: i32) -> (i32, i32) {
    %c0_i32 = arith.constant 0 : i32
    %c0_i32_0 = arith.constant 0 : i32
    return %arg1, %c0_i32 : i32, i32
  }
  func.func @transform_2(%arg0: i32, %arg1: i32) -> (i32, i32) {
    %c0_i32 = arith.constant 0 : i32
    %c0_i32_0 = arith.constant 0 : i32
    return %arg1, %c0_i32 : i32, i32
  }
  func.func @transform_3(%arg0: i32, %arg1: i32) -> (i32, i32) {
    %c0_i32 = arith.constant 0 : i32
    %c0_i32_0 = arith.constant 0 : i32
    return %arg1, %c0_i32 : i32, i32
  }
  func.func @transform_4(%arg0: i32, %arg1: i32) -> (i32, i32, i32) {
    %c0_i32 = arith.constant 0 : i32
    %c0_i32_0 = arith.constant 0 : i32
    return %arg0, %arg1, %c0_i32 : i32, i32, i32
  }
}

</mosaic_0001>

<bundles_post_ra>
// kernel: srresnet_forward.7
= control target key start
LH: loop header
LB: loop body
LE: loop exit
PB: predicated region body
PF: predicated region fallthrough
CT: control target
= control target key end

     0   :  { %s1007_s23 = smov 0   ;;  %s1009_s24 = smov 0   ;;  %s1181_s0 = inlined_call_operand.vmem [shape: bf16[2,8,580], index: 0, kind: input, shape index: {}]   ;;  %s1182_s1 = inlined_call_operand.vmem [shape: bf16[8,72], index: 1, kind: input, shape index: {}]   ;;  %s1183_s2 = inlined_call_operand.vmem [shape: f32[8,1], index: 2, kind: input, shape index: {}]   ;;  %s1184_s3 = inlined_call_operand.vmem [shape: f32[8,1], index: 3, kind: input, shape index: {}]   ;;  %s1185_s4 = inlined_call_operand.vmem [shape: f32[1,324], index: 4, kind: input, shape index: {}]   ;;  %s1186_s5 = inlined_call_operand.<no memory space> [shape: f32[1,1], index: 5, kind: input, shape index: {}]   ;;  %s1187_s6 = inlined_call_operand.vmem [shape: bf16[2,8,580], index: 6, kind: output, shape index: {}]  }
   0x1   :  { %11 = sst [smem:[#allocation2]] %s1186_s5  ;;  %s1011_s25 = smov 0  }
   0x2 LB: > { %s29_s5 = sadd.s32 1, %s951_s24  ;;  %p854_p0 = scmp.ge.s32.totalorder %s955_s25, 1  ;;  %s955_s25 = sphi %s1011_s25, %s17_s25   ;;  %s951_s24 = sphi %s1009_s24, %s1189_s24   ;;  %s947_s23 = sphi %s1007_s23, %s1188_s23  }
   0x3   : > { %p31_p1 = scmp.ge.s32.totalorder %s29_s5, 2  ;;  %p254_p2 = scmp.lt.s32.totalorder %s955_s25, 3 }
   0x5   : > { %s1191_s5 = smov (%p31_p1, %s29_s5), 0  ;;  %p255_p3 = pnand %p854_p0, %p254_p2 }
   0x6   : > { %p300_p4 = scmp.lt.s32.totalorder (!%p255_p3), %s947_s23, 1  ;;  %s957_s30 = smov (!%p255_p3), 90  }
   0x7   : > { %258 = sbr.rel (%p255_p3) target bundleno = 519 (0x207), region = 44  ;;  %s958_s7 = smov (!%p255_p3), 92  }
   0x8   : > { %s959_s8 = smov (!%p255_p3), 91   ;;  %s960_s9 = smov (!%p255_p3), 109  }
   0x9   : > { %s961_s10 = smov (!%p255_p3), 108   ;;  %s962_s11 = smov (!%p255_p3), 126  }
   0xa   : > { %s963_s12 = smov (!%p255_p3), 110   ;;  %s964_s13 = smov (!%p255_p3), 127  }
   0xb   : > { %s966_s14 = smov (!%p255_p3), 19  }
   0xc   : > { %s1193_s23 = smov (!%p300_p4, %s947_s23), 1  ;;  %v965_v6 = vmov 0.0   ;;  %vm417_vm0 = vcmask 736256   ;;  %vm420_vm1 = vcmask 1043456   ;;  %vm408_vm2 = vcmask 744448  }
   0xd   : > { %s890_s26 = smul.u32 20, %s1193_s23  ;;  %876 = vmatprep.subr.bf16.mxu1 %v965_v6  ;;  %vm399_vm3 = vcmask 752640   ;;  %vm390_vm4 = vcmask 883712   ;;  %vm381_vm5 = vcmask 891904   ;;  %vm359_vm6 = vcmask 1031168  }
   0xe   : > { %vm371_vm7 = vcmask 900096   ;;  %vm347_vm8 = vcmask 1039360   ;;  %vm698_vm9 = vcmask 1044000   ;;  %vm699_vm10 = vcmask 556036  }
   0xf   : > { %s304_s29 = scalar_lea.vmem %s1181_s0, %s890_s26  ;;  %s1110_s17 = scalar_lea.vmem %s1187_s6, %s890_s26  ;;  %v967_v58 = vmov 0   ;;  %vm700_vm11 = vmor %vm699_vm10, %vm698_vm9  ;;  %vm968_vm12 = vmmov 0   ;;  %vm526_vm13 = vcmask 154624   ;;  %vm554_vm14 = vcmask 588800  }
  0x10   : > { %v328_v0 = vld [vmem:[%s304_s29 + $0x8] sm:$0xff]  ;;  %v327_v1 = vld [vmem:[%s304_s29] sm:$0xff]  ;;  %599 = vmatprep.mubr.bf16.mxu0 %v967_v58  ;;  %697 = vst [vmem:[%s1110_s17] sm:$0xf] %v967_v58  ;;  %927 = vset.pattern.permute.xlu1 %v967_v58  ;;  %701 = vst.msk [vmem:[%s1110_s17 + $0xc] sm:$0xff] %vm700_vm11, %v967_v58  ;;  %s666_s26 = sld [smem:[#allocation2]] }
  0x11   : > { %v1033_v2 = vcombine.high %v328_v0, %v328_v0  ;;  %v1035_v3 = vcombine.high %v327_v1, %v327_v1  ;;  %v1039_v4 = vcombine.low %v328_v0, %v328_v0  ;;  %v1059_v5 = vcombine.low %v327_v1, %v327_v1  ;;  %886 = vmatprep.mubr.msk.bf16.mxu1 %vm968_vm12, %v965_v6 }
  0x12   : > { %928 = vset.pattern.permute.xlu0 %v967_v58 }
  0x13   : > { %415 = vrot.lane.b32.xlu1 %v1033_v2, %s957_s30  ;;  %411 = vrot.lane.b32.xlu0 %v1035_v3, %s957_s30 }
  0x17   : > { %393 = vrot.lane.b32.xlu1 %v1035_v3, %s958_s7  ;;  %413 = vrot.lane.b32.xlu0 %v1039_v4, %s957_s30 }
  0x1b   : > { %397 = vrot.lane.b32.xlu1 %v1033_v2, %s958_s7  ;;  %395 = vrot.lane.b32.xlu0 %v1039_v4, %s958_s7 }
  0x1f   : > { %404 = vrot.lane.b32.xlu1 %v1039_v4, %s959_s8  ;;  %402 = vrot.lane.b32.xlu0 %v1035_v3, %s959_s8 }
  0x23   : > { %375 = vrot.lane.b32.xlu1 %v1035_v3, %s960_s9  ;;  %406 = vrot.lane.b32.xlu0 %v1033_v2, %s959_s8 }
  0x27   : > { %379 = vrot.lane.b32.xlu1 %v1033_v2, %s960_s9  ;;  %377 = vrot.lane.b32.xlu0 %v1039_v4, %s960_s9 }
  0x2b   : > { %386 = vrot.lane.b32.xlu1 %v1039_v4, %s961_s10  ;;  %384 = vrot.lane.b32.xlu0 %v1035_v3, %s961_s10 }
  0x2f   : > { %353 = vrot.lane.b32.xlu1 %v1035_v3, %s962_s11  ;;  %388 = vrot.lane.b32.xlu0 %v1033_v2, %s961_s10 }
  0x33   : > { %357 = vrot.lane.b32.xlu1 %v1033_v2, %s962_s11  ;;  %355 = vrot.lane.b32.xlu0 %v1039_v4, %s962_s11 }
  0x37   : > { %367 = vrot.lane.b32.xlu1 %v1039_v4, %s963_s12  ;;  %365 = vrot.lane.b32.xlu0 %v1035_v3, %s963_s12 }
  0x3b   : > { %369 = vrot.lane.b32.xlu0 %v1033_v2, %s963_s12  ;;  %351 = vrot.lane.b32.xlu1 %v1059_v5, %s962_s11 }
  0x3f   : > { %363 = vrot.lane.b32.xlu0 %v1059_v5, %s963_s12  ;;  %341 = vrot.lane.b32.xlu1 %v1035_v3, %s964_s13 }
  0x43   : > { %343 = vrot.lane.b32.xlu0 %v1039_v4, %s964_s13  ;;  %345 = vrot.lane.b32.xlu1 %v1033_v2, %s964_s13 }
  0x47   : > { %339 = vrot.lane.b32.xlu0 %v1059_v5, %s964_s13 }
  0x85   : > { %v416_v7 = vpop.permute.xlu1 %415  ;;  %v412_v8 = vpop.permute.xlu0 %411 }
  0x86   : > { %518 = vrot.lane.b32.xlu1 %v412_v8, %s966_s14  ;;  %524 = vrot.lane.b32.xlu0 %v416_v7, %s966_s14 }
  0x89   : > { %v394_v9 = vpop.permute.xlu1 %393  ;;  %v414_v10 = vpop.permute.xlu0 %413 }
  0x8a   : > { %v418_v11 = vsel %vm417_vm0, %v412_v8, %v414_v10  ;;  %v419_v12 = vsel %vm417_vm0, %v414_v10, %v416_v7  ;;  %v648_v8 = vld [vmem:[%s1183_s2] sm:$0xff] }
  0x8b   : > { %520 = vrot.lane.b32.xlu0 %v418_v11, %s966_s14  ;;  %522 = vrot.lane.b32.xlu1 %v419_v12, %s966_s14 }
  0x8d   : > { %v398_v13 = vpop.permute.xlu1 %397  ;;  %v396_v14 = vpop.permute.xlu0 %395 }
  0x8e   : > { %v400_v27 = vsel %vm399_vm3, %v394_v9, %v396_v14  ;;  %v401_v46 = vsel %vm399_vm3, %v396_v14, %v398_v13 }
  0x91   : > { %v405_v15 = vpop.permute.xlu1 %404  ;;  %v403_v16 = vpop.permute.xlu0 %402 }
  0x92   : > { %v459_v17 = vsel %vm420_vm1, %v394_v9, %v403_v16  ;;  %v409_v26 = vsel %vm408_vm2, %v403_v16, %v405_v15 }
  0x93   : > { %510 = vrot.lane.b32.xlu1 %v459_v17, %s966_s14  ;;  %v462_v31 = vsel %vm420_vm1, %v400_v27, %v409_v26 }
  0x95   : > { %v376_v18 = vpop.permute.xlu1 %375  ;;  %v407_v19 = vpop.permute.xlu0 %406 }
  0x96   : > { %v468_v20 = vsel %vm420_vm1, %v398_v13, %v407_v19  ;;  %v410_v45 = vsel %vm408_vm2, %v405_v15, %v407_v19  ;;  %vm716_vm2 = vcmask 551936  }
  0x97   : > { %516 = vrot.lane.b32.xlu0 %v468_v20, %s966_s14  ;;  %v465_v50 = vsel %vm420_vm1, %v401_v46, %v410_v45 }
  0x99   : > { %v380_v21 = vpop.permute.xlu1 %379  ;;  %v378_v22 = vpop.permute.xlu0 %377 }
  0x9a   : > { %v382_v33 = vsel %vm381_vm5, %v376_v18, %v378_v22  ;;  %v383_v54 = vsel %vm381_vm5, %v378_v22, %v380_v21 }
  0x9d   : > { %v387_v23 = vpop.permute.xlu1 %386  ;;  %v385_v24 = vpop.permute.xlu0 %384 }
  0x9e   : > { %v447_v25 = vsel %vm420_vm1, %v376_v18, %v385_v24  ;;  %v391_v32 = vsel %vm390_vm4, %v385_v24, %v387_v23 }
  0x9f   : > { %502 = vrot.lane.b32.xlu1 %v447_v25, %s966_s14  ;;  %v450_v36 = vsel %vm420_vm1, %v382_v33, %v391_v32 }
  0xa1   : > { %v354_v28 = vpop.permute.xlu1 %353  ;;  %v389_v29 = vpop.permute.xlu0 %388 }
  0xa2   : > { %v456_v30 = vsel %vm420_vm1, %v380_v21, %v389_v29  ;;  %v392_v52 = vsel %vm390_vm4, %v387_v23, %v389_v29 }
  0xa3   : > { %508 = vrot.lane.b32.xlu0 %v456_v30, %s966_s14  ;;  %512 = vrot.lane.b32.xlu1 %v462_v31, %s966_s14  ;;  %v453_v57 = vsel %vm420_vm1, %v383_v54, %v392_v52  ;;  %v670_v52 = vstv %s666_s26 }
  0xa5   : > { %v358_v34 = vpop.permute.xlu1 %357  ;;  %v356_v35 = vpop.permute.xlu0 %355 }
  0xa6   : > { %v361_v39 = vsel %vm359_vm6, %v354_v28, %v356_v35  ;;  %v362_v62 = vsel %vm359_vm6, %v356_v35, %v358_v34 }
  0xa7   : > { %504 = vrot.lane.b32.xlu1 %v450_v36, %s966_s14 }
  0xa9   : > { %v368_v37 = vpop.permute.xlu1 %367  ;;  %v366_v38 = vpop.permute.xlu0 %365 }
  0xaa   : > { %v373_v40 = vsel %vm371_vm7, %v366_v38, %v368_v37 }
  0xab   : > { %v438_v41 = vsel %vm420_vm1, %v361_v39, %v373_v40 }
  0xac   : > { %496 = vrot.lane.b32.xlu1 %v438_v41, %s966_s14 }
  0xad   : > { %v370_v42 = vpop.permute.xlu0 %369  ;;  %v352_v43 = vpop.permute.xlu1 %351 }
  0xae   : > { %v444_v44 = vsel %vm420_vm1, %v358_v34, %v370_v42  ;;  %v360_v48 = vsel %vm359_vm6, %v352_v43, %v354_v28  ;;  %v374_v59 = vsel %vm371_vm7, %v368_v37, %v370_v42 }
  0xaf   : > { %500 = vrot.lane.b32.xlu0 %v444_v44, %s966_s14  ;;  %v441_v1 = vsel %vm420_vm1, %v362_v62, %v374_v59  ;;  %v469_v44 = vld [vmem:[%s1182_s1] sm:$0xf] }
  0xb1   : > { %v364_v47 = vpop.permute.xlu0 %363  ;;  %v342_v51 = vpop.permute.xlu1 %341 }
  0xb2   : > { %v372_v49 = vsel %vm371_vm7, %v364_v47, %v366_v38 }
  0xb3   : > { %514 = vrot.lane.b32.xlu0 %v465_v50, %s966_s14  ;;  %v435_v53 = vsel %vm420_vm1, %v360_v48, %v372_v49 }
  0xb4   : > { %494 = vrot.lane.b32.xlu1 %v435_v53, %s966_s14 }
  0xb5   : > { %v344_v55 = vpop.permute.xlu0 %343  ;;  %v346_v61 = vpop.permute.xlu1 %345 }
  0xb6   : > { %v349_v56 = vsel %vm347_vm8, %v342_v51, %v344_v55  ;;  %v350_v7 = vsel %vm347_vm8, %v344_v55, %v346_v61  ;;  %v432_v10 = vsel %vm420_vm1, %v1033_v2, %v346_v61 }
  0xb7   : > { %506 = vrot.lane.b32.xlu0 %v453_v57, %s966_s14  ;;  %v426_v60 = vsel %vm420_vm1, %v1035_v3, %v349_v56  ;;  %v429_v9 = vsel %vm420_vm1, %v1039_v4, %v350_v7  ;;  %v677_v56 = vld [vmem:[%s1185_s4] sm:$0x7] }
  0xb8   : > { %488 = vrot.lane.b32.xlu1 %v426_v60, %s966_s14 }
  0xb9   : > { %v340_v63 = vpop.permute.xlu0 %339 }
  0xba   : > { %v348_v0 = vsel %vm347_vm8, %v340_v63, %v342_v51 }
  0xbb   : > { %498 = vrot.lane.b32.xlu0 %v441_v1, %s966_s14  ;;  %v423_v3 = vsel %vm420_vm1, %v1059_v5, %v348_v0  ;;  %v657_v5 = vld [vmem:[%s1184_s3] sm:$0xff] }
  0xbc   : > { %486 = vrot.lane.b32.xlu1 %v423_v3, %s966_s14 }
  0xbf   : > { %490 = vrot.lane.b32.xlu0 %v429_v9, %s966_s14 }
  0xc0   : > { %651 = vperm.xlu1 %927, %v648_v8  }
  0xc3   : > { %492 = vrot.lane.b32.xlu0 %v432_v10, %s966_s14 }
  0xc7   : > { %660 = vperm.xlu0 %928, %v657_v5  }
  0xf8   : > { %v519_v11 = vpop.permute.xlu1 %518  ;;  %v525_v12 = vpop.permute.xlu0 %524 }
  0xfd   : > { %v521_v13 = vpop.permute.xlu0 %520  ;;  %v523_v14 = vpop.permute.xlu1 %522 }
  0xfe   : > { %v540_v4 = vsel %vm526_vm13, %v521_v13, %v523_v14  ;;  %v539_v15 = vsel %vm526_vm13, %v519_v11, %v521_v13  ;;  %v541_v16 = vsel %vm526_vm13, %v523_v14, %v525_v12 }
  0xff   : > { %861 = vmatprep.subr.msk.bf16.mxu0 %vm420_vm1, %v540_v4  ;;  %v559_v2 = vsel %vm420_vm1, %v539_v15, 0  ;;  %v565_v17 = vsel %vm420_vm1, %v541_v16, 0 }
 0x100   : > { %574 = vmatpush1.bf16.msra.mxu0 %v559_v2  ;;  %877 = vmatpush3.bf16.msra.mxu1 %v565_v17 }
 0x101   : > { %878 = vmatprep.subr.bf16.mxu1 %v965_v6 }
 0x105   : > { %v511_v18 = vpop.permute.xlu1 %510 }
 0x109   : > { %v517_v21 = vpop.permute.xlu0 %516 }
 0x111   : > { %v503_v19 = vpop.permute.xlu1 %502 }
 0x115   : > { %v513_v20 = vpop.permute.xlu1 %512  ;;  %v509_v23 = vpop.permute.xlu0 %508 }
 0x116   : > { %v536_v30 = vsel %vm526_vm13, %v511_v18, %v513_v20 }
 0x119   : > { %v505_v22 = vpop.permute.xlu1 %504 }
 0x11a   : > { %v533_v35 = vsel %vm526_vm13, %v503_v19, %v505_v22 }
 0x11e   : > { %v497_v25 = vpop.permute.xlu1 %496 }
 0x121   : > { %v501_v24 = vpop.permute.xlu0 %500 }
 0x125   : > { %v515_v26 = vpop.permute.xlu0 %514 }
 0x126   : > { %v495_v27 = vpop.permute.xlu1 %494  ;;  %v537_v28 = vsel %vm526_vm13, %v513_v20, %v515_v26  ;;  %v538_v29 = vsel %vm526_vm13, %v515_v26, %v517_v21 }
 0x127   : > { %575 = vmatprep.subr.bf16.mxu0 %v537_v28  ;;  %879 = vmatpush3.bf16.msra.mxu1 %v538_v29  ;;  %v530_v39 = vsel %vm526_vm13, %v495_v27, %v497_v25 }
 0x128   : > { %576 = vmatpush1.bf16.msra.mxu0 %v536_v30  ;;  %880 = vmatprep.subr.bf16.mxu1 %v965_v6 }
 0x129   : > { %v507_v31 = vpop.permute.xlu0 %506 }
 0x12a   : > { %v489_v32 = vpop.permute.xlu1 %488  ;;  %v534_v33 = vsel %vm526_vm13, %v505_v22, %v507_v31  ;;  %v535_v34 = vsel %vm526_vm13, %v507_v31, %v509_v23 }
 0x12b   : > { %577 = vmatprep.subr.bf16.mxu0 %v534_v33  ;;  %881 = vmatpush3.bf16.msra.mxu1 %v535_v34 }
 0x12c   : > { %578 = vmatpush1.bf16.msra.mxu0 %v533_v35  ;;  %882 = vmatprep.subr.bf16.mxu1 %v965_v6 }
 0x12d   : > { %v499_v36 = vpop.permute.xlu0 %498 }
 0x12e   : > { %v531_v37 = vsel %vm526_vm13, %v497_v25, %v499_v36  ;;  %v532_v38 = vsel %vm526_vm13, %v499_v36, %v501_v24  ;;  %v487_v40 = vpop.permute.xlu1 %486 }
 0x12f   : > { %579 = vmatprep.subr.bf16.mxu0 %v531_v37  ;;  %883 = vmatpush3.bf16.msra.mxu1 %v532_v38  ;;  %v527_v43 = vsel %vm526_vm13, %v487_v40, %v489_v32 }
 0x130   : > { %580 = vmatpush1.bf16.msra.mxu0 %v530_v39  ;;  %884 = vmatprep.subr.bf16.mxu1 %v965_v6  ;;  %v679_v6 = vlaneseq }
 0x131   : > { %v491_v41 = vpop.permute.xlu0 %490 }
 0x132   : > { %v528_v42 = vsel %vm526_vm13, %v489_v32, %v491_v41  ;;  %v680_v48 = vshrl.u32 %v679_v6, 7 }
 0x133   : > { %581 = vmatprep.subr.bf16.mxu0 %v528_v42 }
 0x134   : > { %582 = vmatpush1.bf16.msra.mxu0 %v527_v43  ;;  %v681_v53 = vsub.s32 0, %v680_v48  ;;  %v685_v55 = vsub.s32 1, %v680_v48  ;;  %v689_v60 = vsub.s32 2, %v680_v48 }
 0x135   : > { %v493_v45 = vpop.permute.xlu0 %492 }
 0x136   : > { %v529_v46 = vsel %vm526_vm13, %v491_v41, %v493_v45  ;;  %v682_v7 = vrot.slane %v677_v56, %v681_v53  ;;  %v686_v3 = vrot.slane %v677_v56, %v685_v55  ;;  %v690_v11 = vrot.slane %v677_v56, %v689_v60 }
 0x137   : > { %862 = vmatmul.mubr.msk.bf16.vlgmr.msra.gmra.mxu0 %vm554_vm14, %v469_v44  ;;  %885 = vmatpush3.bf16.msra.mxu1 %v529_v46 }
 0x13a   : > { %887 = vmatmul.mubr.msk.bf16.vlgmr.msra.gmra.mxu1 %vm554_vm14, %v469_v44 }
 0x13b   : > { %v652_v47 = vpop.permute.xlu1 %651 }
 0x142   : > { %v661_v50 = vpop.permute.xlu0 %660 }
 0x1f7   : > { %v601_v49 = vpop.f32.mrf.mxu0 }
 0x1f8   : > { %v654_v51 = vmul.f32 %v652_v47, %v601_v49 }
 0x1f9   : > { %v603_v54 = vpop.f32.mrf.mxu0 }
 0x1fa   : > { %v663_v57 = vadd.f32 %v661_v50, %v654_v51  ;;  %v655_v58 = vmul.f32 %v652_v47, %v603_v54  ;;  %v642_v59 = vpop.f32.mrf.mxu1 }
 0x1fb   : > { %v656_v61 = vmul.f32 %v652_v47, %v642_v59  ;;  %v605_v62 = vpop.f32.mrf.mxu0 }
 0x1fc   : > { %vm667_vm15 = vcmp.ge.f32.partialorder %v663_v57, 0.0  ;;  %v671_v63 = vmul.f32 %v670_v52, %v663_v57  ;;  %v664_v0 = vadd.f32 %v661_v50, %v655_v58  ;;  %v888_v1 = vpop.f32.mrf.mxu1 }
 0x1fd   : > { %v665_v8 = vadd.f32 %v661_v50, %v656_v61  ;;  %v606_v9 = vpop.f32.mrf.mxu0 }
 0x1fe   : > { %v674_v10 = vsel %vm667_vm15, %v663_v57, %v671_v63  ;;  %vm668_vm0 = vcmp.ge.f32.partialorder %v664_v0, 0.0  ;;  %v672_v5 = vmul.f32 %v670_v52, %v664_v0  ;;  %v645_v12 = vpop.f32.mrf.mxu1 }
 0x1ff   : > { %vm669_vm1 = vcmp.ge.f32.partialorder %v665_v8, 0.0  ;;  %v673_v13 = vmul.f32 %v670_v52, %v665_v8  ;;  %v694_v15 = vmul.f32 %v682_v7, %v674_v10 }
 0x200   : > { %v675_v14 = vsel %vm668_vm0, %v664_v0, %v672_v5  ;;  %v889_v4 = vpop.f32.mrf.mxu1 }
 0x201   : > { %v695_v16 = vmul.f32 %v686_v3, %v675_v14  ;;  %v676_v2 = vsel %vm669_vm1, %v665_v8, %v673_v13 }
 0x202   : > { %v696_v17 = vmul.f32 %v690_v11, %v676_v2 }
 0x203   : > { %v868_v18 = vpack.c.bf16 %v695_v16, %v694_v15 }
 0x204   : > { %v869_v19 = vpack.c.bf16 %v696_v17, %v696_v17 }
 0x205   : > { %715 = vst [vmem:[%s1110_s17 + $0x4] sm:$0xff] %v868_v18 }
 0x206   : > { %717 = vst.msk [vmem:[%s1110_s17 + $0xc] sm:$0xf] %vm716_vm2, %v869_v19 }
 0x207 PF: > { %s17_s25 = sadd.s32 1, %s955_s25   ;;  %s1188_s23 = smov %s951_s24 }
 0x208   : > { %p14_p5 = scmp.ge.s32.totalorder %s17_s25, 4   ;;  %s1189_s24 = smov %s1191_s5 }
 0x20a   :  { %16 = sbr.rel (!%p14_p5) target bundleno = 2 (0x2), region = 83 }

// kernel: srresnet_forward.10
= control target key start
LH: loop header
LB: loop body
LE: loop exit
PB: predicated region body
PF: predicated region fallthrough
CT: control target
= control target key end

     0   :  { %s1056_s21 = smov 0   ;;  %s1058_s22 = smov 0   ;;  %s1231_s0 = inlined_call_operand.vmem [shape: bf16[2,8,580], index: 0, kind: input, shape index: {}]   ;;  %s1232_s1 = inlined_call_operand.vmem [shape: bf16[8,72], index: 1, kind: input, shape index: {}]   ;;  %s1233_s2 = inlined_call_operand.vmem [shape: f32[8,1], index: 2, kind: input, shape index: {}]   ;;  %s1234_s3 = inlined_call_operand.vmem [shape: f32[8,1], index: 3, kind: input, shape index: {}]   ;;  %s1235_s4 = inlined_call_operand.vmem [shape: f32[1,324], index: 4, kind: input, shape index: {}]   ;;  %s1236_s5 = inlined_call_operand.vmem [shape: bf16[2,8,580], index: 5, kind: input, shape index: {}]   ;;  %s1237_s6 = inlined_call_operand.vmem [shape: bf16[2,8,580], index: 6, kind: output, shape index: {}]  }
   0x1   :  { %s1060_s23 = smov 0  }
   0x2 LB: > { %s28_s24 = sadd.s32 1, %s1003_s22  ;;  %p905_p0 = scmp.ge.s32.totalorder %s1007_s23, 1  ;;  %s1007_s23 = sphi %s1060_s23, %s16_s23   ;;  %s1003_s22 = sphi %s1058_s22, %s1239_s22   ;;  %s999_s21 = sphi %s1056_s21, %s1238_s21  }
   0x3   : > { %p30_p1 = scmp.ge.s32.totalorder %s28_s24, 2  ;;  %p269_p2 = scmp.lt.s32.totalorder %s1007_s23, 3 }
   0x5   : > { %s1241_s24 = smov (%p30_p1, %s28_s24), 0  ;;  %p270_p3 = pnand %p905_p0, %p269_p2 }
   0x6   : > { %p324_p4 = scmp.lt.s32.totalorder (!%p270_p3), %s999_s21, 1  ;;  %s1009_s29 = smov (!%p270_p3), 90  }
   0x7   : > { %273 = sbr.rel (%p270_p3) target bundleno = 518 (0x206), region = 44  ;;  %s1010_s30 = smov (!%p270_p3), 92  }
   0x8   : > { %s1011_s7 = smov (!%p270_p3), 91   ;;  %s1012_s8 = smov (!%p270_p3), 109  }
   0x9   : > { %s1013_s9 = smov (!%p270_p3), 108   ;;  %s1014_s10 = smov (!%p270_p3), 126  }
   0xa   : > { %s1015_s11 = smov (!%p270_p3), 110   ;;  %s1016_s12 = smov (!%p270_p3), 127  }
   0xb   : > { %s1018_s13 = smov (!%p270_p3), 19  }
   0xc   : > { %s1243_s21 = smov (!%p324_p4, %s999_s21), 1  ;;  %v1017_v6 = vmov 0.0   ;;  %vm450_vm0 = vcmask 736256   ;;  %vm453_vm1 = vcmask 1043456   ;;  %vm441_vm2 = vcmask 744448  }
   0xd   : > { %s1074_s25 = smul.u32 20, %s1243_s21  ;;  %928 = vmatprep.subr.bf16.mxu1 %v1017_v6  ;;  %vm432_vm3 = vcmask 752640   ;;  %vm423_vm4 = vcmask 883712   ;;  %vm414_vm5 = vcmask 891904   ;;  %vm392_vm6 = vcmask 1031168  }
   0xe   : > { %vm404_vm7 = vcmask 900096   ;;  %vm380_vm8 = vcmask 1039360   ;;  %vm728_vm9 = vcmask 1044000   ;;  %vm729_vm10 = vcmask 556036  }
   0xf   : > { %s328_s28 = scalar_lea.vmem %s1231_s0, %s1074_s25  ;;  %s1156_s16 = scalar_lea.vmem %s1237_s6, %s1074_s25  ;;  %v1019_v58 = vmov 0   ;;  %vm730_vm11 = vmor %vm729_vm10, %vm728_vm9  ;;  %vm1020_vm12 = vmmov 0   ;;  %vm559_vm13 = vcmask 154624   ;;  %vm587_vm14 = vcmask 588800  }
  0x10   : > { %v361_v0 = vld [vmem:[%s328_s28 + $0x8] sm:$0xff]  ;;  %v360_v1 = vld [vmem:[%s328_s28] sm:$0xff]  ;;  %632 = vmatprep.mubr.bf16.mxu0 %v1019_v58  ;;  %727 = vst [vmem:[%s1156_s16] sm:$0xf] %v1019_v58  ;;  %979 = vset.pattern.permute.xlu1 %v1019_v58  ;;  %731 = vst.msk [vmem:[%s1156_s16 + $0xc] sm:$0xff] %vm730_vm11, %v1019_v58  ;;  %vm746_vm15 = vcmask 551936  }
  0x11   : > { %v1080_v2 = vcombine.high %v361_v0, %v361_v0  ;;  %v1082_v3 = vcombine.high %v360_v1, %v360_v1  ;;  %v1086_v4 = vcombine.low %v361_v0, %v361_v0  ;;  %v1106_v5 = vcombine.low %v360_v1, %v360_v1  ;;  %938 = vmatprep.mubr.msk.bf16.mxu1 %vm1020_vm12, %v1017_v6 }
  0x12   : > { %980 = vset.pattern.permute.xlu0 %v1019_v58 }
  0x13   : > { %448 = vrot.lane.b32.xlu1 %v1080_v2, %s1009_s29  ;;  %444 = vrot.lane.b32.xlu0 %v1082_v3, %s1009_s29 }
  0x17   : > { %426 = vrot.lane.b32.xlu1 %v1082_v3, %s1010_s30  ;;  %446 = vrot.lane.b32.xlu0 %v1086_v4, %s1009_s29  ;;  %s349_s29 = scalar_lea.vmem %s1236_s5, %s1074_s25 }
  0x1b   : > { %430 = vrot.lane.b32.xlu1 %v1080_v2, %s1010_s30  ;;  %428 = vrot.lane.b32.xlu0 %v1086_v4, %s1010_s30 }
  0x1f   : > { %437 = vrot.lane.b32.xlu1 %v1086_v4, %s1011_s7  ;;  %435 = vrot.lane.b32.xlu0 %v1082_v3, %s1011_s7 }
  0x23   : > { %408 = vrot.lane.b32.xlu1 %v1082_v3, %s1012_s8  ;;  %439 = vrot.lane.b32.xlu0 %v1080_v2, %s1011_s7 }
  0x27   : > { %412 = vrot.lane.b32.xlu1 %v1080_v2, %s1012_s8  ;;  %410 = vrot.lane.b32.xlu0 %v1086_v4, %s1012_s8 }
  0x2b   : > { %419 = vrot.lane.b32.xlu1 %v1086_v4, %s1013_s9  ;;  %417 = vrot.lane.b32.xlu0 %v1082_v3, %s1013_s9 }
  0x2f   : > { %386 = vrot.lane.b32.xlu1 %v1082_v3, %s1014_s10  ;;  %421 = vrot.lane.b32.xlu0 %v1080_v2, %s1013_s9 }
  0x33   : > { %390 = vrot.lane.b32.xlu1 %v1080_v2, %s1014_s10  ;;  %388 = vrot.lane.b32.xlu0 %v1086_v4, %s1014_s10 }
  0x37   : > { %400 = vrot.lane.b32.xlu1 %v1086_v4, %s1015_s11  ;;  %398 = vrot.lane.b32.xlu0 %v1082_v3, %s1015_s11 }
  0x3b   : > { %402 = vrot.lane.b32.xlu0 %v1080_v2, %s1015_s11  ;;  %384 = vrot.lane.b32.xlu1 %v1106_v5, %s1014_s10 }
  0x3f   : > { %396 = vrot.lane.b32.xlu0 %v1106_v5, %s1015_s11  ;;  %374 = vrot.lane.b32.xlu1 %v1082_v3, %s1016_s12 }
  0x43   : > { %376 = vrot.lane.b32.xlu0 %v1086_v4, %s1016_s12  ;;  %378 = vrot.lane.b32.xlu1 %v1080_v2, %s1016_s12 }
  0x47   : > { %372 = vrot.lane.b32.xlu0 %v1106_v5, %s1016_s12 }
  0x85   : > { %v449_v7 = vpop.permute.xlu1 %448  ;;  %v445_v8 = vpop.permute.xlu0 %444 }
  0x86   : > { %551 = vrot.lane.b32.xlu1 %v445_v8, %s1018_s13  ;;  %557 = vrot.lane.b32.xlu0 %v449_v7, %s1018_s13 }
  0x89   : > { %v427_v9 = vpop.permute.xlu1 %426  ;;  %v447_v10 = vpop.permute.xlu0 %446 }
  0x8a   : > { %v451_v11 = vsel %vm450_vm0, %v445_v8, %v447_v10  ;;  %v452_v12 = vsel %vm450_vm0, %v447_v10, %v449_v7  ;;  %v681_v8 = vld [vmem:[%s1233_s2] sm:$0xff] }
  0x8b   : > { %553 = vrot.lane.b32.xlu0 %v451_v11, %s1018_s13  ;;  %555 = vrot.lane.b32.xlu1 %v452_v12, %s1018_s13 }
  0x8d   : > { %v431_v13 = vpop.permute.xlu1 %430  ;;  %v429_v14 = vpop.permute.xlu0 %428 }
  0x8e   : > { %v433_v27 = vsel %vm432_vm3, %v427_v9, %v429_v14  ;;  %v434_v46 = vsel %vm432_vm3, %v429_v14, %v431_v13 }
  0x91   : > { %v438_v15 = vpop.permute.xlu1 %437  ;;  %v436_v16 = vpop.permute.xlu0 %435 }
  0x92   : > { %v492_v17 = vsel %vm453_vm1, %v427_v9, %v436_v16  ;;  %v442_v26 = vsel %vm441_vm2, %v436_v16, %v438_v15 }
  0x93   : > { %543 = vrot.lane.b32.xlu1 %v492_v17, %s1018_s13  ;;  %v495_v31 = vsel %vm453_vm1, %v433_v27, %v442_v26 }
  0x95   : > { %v409_v18 = vpop.permute.xlu1 %408  ;;  %v440_v19 = vpop.permute.xlu0 %439 }
  0x96   : > { %v501_v20 = vsel %vm453_vm1, %v431_v13, %v440_v19  ;;  %v443_v45 = vsel %vm441_vm2, %v438_v15, %v440_v19 }
  0x97   : > { %549 = vrot.lane.b32.xlu0 %v501_v20, %s1018_s13  ;;  %v498_v50 = vsel %vm453_vm1, %v434_v46, %v443_v45 }
  0x99   : > { %v413_v21 = vpop.permute.xlu1 %412  ;;  %v411_v22 = vpop.permute.xlu0 %410 }
  0x9a   : > { %v415_v33 = vsel %vm414_vm5, %v409_v18, %v411_v22  ;;  %v416_v54 = vsel %vm414_vm5, %v411_v22, %v413_v21 }
  0x9d   : > { %v420_v23 = vpop.permute.xlu1 %419  ;;  %v418_v24 = vpop.permute.xlu0 %417 }
  0x9e   : > { %v480_v25 = vsel %vm453_vm1, %v409_v18, %v418_v24  ;;  %v424_v32 = vsel %vm423_vm4, %v418_v24, %v420_v23 }
  0x9f   : > { %535 = vrot.lane.b32.xlu1 %v480_v25, %s1018_s13  ;;  %v483_v36 = vsel %vm453_vm1, %v415_v33, %v424_v32 }
  0xa1   : > { %v387_v28 = vpop.permute.xlu1 %386  ;;  %v422_v29 = vpop.permute.xlu0 %421 }
  0xa2   : > { %v489_v30 = vsel %vm453_vm1, %v413_v21, %v422_v29  ;;  %v425_v52 = vsel %vm423_vm4, %v420_v23, %v422_v29 }
  0xa3   : > { %541 = vrot.lane.b32.xlu0 %v489_v30, %s1018_s13  ;;  %545 = vrot.lane.b32.xlu1 %v495_v31, %s1018_s13  ;;  %v486_v57 = vsel %vm453_vm1, %v416_v54, %v425_v52  ;;  %v707_v52 = vld [vmem:[%s1235_s4] sm:$0x7] }
  0xa5   : > { %v391_v34 = vpop.permute.xlu1 %390  ;;  %v389_v35 = vpop.permute.xlu0 %388 }
  0xa6   : > { %v394_v39 = vsel %vm392_vm6, %v387_v28, %v389_v35  ;;  %v395_v62 = vsel %vm392_vm6, %v389_v35, %v391_v34 }
  0xa7   : > { %537 = vrot.lane.b32.xlu1 %v483_v36, %s1018_s13 }
  0xa9   : > { %v401_v37 = vpop.permute.xlu1 %400  ;;  %v399_v38 = vpop.permute.xlu0 %398 }
  0xaa   : > { %v406_v40 = vsel %vm404_vm7, %v399_v38, %v401_v37 }
  0xab   : > { %v471_v41 = vsel %vm453_vm1, %v394_v39, %v406_v40 }
  0xac   : > { %529 = vrot.lane.b32.xlu1 %v471_v41, %s1018_s13 }
  0xad   : > { %v403_v42 = vpop.permute.xlu0 %402  ;;  %v385_v43 = vpop.permute.xlu1 %384 }
  0xae   : > { %v477_v44 = vsel %vm453_vm1, %v391_v34, %v403_v42  ;;  %v393_v48 = vsel %vm392_vm6, %v385_v43, %v387_v28  ;;  %v407_v59 = vsel %vm404_vm7, %v401_v37, %v403_v42 }
  0xaf   : > { %533 = vrot.lane.b32.xlu0 %v477_v44, %s1018_s13  ;;  %v474_v1 = vsel %vm453_vm1, %v395_v62, %v407_v59  ;;  %v502_v44 = vld [vmem:[%s1232_s1] sm:$0xf] }
  0xb1   : > { %v397_v47 = vpop.permute.xlu0 %396  ;;  %v375_v51 = vpop.permute.xlu1 %374 }
  0xb2   : > { %v405_v49 = vsel %vm404_vm7, %v397_v47, %v399_v38  ;;  %v709_v47 = vlaneseq }
  0xb3   : > { %547 = vrot.lane.b32.xlu0 %v498_v50, %s1018_s13  ;;  %v468_v53 = vsel %vm453_vm1, %v393_v48, %v405_v49  ;;  %v699_v49 = vld [vmem:[%s349_s29 + $0x4] sm:$0xff] }
  0xb4   : > { %527 = vrot.lane.b32.xlu1 %v468_v53, %s1018_s13 }
  0xb5   : > { %v377_v55 = vpop.permute.xlu0 %376  ;;  %v379_v61 = vpop.permute.xlu1 %378 }
  0xb6   : > { %v382_v56 = vsel %vm380_vm8, %v375_v51, %v377_v55  ;;  %v383_v7 = vsel %vm380_vm8, %v377_v55, %v379_v61  ;;  %v465_v10 = vsel %vm453_vm1, %v1080_v2, %v379_v61  ;;  %v701_v55 = vunpack.c.l.bf16 %v699_v49 }
  0xb7   : > { %539 = vrot.lane.b32.xlu0 %v486_v57, %s1018_s13  ;;  %v459_v60 = vsel %vm453_vm1, %v1082_v3, %v382_v56  ;;  %v462_v9 = vsel %vm453_vm1, %v1086_v4, %v383_v7  ;;  %v700_v57 = vld [vmem:[%s349_s29 + $0xc] sm:$0xf]  ;;  %v702_v61 = vunpack.c.h.bf16 %v699_v49 }
  0xb8   : > { %521 = vrot.lane.b32.xlu1 %v459_v60, %s1018_s13  ;;  %v703_v7 = vunpack.c.l.bf16 %v700_v57 }
  0xb9   : > { %v373_v63 = vpop.permute.xlu0 %372 }
  0xba   : > { %v381_v0 = vsel %vm380_vm8, %v373_v63, %v375_v51 }
  0xbb   : > { %531 = vrot.lane.b32.xlu0 %v474_v1, %s1018_s13  ;;  %v456_v3 = vsel %vm453_vm1, %v1106_v5, %v381_v0  ;;  %v690_v5 = vld [vmem:[%s1234_s3] sm:$0xff] }
  0xbc   : > { %519 = vrot.lane.b32.xlu1 %v456_v3, %s1018_s13 }
  0xbf   : > { %523 = vrot.lane.b32.xlu0 %v462_v9, %s1018_s13 }
  0xc0   : > { %684 = vperm.xlu1 %979, %v681_v8  }
  0xc3   : > { %525 = vrot.lane.b32.xlu0 %v465_v10, %s1018_s13 }
  0xc7   : > { %693 = vperm.xlu0 %980, %v690_v5  }
  0xf8   : > { %v552_v11 = vpop.permute.xlu1 %551  ;;  %v558_v12 = vpop.permute.xlu0 %557 }
  0xfd   : > { %v554_v13 = vpop.permute.xlu0 %553  ;;  %v556_v14 = vpop.permute.xlu1 %555 }
  0xfe   : > { %v573_v4 = vsel %vm559_vm13, %v554_v13, %v556_v14  ;;  %v572_v15 = vsel %vm559_vm13, %v552_v11, %v554_v13  ;;  %v574_v16 = vsel %vm559_vm13, %v556_v14, %v558_v12 }
  0xff   : > { %913 = vmatprep.subr.msk.bf16.mxu0 %vm453_vm1, %v573_v4  ;;  %v592_v2 = vsel %vm453_vm1, %v572_v15, 0  ;;  %v598_v17 = vsel %vm453_vm1, %v574_v16, 0 }
 0x100   : > { %607 = vmatpush1.bf16.msra.mxu0 %v592_v2  ;;  %929 = vmatpush3.bf16.msra.mxu1 %v598_v17 }
 0x101   : > { %930 = vmatprep.subr.bf16.mxu1 %v1017_v6 }
 0x105   : > { %v544_v18 = vpop.permute.xlu1 %543 }
 0x109   : > { %v550_v21 = vpop.permute.xlu0 %549 }
 0x111   : > { %v536_v19 = vpop.permute.xlu1 %535 }
 0x115   : > { %v546_v20 = vpop.permute.xlu1 %545  ;;  %v542_v23 = vpop.permute.xlu0 %541 }
 0x116   : > { %v569_v30 = vsel %vm559_vm13, %v544_v18, %v546_v20 }
 0x119   : > { %v538_v22 = vpop.permute.xlu1 %537 }
 0x11a   : > { %v566_v35 = vsel %vm559_vm13, %v536_v19, %v538_v22 }
 0x11e   : > { %v530_v25 = vpop.permute.xlu1 %529 }
 0x121   : > { %v534_v24 = vpop.permute.xlu0 %533 }
 0x125   : > { %v548_v26 = vpop.permute.xlu0 %547 }
 0x126   : > { %v528_v27 = vpop.permute.xlu1 %527  ;;  %v570_v28 = vsel %vm559_vm13, %v546_v20, %v548_v26  ;;  %v571_v29 = vsel %vm559_vm13, %v548_v26, %v550_v21 }
 0x127   : > { %608 = vmatprep.subr.bf16.mxu0 %v570_v28  ;;  %931 = vmatpush3.bf16.msra.mxu1 %v571_v29  ;;  %v563_v39 = vsel %vm559_vm13, %v528_v27, %v530_v25 }
 0x128   : > { %609 = vmatpush1.bf16.msra.mxu0 %v569_v30  ;;  %932 = vmatprep.subr.bf16.mxu1 %v1017_v6 }
 0x129   : > { %v540_v31 = vpop.permute.xlu0 %539 }
 0x12a   : > { %v522_v32 = vpop.permute.xlu1 %521  ;;  %v567_v33 = vsel %vm559_vm13, %v538_v22, %v540_v31  ;;  %v568_v34 = vsel %vm559_vm13, %v540_v31, %v542_v23 }
 0x12b   : > { %610 = vmatprep.subr.bf16.mxu0 %v567_v33  ;;  %933 = vmatpush3.bf16.msra.mxu1 %v568_v34 }
 0x12c   : > { %611 = vmatpush1.bf16.msra.mxu0 %v566_v35  ;;  %934 = vmatprep.subr.bf16.mxu1 %v1017_v6 }
 0x12d   : > { %v532_v36 = vpop.permute.xlu0 %531 }
 0x12e   : > { %v564_v37 = vsel %vm559_vm13, %v530_v25, %v532_v36  ;;  %v565_v38 = vsel %vm559_vm13, %v532_v36, %v534_v24  ;;  %v520_v40 = vpop.permute.xlu1 %519 }
 0x12f   : > { %612 = vmatprep.subr.bf16.mxu0 %v564_v37  ;;  %935 = vmatpush3.bf16.msra.mxu1 %v565_v38  ;;  %v560_v43 = vsel %vm559_vm13, %v520_v40, %v522_v32 }
 0x130   : > { %613 = vmatpush1.bf16.msra.mxu0 %v563_v39  ;;  %936 = vmatprep.subr.bf16.mxu1 %v1017_v6  ;;  %v710_v6 = vshrl.u32 %v709_v47, 7 }
 0x131   : > { %v524_v41 = vpop.permute.xlu0 %523 }
 0x132   : > { %v561_v42 = vsel %vm559_vm13, %v522_v32, %v524_v41  ;;  %v711_v50 = vsub.s32 0, %v710_v6  ;;  %v715_v56 = vsub.s32 1, %v710_v6  ;;  %v719_v59 = vsub.s32 2, %v710_v6 }
 0x133   : > { %614 = vmatprep.subr.bf16.mxu0 %v561_v42 }
 0x134   : > { %615 = vmatpush1.bf16.msra.mxu0 %v560_v43  ;;  %v712_v62 = vrot.slane %v707_v52, %v711_v50  ;;  %v716_v8 = vrot.slane %v707_v52, %v715_v56  ;;  %v720_v12 = vrot.slane %v707_v52, %v719_v59 }
 0x135   : > { %v526_v45 = vpop.permute.xlu0 %525 }
 0x136   : > { %v562_v46 = vsel %vm559_vm13, %v524_v41, %v526_v45 }
 0x137   : > { %914 = vmatmul.mubr.msk.bf16.vlgmr.msra.gmra.mxu0 %vm587_vm14, %v502_v44  ;;  %937 = vmatpush3.bf16.msra.mxu1 %v562_v46 }
 0x13a   : > { %939 = vmatmul.mubr.msk.bf16.vlgmr.msra.gmra.mxu1 %vm587_vm14, %v502_v44 }
 0x13b   : > { %v685_v48 = vpop.permute.xlu1 %684 }
 0x142   : > { %v694_v53 = vpop.permute.xlu0 %693 }
 0x1f7   : > { %v634_v51 = vpop.f32.mrf.mxu0 }
 0x1f8   : > { %v687_v54 = vmul.f32 %v685_v48, %v634_v51 }
 0x1f9   : > { %v636_v58 = vpop.f32.mrf.mxu0 }
 0x1fa   : > { %v688_v60 = vmul.f32 %v685_v48, %v636_v58  ;;  %v696_v63 = vadd.f32 %v694_v53, %v687_v54  ;;  %v675_v0 = vpop.f32.mrf.mxu1 }
 0x1fb   : > { %v689_v1 = vmul.f32 %v685_v48, %v675_v0  ;;  %v638_v3 = vpop.f32.mrf.mxu0 }
 0x1fc   : > { %v697_v9 = vadd.f32 %v694_v53, %v688_v60  ;;  %v704_v10 = vadd.f32 %v701_v55, %v696_v63  ;;  %v940_v5 = vpop.f32.mrf.mxu1 }
 0x1fd   : > { %v698_v11 = vadd.f32 %v694_v53, %v689_v1  ;;  %v639_v13 = vpop.f32.mrf.mxu0 }
 0x1fe   : > { %v705_v14 = vadd.f32 %v702_v61, %v697_v9  ;;  %v724_v4 = vmul.f32 %v712_v62, %v704_v10  ;;  %v678_v15 = vpop.f32.mrf.mxu1 }
 0x1ff   : > { %v706_v16 = vadd.f32 %v703_v7, %v698_v11 }
 0x200   : > { %v725_v2 = vmul.f32 %v716_v8, %v705_v14  ;;  %v941_v17 = vpop.f32.mrf.mxu1 }
 0x201   : > { %v726_v18 = vmul.f32 %v720_v12, %v706_v16 }
 0x202   : > { %v920_v19 = vpack.c.bf16 %v725_v2, %v724_v4 }
 0x203   : > { %v921_v20 = vpack.c.bf16 %v726_v18, %v726_v18 }
 0x204   : > { %745 = vst [vmem:[%s1156_s16 + $0x4] sm:$0xff] %v920_v19 }
 0x205   : > { %747 = vst.msk [vmem:[%s1156_s16 + $0xc] sm:$0xf] %vm746_vm15, %v921_v20 }
 0x206 PF: > { %s16_s23 = sadd.s32 1, %s1007_s23   ;;  %s1238_s21 = smov %s1003_s22 }
 0x207   : > { %p13_p5 = scmp.ge.s32.totalorder %s16_s23, 4   ;;  %s1239_s22 = smov %s1241_s24 }
 0x209   :  { %15 = sbr.rel (!%p13_p5) target bundleno = 2 (0x2), region = 86 }

// kernel: srresnet_forward.8
= control target key start
LH: loop header
LB: loop body
LE: loop exit
PB: predicated region body
PF: predicated region fallthrough
CT: control target
= control target key end

     0   :  { %s1288_s11 = smov 0   ;;  %s1659_s0 = inlined_call_operand.vmem [shape: bf16[2,8,580], index: 0, kind: input, shape index: {}]   ;;  %s1660_s1 = inlined_call_operand.vmem [shape: bf16[8,72], index: 1, kind: input, shape index: {}]   ;;  %s1661_s2 = inlined_call_operand.vmem [shape: f32[8,1], index: 2, kind: input, shape index: {}]   ;;  %s1662_s3 = inlined_call_operand.vmem [shape: f32[8,1], index: 3, kind: input, shape index: {}]   ;;  %s1663_s4 = inlined_call_operand.<no memory space> [shape: f32[1,1], index: 4, kind: input, shape index: {}]   ;;  %s1664_s5 = inlined_call_operand.vmem [shape: bf16[8,72], index: 5, kind: input, shape index: {}]   ;;  %s1665_s6 = inlined_call_operand.vmem [shape: f32[8,1], index: 6, kind: input, shape index: {}]   ;;  %s1666_s7 = inlined_call_operand.vmem [shape: f32[8,1], index: 7, kind: input, shape index: {}]   ;;  %s1667_s8 = inlined_call_operand.vmem [shape: f32[1,324], index: 8, kind: input, shape index: {}]   ;;  %s1668_s9 = inlined_call_operand.vmem [shape: bf16[2,8,580], index: 9, kind: output, shape index: {}]  }
   0x1   :  { %14 = sst [smem:[#allocation2]] %s1663_s4 }
   0x2 LB: > { %s1125_s12 = sadd.s32 4294967295, %s1221_s11   ;;  %p1129_p0 = scmp.ge.s32.totalorder %s1221_s11, 1  ;;  %s1221_s11 = sphi %s1288_s11, %s20_s11  }
   0x3   : > { %p288_p1 = scmp.lt.s32.totalorder %s1221_s11, 3 }
   0x5   : > { %p289_p2 = pnand %p1129_p0, %p288_p1 }
   0x6   : > { %p324_p3 = scmp.lt.s32.totalorder (!%p289_p2), %s1125_s12, 1  ;;  %s1223_s16 = smov (!%p289_p2), 90  }
   0x7   : > { %292 = sbr.rel (%p289_p2) target bundleno = 1016 (0x3f8), region = 56  ;;  %s1224_s17 = smov (!%p289_p2), 92  }
   0x8   : > { %s1225_s18 = smov (!%p289_p2), 91   ;;  %s1226_s19 = smov (!%p289_p2), 109  }
   0x9   : > { %s1227_s20 = smov (!%p289_p2), 108   ;;  %s1228_s21 = smov (!%p289_p2), 126  }
   0xa   : > { %s1229_s22 = smov (!%p289_p2), 110   ;;  %s1230_s23 = smov (!%p289_p2), 127  }
   0xb   : > { %s1232_s24 = smov (!%p289_p2), 19   ;;  %s675_s10 = sld [smem:[#allocation2]] (!%p289_p2) }
   0xc   : > { %s1670_s12 = smov (!%p324_p3, %s1125_s12), 1  ;;  %v1231_v6 = vmov 0.0   ;;  %vm426_vm0 = vcmask 736256   ;;  %vm429_vm1 = vcmask 1043456   ;;  %vm417_vm2 = vcmask 744448  }
   0xd   : > { %s1188_s4 = smul.u32 20, %s1670_s12  ;;  %1160 = vmatprep.subr.bf16.mxu1 %v1231_v6  ;;  %vm408_vm3 = vcmask 752640   ;;  %vm399_vm4 = vcmask 883712   ;;  %vm390_vm5 = vcmask 891904   ;;  %vm368_vm6 = vcmask 1031168  }
   0xe   : > { %vm380_vm7 = vcmask 900096   ;;  %vm356_vm8 = vcmask 1039360   ;;  %v1233_v58 = vmov 0   ;;  %vm1234_vm9 = vmmov 0  }
   0xf   : > { %s328_s15 = scalar_lea.vmem %s1659_s0, %s1188_s4  ;;  %608 = vmatprep.mubr.bf16.mxu0 %v1233_v58  ;;  %1209 = vset.pattern.permute.xlu1 %v1233_v58  ;;  %vm535_vm10 = vcmask 154624   ;;  %vm563_vm11 = vcmask 588800   ;;  %vm708_vm15 = vcmask 556032  }
  0x10   : > { %v1304_v0 = vld [vmem:[%s328_s15 + $0x8] sm:$0xff]  ;;  %v1306_v1 = vld [vmem:[%s328_s15] sm:$0xff]  ;;  %1170 = vmatprep.mubr.msk.bf16.mxu1 %vm1234_vm9, %v1231_v6  ;;  %1210 = vset.pattern.permute.xlu0 %v1233_v58 }
  0x11   : > { %v1310_v2 = vcombine.high %v1304_v0, %v1304_v0  ;;  %v1314_v3 = vcombine.high %v1306_v1, %v1306_v1  ;;  %v1322_v4 = vcombine.low %v1304_v0, %v1304_v0  ;;  %v1362_v5 = vcombine.low %v1306_v1, %v1306_v1 }
  0x13   : > { %424 = vrot.lane.b32.xlu1 %v1310_v2, %s1223_s16  ;;  %420 = vrot.lane.b32.xlu0 %v1314_v3, %s1223_s16 }
  0x17   : > { %402 = vrot.lane.b32.xlu1 %v1314_v3, %s1224_s17  ;;  %422 = vrot.lane.b32.xlu0 %v1322_v4, %s1223_s16 }
  0x1b   : > { %406 = vrot.lane.b32.xlu1 %v1310_v2, %s1224_s17  ;;  %404 = vrot.lane.b32.xlu0 %v1322_v4, %s1224_s17 }
  0x1f   : > { %413 = vrot.lane.b32.xlu1 %v1322_v4, %s1225_s18  ;;  %411 = vrot.lane.b32.xlu0 %v1314_v3, %s1225_s18 }
  0x23   : > { %384 = vrot.lane.b32.xlu1 %v1314_v3, %s1226_s19  ;;  %415 = vrot.lane.b32.xlu0 %v1310_v2, %s1225_s18 }
  0x27   : > { %388 = vrot.lane.b32.xlu1 %v1310_v2, %s1226_s19  ;;  %386 = vrot.lane.b32.xlu0 %v1322_v4, %s1226_s19 }
  0x2b   : > { %395 = vrot.lane.b32.xlu1 %v1322_v4, %s1227_s20  ;;  %393 = vrot.lane.b32.xlu0 %v1314_v3, %s1227_s20 }
  0x2f   : > { %362 = vrot.lane.b32.xlu1 %v1314_v3, %s1228_s21  ;;  %397 = vrot.lane.b32.xlu0 %v1310_v2, %s1227_s20 }
  0x33   : > { %366 = vrot.lane.b32.xlu1 %v1310_v2, %s1228_s21  ;;  %364 = vrot.lane.b32.xlu0 %v1322_v4, %s1228_s21 }
  0x37   : > { %376 = vrot.lane.b32.xlu1 %v1322_v4, %s1229_s22  ;;  %374 = vrot.lane.b32.xlu0 %v1314_v3, %s1229_s22 }
  0x3b   : > { %378 = vrot.lane.b32.xlu0 %v1310_v2, %s1229_s22  ;;  %360 = vrot.lane.b32.xlu1 %v1362_v5, %s1228_s21 }
  0x3f   : > { %372 = vrot.lane.b32.xlu0 %v1362_v5, %s1229_s22  ;;  %350 = vrot.lane.b32.xlu1 %v1314_v3, %s1230_s23 }
  0x43   : > { %352 = vrot.lane.b32.xlu0 %v1322_v4, %s1230_s23  ;;  %354 = vrot.lane.b32.xlu1 %v1310_v2, %s1230_s23 }
  0x47   : > { %348 = vrot.lane.b32.xlu0 %v1362_v5, %s1230_s23 }
  0x85   : > { %v425_v7 = vpop.permute.xlu1 %424  ;;  %v421_v8 = vpop.permute.xlu0 %420 }
  0x86   : > { %527 = vrot.lane.b32.xlu1 %v421_v8, %s1232_s24  ;;  %533 = vrot.lane.b32.xlu0 %v425_v7, %s1232_s24 }
  0x89   : > { %v403_v9 = vpop.permute.xlu1 %402  ;;  %v423_v10 = vpop.permute.xlu0 %422 }
  0x8a   : > { %v427_v11 = vsel %vm426_vm0, %v421_v8, %v423_v10  ;;  %v428_v12 = vsel %vm426_vm0, %v423_v10, %v425_v7  ;;  %v657_v10 = vld [vmem:[%s1661_s2] sm:$0xff] }
  0x8b   : > { %529 = vrot.lane.b32.xlu0 %v427_v11, %s1232_s24  ;;  %531 = vrot.lane.b32.xlu1 %v428_v12, %s1232_s24 }
  0x8d   : > { %v407_v13 = vpop.permute.xlu1 %406  ;;  %v405_v14 = vpop.permute.xlu0 %404 }
  0x8e   : > { %v409_v27 = vsel %vm408_vm3, %v403_v9, %v405_v14  ;;  %v410_v46 = vsel %vm408_vm3, %v405_v14, %v407_v13 }
  0x91   : > { %v414_v15 = vpop.permute.xlu1 %413  ;;  %v412_v16 = vpop.permute.xlu0 %411 }
  0x92   : > { %v468_v17 = vsel %vm429_vm1, %v403_v9, %v412_v16  ;;  %v418_v26 = vsel %vm417_vm2, %v412_v16, %v414_v15 }
  0x93   : > { %519 = vrot.lane.b32.xlu1 %v468_v17, %s1232_s24  ;;  %v471_v31 = vsel %vm429_vm1, %v409_v27, %v418_v26 }
  0x95   : > { %v385_v18 = vpop.permute.xlu1 %384  ;;  %v416_v19 = vpop.permute.xlu0 %415 }
  0x96   : > { %v477_v20 = vsel %vm429_vm1, %v407_v13, %v416_v19  ;;  %v419_v45 = vsel %vm417_vm2, %v414_v15, %v416_v19 }
  0x97   : > { %525 = vrot.lane.b32.xlu0 %v477_v20, %s1232_s24  ;;  %v474_v50 = vsel %vm429_vm1, %v410_v46, %v419_v45  ;;  %v478_v46 = vld [vmem:[%s1660_s1] sm:$0xf] }
  0x99   : > { %v389_v21 = vpop.permute.xlu1 %388  ;;  %v387_v22 = vpop.permute.xlu0 %386 }
  0x9a   : > { %v391_v33 = vsel %vm390_vm5, %v385_v18, %v387_v22  ;;  %v392_v54 = vsel %vm390_vm5, %v387_v22, %v389_v21 }
  0x9d   : > { %v396_v23 = vpop.permute.xlu1 %395  ;;  %v394_v24 = vpop.permute.xlu0 %393 }
  0x9e   : > { %v456_v25 = vsel %vm429_vm1, %v385_v18, %v394_v24  ;;  %v400_v32 = vsel %vm399_vm4, %v394_v24, %v396_v23 }
  0x9f   : > { %511 = vrot.lane.b32.xlu1 %v456_v25, %s1232_s24  ;;  %v459_v36 = vsel %vm429_vm1, %v391_v33, %v400_v32 }
  0xa1   : > { %v363_v28 = vpop.permute.xlu1 %362  ;;  %v398_v29 = vpop.permute.xlu0 %397 }
  0xa2   : > { %v465_v30 = vsel %vm429_vm1, %v389_v21, %v398_v29  ;;  %v401_v52 = vsel %vm399_vm4, %v396_v23, %v398_v29 }
  0xa3   : > { %517 = vrot.lane.b32.xlu0 %v465_v30, %s1232_s24  ;;  %521 = vrot.lane.b32.xlu1 %v471_v31, %s1232_s24  ;;  %v462_v57 = vsel %vm429_vm1, %v392_v54, %v401_v52 }
  0xa5   : > { %v367_v34 = vpop.permute.xlu1 %366  ;;  %v365_v35 = vpop.permute.xlu0 %364 }
  0xa6   : > { %v370_v39 = vsel %vm368_vm6, %v363_v28, %v365_v35  ;;  %v371_v62 = vsel %vm368_vm6, %v365_v35, %v367_v34 }
  0xa7   : > { %513 = vrot.lane.b32.xlu1 %v459_v36, %s1232_s24 }
  0xa9   : > { %v377_v37 = vpop.permute.xlu1 %376  ;;  %v375_v38 = vpop.permute.xlu0 %374 }
  0xaa   : > { %v382_v40 = vsel %vm380_vm7, %v375_v38, %v377_v37 }
  0xab   : > { %v447_v41 = vsel %vm429_vm1, %v370_v39, %v382_v40 }
  0xac   : > { %505 = vrot.lane.b32.xlu1 %v447_v41, %s1232_s24 }
  0xad   : > { %v379_v42 = vpop.permute.xlu0 %378  ;;  %v361_v43 = vpop.permute.xlu1 %360 }
  0xae   : > { %v453_v44 = vsel %vm429_vm1, %v367_v34, %v379_v42  ;;  %v369_v48 = vsel %vm368_vm6, %v361_v43, %v363_v28  ;;  %v383_v59 = vsel %vm380_vm7, %v377_v37, %v379_v42 }
  0xaf   : > { %509 = vrot.lane.b32.xlu0 %v453_v44, %s1232_s24  ;;  %v450_v8 = vsel %vm429_vm1, %v371_v62, %v383_v59  ;;  %v679_v59 = vstv %s675_s10 }
  0xb1   : > { %v373_v47 = vpop.permute.xlu0 %372  ;;  %v351_v51 = vpop.permute.xlu1 %350 }
  0xb2   : > { %v381_v49 = vsel %vm380_vm7, %v373_v47, %v375_v38 }
  0xb3   : > { %523 = vrot.lane.b32.xlu0 %v474_v50, %s1232_s24  ;;  %v444_v53 = vsel %vm429_vm1, %v369_v48, %v381_v49  ;;  %v1483_v49 = vrot.slane %v1233_v58, 4  ;;  %v687_v50 = vlaneseq }
  0xb4   : > { %503 = vrot.lane.b32.xlu1 %v444_v53, %s1232_s24 }
  0xb5   : > { %v353_v55 = vpop.permute.xlu0 %352  ;;  %v355_v61 = vpop.permute.xlu1 %354 }
  0xb6   : > { %v358_v56 = vsel %vm356_vm8, %v351_v51, %v353_v55  ;;  %v359_v9 = vsel %vm356_vm8, %v353_v55, %v355_v61  ;;  %v441_v12 = vsel %vm429_vm1, %v1310_v2, %v355_v61 }
  0xb7   : > { %515 = vrot.lane.b32.xlu0 %v462_v57, %s1232_s24  ;;  %v435_v60 = vsel %vm429_vm1, %v1314_v3, %v358_v56  ;;  %v438_v11 = vsel %vm429_vm1, %v1322_v4, %v359_v9  ;;  %v337_v57 = vld [vmem:[%s1667_s8] sm:$0x7] }
  0xb8   : > { %497 = vrot.lane.b32.xlu1 %v435_v60, %s1232_s24 }
  0xb9   : > { %v349_v63 = vpop.permute.xlu0 %348 }
  0xba   : > { %v357_v7 = vsel %vm356_vm8, %v349_v63, %v351_v51  ;;  %v688_v51 = vshrl.u32 %v687_v50, 7 }
  0xbb   : > { %507 = vrot.lane.b32.xlu0 %v450_v8, %s1232_s24  ;;  %v432_v3 = vsel %vm429_vm1, %v1362_v5, %v357_v7  ;;  %v666_v5 = vld [vmem:[%s1662_s3] sm:$0xff] }
  0xbc   : > { %495 = vrot.lane.b32.xlu1 %v432_v3, %s1232_s24  ;;  %v689_v54 = vsub.s32 0, %v688_v51  ;;  %v697_v7 = vsub.s32 2, %v688_v51 }
  0xbe   : > { %v1490_v8 = vrot.slane %v337_v57, %v689_v54 }
  0xbf   : > { %499 = vrot.lane.b32.xlu0 %v438_v11, %s1232_s24 }
  0xc0   : > { %660 = vperm.xlu1 %1209, %v657_v10  }
  0xc3   : > { %501 = vrot.lane.b32.xlu0 %v441_v12, %s1232_s24 }
  0xc4   : > { %731 = vrot.lane.b32.xlu1 %v1233_v58, %s1228_s21 }
  0xc7   : > { %669 = vperm.xlu0 %1210, %v666_v5   ;;  %v693_v5 = vsub.s32 1, %v688_v51 }
  0xcb   : > { %742 = vrot.lane.b32.xlu0 %v1483_v49, %s1229_s22 }
  0xf8   : > { %v528_v13 = vpop.permute.xlu1 %527  ;;  %v534_v14 = vpop.permute.xlu0 %533 }
  0xfd   : > { %v530_v4 = vpop.permute.xlu0 %529  ;;  %v532_v15 = vpop.permute.xlu1 %531 }
  0xfe   : > { %v549_v16 = vsel %vm535_vm10, %v530_v4, %v532_v15  ;;  %v548_v17 = vsel %vm535_vm10, %v528_v13, %v530_v4  ;;  %v550_v2 = vsel %vm535_vm10, %v532_v15, %v534_v14 }
  0xff   : > { %1136 = vmatprep.subr.msk.bf16.mxu0 %vm429_vm1, %v549_v16  ;;  %v568_v18 = vsel %vm429_vm1, %v548_v17, 0  ;;  %v574_v19 = vsel %vm429_vm1, %v550_v2, 0  ;;  %v1492_v16 = vrot.slane %v337_v57, %v697_v7 }
 0x100   : > { %583 = vmatpush1.bf16.msra.mxu0 %v568_v18  ;;  %1161 = vmatpush3.bf16.msra.mxu1 %v574_v19 }
 0x101   : > { %1162 = vmatprep.subr.bf16.mxu1 %v1231_v6 }
 0x105   : > { %v520_v20 = vpop.permute.xlu1 %519 }
 0x109   : > { %v526_v23 = vpop.permute.xlu0 %525 }
 0x111   : > { %v512_v21 = vpop.permute.xlu1 %511 }
 0x115   : > { %v522_v22 = vpop.permute.xlu1 %521  ;;  %v518_v25 = vpop.permute.xlu0 %517 }
 0x116   : > { %v545_v32 = vsel %vm535_vm10, %v520_v20, %v522_v22 }
 0x119   : > { %v514_v24 = vpop.permute.xlu1 %513 }
 0x11a   : > { %v542_v37 = vsel %vm535_vm10, %v512_v21, %v514_v24  ;;  %v1497_v21 = vrot.slane %v337_v57, %v693_v5 }
 0x11e   : > { %v506_v27 = vpop.permute.xlu1 %505 }
 0x121   : > { %v510_v26 = vpop.permute.xlu0 %509 }
 0x125   : > { %v524_v28 = vpop.permute.xlu0 %523 }
 0x126   : > { %v504_v29 = vpop.permute.xlu1 %503  ;;  %v546_v30 = vsel %vm535_vm10, %v522_v22, %v524_v28  ;;  %v547_v31 = vsel %vm535_vm10, %v524_v28, %v526_v23 }
 0x127   : > { %584 = vmatprep.subr.bf16.mxu0 %v546_v30  ;;  %1163 = vmatpush3.bf16.msra.mxu1 %v547_v31  ;;  %v539_v41 = vsel %vm535_vm10, %v504_v29, %v506_v27 }
 0x128   : > { %585 = vmatpush1.bf16.msra.mxu0 %v545_v32  ;;  %1164 = vmatprep.subr.bf16.mxu1 %v1231_v6 }
 0x129   : > { %v516_v33 = vpop.permute.xlu0 %515 }
 0x12a   : > { %v498_v34 = vpop.permute.xlu1 %497  ;;  %v543_v35 = vsel %vm535_vm10, %v514_v24, %v516_v33  ;;  %v544_v36 = vsel %vm535_vm10, %v516_v33, %v518_v25 }
 0x12b   : > { %586 = vmatprep.subr.bf16.mxu0 %v543_v35  ;;  %1165 = vmatpush3.bf16.msra.mxu1 %v544_v36 }
 0x12c   : > { %587 = vmatpush1.bf16.msra.mxu0 %v542_v37  ;;  %1166 = vmatprep.subr.bf16.mxu1 %v1231_v6 }
 0x12d   : > { %v508_v38 = vpop.permute.xlu0 %507 }
 0x12e   : > { %v540_v39 = vsel %vm535_vm10, %v506_v27, %v508_v38  ;;  %v541_v40 = vsel %vm535_vm10, %v508_v38, %v510_v26  ;;  %v496_v42 = vpop.permute.xlu1 %495 }
 0x12f   : > { %588 = vmatprep.subr.bf16.mxu0 %v540_v39  ;;  %1167 = vmatpush3.bf16.msra.mxu1 %v541_v40  ;;  %v536_v45 = vsel %vm535_vm10, %v496_v42, %v498_v34 }
 0x130   : > { %589 = vmatpush1.bf16.msra.mxu0 %v539_v41  ;;  %1168 = vmatprep.subr.bf16.mxu1 %v1231_v6 }
 0x131   : > { %v500_v43 = vpop.permute.xlu0 %499 }
 0x132   : > { %v537_v44 = vsel %vm535_vm10, %v498_v34, %v500_v43 }
 0x133   : > { %590 = vmatprep.subr.bf16.mxu0 %v537_v44 }
 0x134   : > { %591 = vmatpush1.bf16.msra.mxu0 %v536_v45 }
 0x135   : > { %v502_v47 = vpop.permute.xlu0 %501 }
 0x136   : > { %v538_v48 = vsel %vm535_vm10, %v500_v43, %v502_v47 }
 0x137   : > { %1137 = vmatmul.mubr.msk.bf16.vlgmr.msra.gmra.mxu0 %vm563_vm11, %v478_v46  ;;  %1169 = vmatpush3.bf16.msra.mxu1 %v538_v48 }
 0x138   : > { %1174 = vmatprep.subr.bf16.mxu1 %v1231_v6  ;;  %967 = vmatprep.mubr.bf16.mxu0 %v1233_v58 }
 0x13a   : > { %1171 = vmatmul.mubr.msk.bf16.vlgmr.msra.gmra.mxu1 %vm563_vm11, %v478_v46 }
 0x13b   : > { %1184 = vmatprep.mubr.msk.bf16.mxu1 %vm1234_vm9, %v1231_v6  ;;  %v661_v52 = vpop.permute.xlu1 %660 }
 0x13f   : > { %v732_v32 = vpop.permute.xlu1 %731 }
 0x142   : > { %v670_v55 = vpop.permute.xlu0 %669 }
 0x146   : > { %v743_v33 = vpop.permute.xlu0 %742 }
 0x1f7   : > { %v610_v53 = vpop.f32.mrf.mxu0 }
 0x1f8   : > { %v663_v56 = vmul.f32 %v661_v52, %v610_v53 }
 0x1f9   : > { %v612_v60 = vpop.f32.mrf.mxu0 }
 0x1fa   : > { %v672_v61 = vadd.f32 %v670_v55, %v663_v56  ;;  %v664_v62 = vmul.f32 %v661_v52, %v612_v60  ;;  %v651_v63 = vpop.f32.mrf.mxu1 }
 0x1fb   : > { %v665_v9 = vmul.f32 %v661_v52, %v651_v63  ;;  %v614_v3 = vpop.f32.mrf.mxu0 }
 0x1fc   : > { %vm676_vm12 = vcmp.ge.f32.partialorder %v672_v61, 0.0  ;;  %v680_v10 = vmul.f32 %v679_v59, %v672_v61  ;;  %v673_v11 = vadd.f32 %v670_v55, %v664_v62  ;;  %v1172_v12 = vpop.f32.mrf.mxu1 }
 0x1fd   : > { %v674_v13 = vadd.f32 %v670_v55, %v665_v9  ;;  %v615_v14 = vpop.f32.mrf.mxu0 }
 0x1fe   : > { %v683_v4 = vsel %vm676_vm12, %v672_v61, %v680_v10  ;;  %v681_v15 = vmul.f32 %v679_v59, %v673_v11  ;;  %v654_v17 = vpop.f32.mrf.mxu1  ;;  %vm677_vm13 = vcmp.ge.f32.partialorder %v673_v11, 0.0 }
 0x1ff   : > { %v702_v2 = vmul.f32 %v1490_v8, %v683_v4  ;;  %vm678_vm14 = vcmp.ge.f32.partialorder %v674_v13, 0.0  ;;  %v682_v18 = vmul.f32 %v679_v59, %v674_v13 }
 0x200   : > { %v1173_v19 = vpop.f32.mrf.mxu1  ;;  %v684_v23 = vsel %vm677_vm13, %v673_v11, %v681_v15 }
 0x201   : > { %v1495_v20 = vpack.c.bf16 %v702_v2, %v702_v2  ;;  %v685_v22 = vsel %vm678_vm14, %v674_v13, %v682_v18  ;;  %v703_v26 = vmul.f32 %v1497_v21, %v684_v23 }
 0x202   : > { %v704_v24 = vmul.f32 %v1492_v16, %v685_v22 }
 0x203   : > { %785 = vrot.lane.b32.xlu1 %v1495_v20, %s1223_s16  ;;  %v1509_v28 = vpack.c.bf16 %v703_v26, %v703_v26  ;;  %v717_v29 = vrot.slane %v1495_v20, 4 }
 0x204   : > { %v707_v25 = vpack.c.bf16 %v704_v24, %v704_v24 }
 0x205   : > { %v718_v31 = vrot.slane %v1509_v28, 4 }
 0x206   : > { %v1503_v27 = vsel %vm708_vm15, %v707_v25, 0 }
 0x207   : > { %789 = vrot.lane.b32.xlu0 %v1503_v27, %s1223_s16  ;;  %769 = vrot.lane.b32.xlu1 %v1495_v20, %s1224_s17  ;;  %v719_v30 = vrot.slane %v1503_v27, 4 }
 0x20b   : > { %771 = vrot.lane.b32.xlu0 %v1509_v28, %s1224_s17  ;;  %753 = vrot.lane.b32.xlu1 %v1495_v20, %s1226_s19 }
 0x20f   : > { %733 = vrot.lane.b32.xlu1 %v1495_v20, %s1228_s21  ;;  %777 = vrot.lane.b32.xlu0 %v717_v29, %s1225_s18 }
 0x213   : > { %773 = vrot.lane.b32.xlu1 %v1503_v27, %s1224_s17  ;;  %755 = vrot.lane.b32.xlu0 %v1509_v28, %s1226_s19 }
 0x217   : > { %757 = vrot.lane.b32.xlu1 %v1503_v27, %s1226_s19  ;;  %761 = vrot.lane.b32.xlu0 %v717_v29, %s1227_s20 }
 0x21b   : > { %737 = vrot.lane.b32.xlu1 %v1503_v27, %s1228_s21  ;;  %735 = vrot.lane.b32.xlu0 %v1509_v28, %s1228_s21 }
 0x21f   : > { %787 = vrot.lane.b32.xlu1 %v1509_v28, %s1223_s16  ;;  %744 = vrot.lane.b32.xlu0 %v717_v29, %s1229_s22 }
 0x223   : > { %722 = vrot.lane.b32.xlu1 %v717_v29, %s1230_s23  ;;  %781 = vrot.lane.b32.xlu0 %v719_v30, %s1225_s18 }
 0x227   : > { %779 = vrot.lane.b32.xlu1 %v718_v31, %s1225_s18  ;;  %765 = vrot.lane.b32.xlu0 %v719_v30, %s1227_s20 }
 0x22b   : > { %763 = vrot.lane.b32.xlu1 %v718_v31, %s1227_s20  ;;  %748 = vrot.lane.b32.xlu0 %v719_v30, %s1229_s22 }
 0x22f   : > { %746 = vrot.lane.b32.xlu1 %v718_v31, %s1229_s22  ;;  %724 = vrot.lane.b32.xlu0 %v718_v31, %s1230_s23 }
 0x233   : > { %726 = vrot.lane.b32.xlu1 %v719_v30, %s1230_s23  ;;  %720 = vrot.lane.b32.xlu0 %v1483_v49, %s1230_s23  ;;  %s1642_s23 = scalar_lea.vmem %s1668_s9, %s1188_s4 }
 0x234   : > { %1049 = vst [vmem:[%s1642_s23] sm:$0xf] %v1233_v58 }
 0x275   : > { %v786_v34 = vpop.permute.xlu1 %785 }
 0x276   : > { %888 = vrot.lane.b32.xlu1 %v786_v34, %s1232_s24 }
 0x279   : > { %v790_v35 = vpop.permute.xlu0 %789  ;;  %v770_v36 = vpop.permute.xlu1 %769 }
 0x27a   : > { %894 = vrot.lane.b32.xlu0 %v790_v35, %s1232_s24 }
 0x27d   : > { %v772_v37 = vpop.permute.xlu0 %771  ;;  %v754_v38 = vpop.permute.xlu1 %753 }
 0x27e   : > { %v775_v11 = vsel %vm408_vm3, %v770_v36, %v772_v37 }
 0x281   : > { %v778_v39 = vpop.permute.xlu0 %777  ;;  %v734_v40 = vpop.permute.xlu1 %733 }
 0x282   : > { %v829_v53 = vsel %vm429_vm1, %v770_v36, %v778_v39  ;;  %v739_v61 = vsel %vm368_vm6, %v732_v32, %v734_v40 }
 0x285   : > { %v756_v41 = vpop.permute.xlu0 %755  ;;  %v774_v42 = vpop.permute.xlu1 %773 }
 0x286   : > { %v776_v12 = vsel %vm408_vm3, %v772_v37, %v774_v42  ;;  %v759_v17 = vsel %vm390_vm5, %v754_v38, %v756_v41 }
 0x289   : > { %v762_v43 = vpop.permute.xlu0 %761  ;;  %v758_v44 = vpop.permute.xlu1 %757 }
 0x28a   : > { %v817_v57 = vsel %vm429_vm1, %v754_v38, %v762_v43  ;;  %v760_v2 = vsel %vm390_vm5, %v756_v41, %v758_v44 }
 0x28d   : > { %v736_v45 = vpop.permute.xlu0 %735  ;;  %v738_v46 = vpop.permute.xlu1 %737 }
 0x28e   : > { %v740_v26 = vsel %vm368_vm6, %v734_v40, %v736_v45  ;;  %v741_v29 = vsel %vm368_vm6, %v736_v45, %v738_v46 }
 0x291   : > { %v745_v47 = vpop.permute.xlu0 %744  ;;  %v788_v48 = vpop.permute.xlu1 %787 }
 0x292   : > { %v792_v49 = vsel %vm426_vm0, %v788_v48, %v790_v35  ;;  %v791_v50 = vsel %vm426_vm0, %v786_v34, %v788_v48  ;;  %v750_v60 = vsel %vm380_vm7, %v743_v33, %v745_v47  ;;  %vm1050_vm0 = vcmask 1044000  }
 0x293   : > { %892 = vrot.lane.b32.xlu1 %v792_v49, %s1232_s24  ;;  %890 = vrot.lane.b32.xlu0 %v791_v50, %s1232_s24  ;;  %v805_v7 = vsel %vm429_vm1, %v739_v61, %v750_v60 }
 0x295   : > { %v782_v51 = vpop.permute.xlu0 %781  ;;  %v723_v52 = vpop.permute.xlu1 %722 }
 0x296   : > { %v838_v54 = vsel %vm429_vm1, %v774_v42, %v782_v51 }
 0x297   : > { %880 = vrot.lane.b32.xlu1 %v829_v53, %s1232_s24  ;;  %886 = vrot.lane.b32.xlu0 %v838_v54, %s1232_s24 }
 0x299   : > { %v766_v55 = vpop.permute.xlu0 %765  ;;  %v780_v56 = vpop.permute.xlu1 %779 }
 0x29a   : > { %v826_v59 = vsel %vm429_vm1, %v758_v44, %v766_v55  ;;  %v783_v3 = vsel %vm417_vm2, %v778_v39, %v780_v56  ;;  %v784_v10 = vsel %vm417_vm2, %v780_v56, %v782_v51  ;;  %vm1051_vm2 = vcmask 556036  }
 0x29b   : > { %872 = vrot.lane.b32.xlu1 %v817_v57, %s1232_s24  ;;  %878 = vrot.lane.b32.xlu0 %v826_v59, %s1232_s24  ;;  %v835_v13 = vsel %vm429_vm1, %v776_v12, %v784_v10  ;;  %v832_v14 = vsel %vm429_vm1, %v775_v11, %v783_v3  ;;  %vm1052_vm3 = vmor %vm1051_vm2, %vm1050_vm0 }
 0x29c   : > { %1053 = vst.msk [vmem:[%s1642_s23 + $0xc] sm:$0xff] %vm1052_vm3, %v1233_v58 }
 0x29d   : > { %v749_v62 = vpop.permute.xlu0 %748  ;;  %v764_v63 = vpop.permute.xlu1 %763 }
 0x29e   : > { %v814_v9 = vsel %vm429_vm1, %v738_v46, %v749_v62  ;;  %v767_v4 = vsel %vm399_vm4, %v762_v43, %v764_v63  ;;  %v768_v15 = vsel %vm399_vm4, %v764_v63, %v766_v55 }
 0x29f   : > { %864 = vrot.lane.b32.xlu1 %v805_v7, %s1232_s24  ;;  %870 = vrot.lane.b32.xlu0 %v814_v9, %s1232_s24  ;;  %v823_v19 = vsel %vm429_vm1, %v760_v2, %v768_v15  ;;  %v820_v22 = vsel %vm429_vm1, %v759_v17, %v767_v4 }
 0x2a1   : > { %v747_v5 = vpop.permute.xlu1 %746  ;;  %v725_v18 = vpop.permute.xlu0 %724 }
 0x2a2   : > { %v751_v23 = vsel %vm380_vm7, %v745_v47, %v747_v5  ;;  %v752_v24 = vsel %vm380_vm7, %v747_v5, %v749_v62  ;;  %v729_v32 = vsel %vm356_vm8, %v723_v52, %v725_v18 }
 0x2a3   : > { %884 = vrot.lane.b32.xlu0 %v835_v13, %s1232_s24  ;;  %882 = vrot.lane.b32.xlu1 %v832_v14, %s1232_s24  ;;  %v811_v30 = vsel %vm429_vm1, %v741_v29, %v752_v24  ;;  %v808_v31 = vsel %vm429_vm1, %v740_v26, %v751_v23  ;;  %v797_v35 = vsel %vm429_vm1, %v1495_v20, %v729_v32  ;;  %v1016_v20 = vld [vmem:[%s1665_s6] sm:$0xff] }
 0x2a5   : > { %v727_v25 = vpop.permute.xlu1 %726  ;;  %v721_v34 = vpop.permute.xlu0 %720 }
 0x2a6   : > { %v730_v33 = vsel %vm356_vm8, %v725_v18, %v727_v25  ;;  %v728_v37 = vsel %vm356_vm8, %v721_v34, %v723_v52  ;;  %v802_v39 = vsel %vm429_vm1, %v1503_v27, %v727_v25  ;;  %v839_v18 = vld [vmem:[%s1664_s5] sm:$0xf] }
 0x2a7   : > { %876 = vrot.lane.b32.xlu0 %v823_v19, %s1232_s24  ;;  %874 = vrot.lane.b32.xlu1 %v820_v22, %s1232_s24  ;;  %v800_v36 = vsel %vm429_vm1, %v1509_v28, %v730_v33  ;;  %v794_v38 = vsel %vm429_vm1, 0, %v728_v37  ;;  %v1025_v28 = vld [vmem:[%s1666_s7] sm:$0xff]  ;;  %v1035_v19 = vrot.slane %v1304_v0, 4 }
 0x2a9   : > { %v1042_v32 = vunpack.c.l.bf16 %v1035_v19 }
 0x2ab   : > { %868 = vrot.lane.b32.xlu0 %v811_v30, %s1232_s24  ;;  %866 = vrot.lane.b32.xlu1 %v808_v31, %s1232_s24 }
 0x2af   : > { %858 = vrot.lane.b32.xlu1 %v797_v35, %s1232_s24  ;;  %860 = vrot.lane.b32.xlu0 %v800_v36, %s1232_s24 }
 0x2b3   : > { %856 = vrot.lane.b32.xlu1 %v794_v38, %s1232_s24  ;;  %862 = vrot.lane.b32.xlu0 %v802_v39, %s1232_s24 }
 0x2b7   : > { %1019 = vperm.xlu1 %1209, %v1016_v20   ;;  %1028 = vperm.xlu0 %1210, %v1025_v28  }
 0x2e8   : > { %v889_v40 = vpop.permute.xlu1 %888 }
 0x2ec   : > { %v895_v41 = vpop.permute.xlu0 %894 }
 0x305   : > { %v891_v42 = vpop.permute.xlu0 %890  ;;  %v893_v43 = vpop.permute.xlu1 %892 }
 0x306   : > { %v908_v27 = vsel %vm535_vm10, %v889_v40, %v891_v42  ;;  %v909_v44 = vsel %vm535_vm10, %v891_v42, %v893_v43  ;;  %v910_v45 = vsel %vm535_vm10, %v893_v43, %v895_v41 }
 0x307   : > { %v927_v46 = vsel %vm429_vm1, %v908_v27, 0  ;;  %v933_v47 = vsel %vm429_vm1, %v910_v45, 0  ;;  %1139 = vmatprep.subr.msk.bf16.mxu0 %vm429_vm1, %v909_v44 }
 0x308   : > { %942 = vmatpush1.bf16.msra.mxu0 %v927_v46  ;;  %1175 = vmatpush3.bf16.msra.mxu1 %v933_v47 }
 0x309   : > { %v887_v48 = vpop.permute.xlu0 %886  ;;  %v881_v49 = vpop.permute.xlu1 %880  ;;  %1176 = vmatprep.subr.bf16.mxu1 %v1231_v6 }
 0x30d   : > { %v879_v50 = vpop.permute.xlu0 %878  ;;  %v873_v51 = vpop.permute.xlu1 %872 }
 0x311   : > { %v871_v52 = vpop.permute.xlu0 %870  ;;  %v865_v53 = vpop.permute.xlu1 %864 }
 0x315   : > { %v885_v54 = vpop.permute.xlu0 %884  ;;  %v883_v55 = vpop.permute.xlu1 %882 }
 0x316   : > { %v907_v56 = vsel %vm535_vm10, %v885_v54, %v887_v48  ;;  %v905_v57 = vsel %vm535_vm10, %v881_v49, %v883_v55  ;;  %v906_v59 = vsel %vm535_vm10, %v883_v55, %v885_v54 }
 0x317   : > { %943 = vmatprep.subr.bf16.mxu0 %v906_v59  ;;  %1177 = vmatpush3.bf16.msra.mxu1 %v907_v56 }
 0x318   : > { %944 = vmatpush1.bf16.msra.mxu0 %v905_v57  ;;  %1178 = vmatprep.subr.bf16.mxu1 %v1231_v6 }
 0x319   : > { %v877_v60 = vpop.permute.xlu0 %876  ;;  %v875_v61 = vpop.permute.xlu1 %874 }
 0x31a   : > { %v904_v62 = vsel %vm535_vm10, %v877_v60, %v879_v50  ;;  %v902_v63 = vsel %vm535_vm10, %v873_v51, %v875_v61  ;;  %v903_v7 = vsel %vm535_vm10, %v875_v61, %v877_v60 }
 0x31b   : > { %945 = vmatprep.subr.bf16.mxu0 %v903_v7  ;;  %1179 = vmatpush3.bf16.msra.mxu1 %v904_v62 }
 0x31c   : > { %946 = vmatpush1.bf16.msra.mxu0 %v902_v63  ;;  %1180 = vmatprep.subr.bf16.mxu1 %v1231_v6 }
 0x31d   : > { %v869_v9 = vpop.permute.xlu0 %868  ;;  %v867_v3 = vpop.permute.xlu1 %866 }
 0x31e   : > { %v901_v10 = vsel %vm535_vm10, %v869_v9, %v871_v52  ;;  %v899_v11 = vsel %vm535_vm10, %v865_v53, %v867_v3  ;;  %v900_v12 = vsel %vm535_vm10, %v867_v3, %v869_v9 }
 0x31f   : > { %947 = vmatprep.subr.bf16.mxu0 %v900_v12  ;;  %1181 = vmatpush3.bf16.msra.mxu1 %v901_v10 }
 0x320   : > { %948 = vmatpush1.bf16.msra.mxu0 %v899_v11  ;;  %1182 = vmatprep.subr.bf16.mxu1 %v1231_v6  ;;  %v1034_v6 = vrot.slane %v1306_v1, 4 }
 0x321   : > { %v861_v5 = vpop.permute.xlu0 %860  ;;  %v859_v13 = vpop.permute.xlu1 %858 }
 0x322   : > { %v897_v14 = vsel %vm535_vm10, %v859_v13, %v861_v5  ;;  %v1037_v22 = vsel %vm429_vm1, %v1034_v6, %v1035_v19  ;;  %vm1068_vm1 = vcmask 551936  }
 0x323   : > { %949 = vmatprep.subr.bf16.mxu0 %v897_v14  ;;  %v1040_v30 = vunpack.c.l.bf16 %v1037_v22  ;;  %v1041_v58 = vunpack.c.h.bf16 %v1037_v22 }
 0x325   : > { %v863_v4 = vpop.permute.xlu0 %862  ;;  %v857_v15 = vpop.permute.xlu1 %856 }
 0x326   : > { %v898_v17 = vsel %vm535_vm10, %v861_v5, %v863_v4  ;;  %v896_v2 = vsel %vm535_vm10, %v857_v15, %v859_v13 }
 0x327   : > { %950 = vmatpush1.bf16.msra.mxu0 %v896_v2  ;;  %1183 = vmatpush3.bf16.msra.mxu1 %v898_v17 }
 0x32a   : > { %1140 = vmatmul.mubr.msk.bf16.vlgmr.msra.gmra.mxu0 %vm563_vm11, %v839_v18  ;;  %1185 = vmatmul.mubr.msk.bf16.vlgmr.msra.gmra.mxu1 %vm563_vm11, %v839_v18 }
 0x332   : > { %v1020_v23 = vpop.permute.xlu1 %1019  ;;  %v1029_v26 = vpop.permute.xlu0 %1028 }
 0x3ea   : > { %v969_v24 = vpop.f32.mrf.mxu0  ;;  %v1010_v25 = vpop.f32.mrf.mxu1 }
 0x3eb   : > { %v1022_v29 = vmul.f32 %v1020_v23, %v969_v24  ;;  %v1024_v31 = vmul.f32 %v1020_v23, %v1010_v25 }
 0x3ec   : > { %v971_v33 = vpop.f32.mrf.mxu0  ;;  %v1186_v34 = vpop.f32.mrf.mxu1 }
 0x3ed   : > { %v1031_v35 = vadd.f32 %v1029_v26, %v1022_v29  ;;  %v1033_v36 = vadd.f32 %v1029_v26, %v1024_v31  ;;  %v1023_v37 = vmul.f32 %v1020_v23, %v971_v33 }
 0x3ee   : > { %v973_v1 = vpop.f32.mrf.mxu0  ;;  %v1013_v0 = vpop.f32.mrf.mxu1 }
 0x3ef   : > { %v1043_v38 = vadd.f32 %v1040_v30, %v1031_v35  ;;  %v1045_v39 = vadd.f32 %v1042_v32, %v1033_v36  ;;  %v1032_v20 = vadd.f32 %v1029_v26, %v1023_v37 }
 0x3f0   : > { %v974_v28 = vpop.f32.mrf.mxu0  ;;  %v1187_v40 = vpop.f32.mrf.mxu1 }
 0x3f1   : > { %v1048_v41 = vmul.f32 %v1045_v39, %v1492_v16  ;;  %v1044_v42 = vadd.f32 %v1041_v58, %v1032_v20  ;;  %v1046_v43 = vmul.f32 %v1043_v38, %v1490_v8 }
 0x3f3   : > { %v1147_v27 = vpack.c.bf16 %v1048_v41, %v1048_v41  ;;  %v1047_v44 = vmul.f32 %v1044_v42, %v1497_v21 }
 0x3f5   : > { %v1146_v45 = vpack.c.bf16 %v1047_v44, %v1046_v43  ;;  %1069 = vst.msk [vmem:[%s1642_s23 + $0xc] sm:$0xf] %vm1068_vm1, %v1147_v27 }
 0x3f7   : > { %1067 = vst [vmem:[%s1642_s23 + $0x4] sm:$0xff] %v1146_v45 }
 0x3f8 PF: > { %s20_s11 = sadd.s32 1, %s1221_s11  }
 0x3f9   : > { %p17_p4 = scmp.ge.s32.totalorder %s20_s11, 4  }
 0x3fb   :  { %19 = sbr.rel (!%p17_p4) target bundleno = 2 (0x2), region = 86 }

// kernel: srresnet_forward.11
= control target key start
LH: loop header
LB: loop body
LE: loop exit
PB: predicated region body
PF: predicated region fallthrough
CT: control target
= control target key end

     0   :  { %s1115_s23 = smov 0   ;;  %s1117_s24 = smov 0   ;;  %s1331_s0 = inlined_call_operand.vmem [shape: bf16[2,8,580], index: 0, kind: input, shape index: {}]   ;;  %s1332_s1 = inlined_call_operand.vmem [shape: bf16[32,72], index: 1, kind: input, shape index: {}]   ;;  %s1333_s2 = inlined_call_operand.vmem [shape: f32[32,1], index: 2, kind: input, shape index: {}]   ;;  %s1334_s3 = inlined_call_operand.vmem [shape: f32[32,1], index: 3, kind: input, shape index: {}]   ;;  %s1335_s4 = inlined_call_operand.vmem [shape: f32[1,324], index: 4, kind: input, shape index: {}]   ;;  %s1336_s5 = inlined_call_operand.<no memory space> [shape: f32[1,1], index: 5, kind: input, shape index: {}]   ;;  %s1337_s6 = inlined_call_operand.vmem [shape: bf16[2,32,580], index: 6, kind: output, shape index: {}]  }
   0x1   :  { %11 = sst [smem:[#allocation2]] %s1336_s5  ;;  %s1119_s25 = smov 0  }
   0x2   :  { %s1121_s26 = smov 0   ;;  %s1123_s27 = smov 0  }
   0x3 LB: > { %s26_s5 = sadd.s32 1, %s1055_s25  ;;  %s29_s28 = sadd.s32 1, %s1059_s26  ;;  %s1063_s27 = sphi %s1123_s27, %s17_s27   ;;  %s1059_s26 = sphi %s1121_s26, %s1341_s26   ;;  %s1055_s25 = sphi %s1119_s25, %s1340_s25   ;;  %s1051_s24 = sphi %s1117_s24, %s1339_s24   ;;  %s1047_s23 = sphi %s1115_s23, %s1338_s23  }
   0x4   : > { %p27_p0 = scmp.ge.s32.totalorder %s26_s5, 2  ;;  %p916_p1 = scmp.ge.s32.totalorder %s1063_s27, 1 }
   0x5   : > { %p260_p2 = scmp.lt.s32.totalorder %s1063_s27, 5 }
   0x6   : > { %s1343_s5 = smov (%p27_p0, %s26_s5), 0  ;;  %s1345_s28 = smov (!%p27_p0, %s29_s28), %s1059_s26 }
   0x7   : > { %p261_p3 = pnand %p916_p1, %p260_p2  ;;  %p31_p4 = scmp.ge.s32.totalorder %s1345_s28, 2 }
   0x8   : > { %p310_p5 = scmp.lt.s32.totalorder (!%p261_p3), %s1051_s24, 1  ;;  %s1065_s9 = smov (!%p261_p3), 90  }
   0x9   : > { %s1347_s28 = smov (%p31_p4, %s1345_s28), 0  ;;  %264 = sbr.rel (%p261_p3) target bundleno = 526 (0x20e), region = 44 }
   0xa   : > { %s1066_s10 = smov (!%p261_p3), 92   ;;  %s1067_s11 = smov (!%p261_p3), 91  }
   0xb   : > { %s1068_s12 = smov (!%p261_p3), 109   ;;  %s1069_s13 = smov (!%p261_p3), 108  }
   0xc   : > { %s1070_s14 = smov (!%p261_p3), 126   ;;  %s1071_s15 = smov (!%p261_p3), 110  }
   0xd   : > { %s1072_s16 = smov (!%p261_p3), 127   ;;  %s1074_s17 = smov (!%p261_p3), 19  }
   0xe   : > { %s1349_s24 = smov (!%p310_p5, %s1051_s24), 1  ;;  %v1073_v6 = vmov 0.0   ;;  %vm435_vm0 = vcmask 736256   ;;  %vm438_vm1 = vcmask 1043456   ;;  %vm426_vm2 = vcmask 744448   ;;  %s918_s18 = sshll.u32 %s1047_s23, 1 }
   0xf   : > { %s964_s29 = smul.u32 20, %s1349_s24  ;;  %950 = vmatprep.subr.bf16.mxu1 %v1073_v6  ;;  %vm417_vm3 = vcmask 752640   ;;  %vm408_vm4 = vcmask 883712   ;;  %vm399_vm5 = vcmask 891904   ;;  %vm377_vm6 = vcmask 1031168   ;;  %p316_p6 = scmp.lt.s32.totalorder %s918_s18, 3 }
  0x10   : > { %vm389_vm7 = vcmask 900096   ;;  %vm365_vm8 = vcmask 1039360   ;;  %v1075_v58 = vmov 0   ;;  %vm1076_vm9 = vmmov 0  }
  0x11   : > { %s314_s8 = scalar_lea.vmem %s1331_s0, %s964_s29  ;;  %s1351_s18 = smov (!%p316_p6, %s918_s18), 3  ;;  %623 = vmatprep.mubr.bf16.mxu0 %v1075_v58  ;;  %1018 = vset.pattern.permute.xlu1 %v1075_v58  ;;  %vm550_vm10 = vcmask 154624   ;;  %vm578_vm11 = vcmask 588800   ;;  %vm756_vm12 = vcmask 1044000   ;;  %vm757_vm13 = vcmask 556036  }
  0x12   : > { %v346_v0 = vld [vmem:[%s314_s8 + $0x8] sm:$0xff]  ;;  %v345_v1 = vld [vmem:[%s314_s8] sm:$0xff]  ;;  %s919_s19 = sshll.u32 %s1351_s18, 2  ;;  %s965_s23 = smul.u32 5, %s1351_s18  ;;  %960 = vmatprep.mubr.msk.bf16.mxu1 %vm1076_vm9, %v1073_v6  ;;  %1019 = vset.pattern.permute.xlu0 %v1075_v58  ;;  %vm758_vm14 = vmor %vm757_vm13, %vm756_vm12 }
  0x13   : > { %v1155_v2 = vcombine.high %v346_v0, %v346_v0  ;;  %v1157_v3 = vcombine.high %v345_v1, %v345_v1  ;;  %v1161_v4 = vcombine.low %v346_v0, %v346_v0  ;;  %v1181_v5 = vcombine.low %v345_v1, %v345_v1  ;;  %s1233_s22 = scalar_lea.vmem %s1332_s1, %s919_s19  ;;  %s921_s24 = sshll.u32 %s1351_s18, 3 }
  0x14   : > { %s340_s30 = sadd.s32 %s965_s23, %s964_s29 }
  0x15   : > { %433 = vrot.lane.b32.xlu1 %v1155_v2, %s1065_s9  ;;  %429 = vrot.lane.b32.xlu0 %v1157_v3, %s1065_s9  ;;  %s925_s7 = sshll.u32 %s340_s30, 2 }
  0x19   : > { %411 = vrot.lane.b32.xlu1 %v1157_v3, %s1066_s10  ;;  %431 = vrot.lane.b32.xlu0 %v1161_v4, %s1065_s9 }
  0x1d   : > { %415 = vrot.lane.b32.xlu1 %v1155_v2, %s1066_s10  ;;  %413 = vrot.lane.b32.xlu0 %v1161_v4, %s1066_s10  ;;  %s1253_s10 = scalar_lea.vmem %s1337_s6, %s925_s7 }
  0x1e   : > { %754 = vst [vmem:[%s1253_s10] sm:$0xf] %v1075_v58  ;;  %755 = vst [vmem:[%s1253_s10 + $0x14] sm:$0xf] %v1075_v58 }
  0x1f   : > { %759 = vst.msk [vmem:[%s1253_s10 + $0xc] sm:$0xff] %vm758_vm14, %v1075_v58  ;;  %760 = vst.msk [vmem:[%s1253_s10 + $0x20] sm:$0xff] %vm758_vm14, %v1075_v58 }
  0x21   : > { %422 = vrot.lane.b32.xlu1 %v1161_v4, %s1067_s11  ;;  %420 = vrot.lane.b32.xlu0 %v1157_v3, %s1067_s11 }
  0x25   : > { %393 = vrot.lane.b32.xlu1 %v1157_v3, %s1068_s12  ;;  %424 = vrot.lane.b32.xlu0 %v1155_v2, %s1067_s11 }
  0x29   : > { %397 = vrot.lane.b32.xlu1 %v1155_v2, %s1068_s12  ;;  %395 = vrot.lane.b32.xlu0 %v1161_v4, %s1068_s12  ;;  %s325_s12 = scalar_lea.vmem %s1333_s2, %s921_s24 }
  0x2d   : > { %404 = vrot.lane.b32.xlu1 %v1161_v4, %s1069_s13  ;;  %402 = vrot.lane.b32.xlu0 %v1157_v3, %s1069_s13 }
  0x31   : > { %371 = vrot.lane.b32.xlu1 %v1157_v3, %s1070_s14  ;;  %406 = vrot.lane.b32.xlu0 %v1155_v2, %s1069_s13 }
  0x35   : > { %375 = vrot.lane.b32.xlu1 %v1155_v2, %s1070_s14  ;;  %373 = vrot.lane.b32.xlu0 %v1161_v4, %s1070_s14 }
  0x39   : > { %385 = vrot.lane.b32.xlu1 %v1161_v4, %s1071_s15  ;;  %383 = vrot.lane.b32.xlu0 %v1157_v3, %s1071_s15 }
  0x3d   : > { %387 = vrot.lane.b32.xlu0 %v1155_v2, %s1071_s15  ;;  %369 = vrot.lane.b32.xlu1 %v1181_v5, %s1070_s14 }
  0x41   : > { %381 = vrot.lane.b32.xlu0 %v1181_v5, %s1071_s15  ;;  %359 = vrot.lane.b32.xlu1 %v1157_v3, %s1072_s16  ;;  %s331_s15 = scalar_lea.vmem %s1334_s3, %s921_s24 }
  0x45   : > { %361 = vrot.lane.b32.xlu0 %v1161_v4, %s1072_s16  ;;  %363 = vrot.lane.b32.xlu1 %v1155_v2, %s1072_s16 }
  0x49   : > { %357 = vrot.lane.b32.xlu0 %v1181_v5, %s1072_s16  ;;  %s711_s16 = sld [smem:[#allocation2]] }
  0x87   : > { %v434_v7 = vpop.permute.xlu1 %433  ;;  %v430_v8 = vpop.permute.xlu0 %429 }
  0x88   : > { %542 = vrot.lane.b32.xlu1 %v430_v8, %s1074_s17  ;;  %548 = vrot.lane.b32.xlu0 %v434_v7, %s1074_s17 }
  0x8b   : > { %v412_v9 = vpop.permute.xlu1 %411  ;;  %v432_v10 = vpop.permute.xlu0 %431 }
  0x8c   : > { %v436_v11 = vsel %vm435_vm0, %v430_v8, %v432_v10  ;;  %v437_v12 = vsel %vm435_vm0, %v432_v10, %v434_v7  ;;  %v675_v8 = vld [vmem:[%s325_s12] sm:$0xff] }
  0x8d   : > { %544 = vrot.lane.b32.xlu0 %v436_v11, %s1074_s17  ;;  %546 = vrot.lane.b32.xlu1 %v437_v12, %s1074_s17  ;;  %v693_v10 = vld [vmem:[%s331_s15] sm:$0xff]  ;;  %v676_v11 = vld [vmem:[%s325_s12 + $0x8] sm:$0xff] }
  0x8e   : > { %v694_v12 = vld [vmem:[%s331_s15 + $0x8] sm:$0xff] }
  0x8f   : > { %v416_v13 = vpop.permute.xlu1 %415  ;;  %v414_v14 = vpop.permute.xlu0 %413 }
  0x90   : > { %v418_v27 = vsel %vm417_vm3, %v412_v9, %v414_v14  ;;  %v419_v46 = vsel %vm417_vm3, %v414_v14, %v416_v13  ;;  %vm782_vm3 = vcmask 551936  }
  0x93   : > { %v423_v15 = vpop.permute.xlu1 %422  ;;  %v421_v16 = vpop.permute.xlu0 %420 }
  0x94   : > { %v477_v17 = vsel %vm438_vm1, %v412_v9, %v421_v16  ;;  %v427_v26 = vsel %vm426_vm2, %v421_v16, %v423_v15 }
  0x95   : > { %534 = vrot.lane.b32.xlu1 %v477_v17, %s1074_s17  ;;  %v480_v31 = vsel %vm438_vm1, %v418_v27, %v427_v26 }
  0x97   : > { %v394_v18 = vpop.permute.xlu1 %393  ;;  %v425_v19 = vpop.permute.xlu0 %424 }
  0x98   : > { %v486_v20 = vsel %vm438_vm1, %v416_v13, %v425_v19  ;;  %v428_v45 = vsel %vm426_vm2, %v423_v15, %v425_v19 }
  0x99   : > { %540 = vrot.lane.b32.xlu0 %v486_v20, %s1074_s17  ;;  %v483_v50 = vsel %vm438_vm1, %v419_v46, %v428_v45  ;;  %v1024_v46 = vld [vmem:[%s1233_s22] sm:$0xff]  }
  0x9b   : > { %v398_v21 = vpop.permute.xlu1 %397  ;;  %v396_v22 = vpop.permute.xlu0 %395 }
  0x9c   : > { %v400_v33 = vsel %vm399_vm5, %v394_v18, %v396_v22  ;;  %v401_v54 = vsel %vm399_vm5, %v396_v22, %v398_v21 }
  0x9f   : > { %v405_v23 = vpop.permute.xlu1 %404  ;;  %v403_v24 = vpop.permute.xlu0 %402 }
  0xa0   : > { %v465_v25 = vsel %vm438_vm1, %v394_v18, %v403_v24  ;;  %v409_v32 = vsel %vm408_vm4, %v403_v24, %v405_v23 }
  0xa1   : > { %526 = vrot.lane.b32.xlu1 %v465_v25, %s1074_s17  ;;  %v468_v36 = vsel %vm438_vm1, %v400_v33, %v409_v32 }
  0xa3   : > { %v372_v28 = vpop.permute.xlu1 %371  ;;  %v407_v29 = vpop.permute.xlu0 %406 }
  0xa4   : > { %v474_v30 = vsel %vm438_vm1, %v398_v21, %v407_v29  ;;  %v410_v52 = vsel %vm408_vm4, %v405_v23, %v407_v29 }
  0xa5   : > { %532 = vrot.lane.b32.xlu0 %v474_v30, %s1074_s17  ;;  %536 = vrot.lane.b32.xlu1 %v480_v31, %s1074_s17  ;;  %v471_v57 = vsel %vm438_vm1, %v401_v54, %v410_v52  ;;  %v718_v54 = vstv %s711_s16 }
  0xa7   : > { %v376_v34 = vpop.permute.xlu1 %375  ;;  %v374_v35 = vpop.permute.xlu0 %373 }
  0xa8   : > { %v379_v39 = vsel %vm377_vm6, %v372_v28, %v374_v35  ;;  %v380_v62 = vsel %vm377_vm6, %v374_v35, %v376_v34 }
  0xa9   : > { %528 = vrot.lane.b32.xlu1 %v468_v36, %s1074_s17 }
  0xab   : > { %v386_v37 = vpop.permute.xlu1 %385  ;;  %v384_v38 = vpop.permute.xlu0 %383 }
  0xac   : > { %v391_v40 = vsel %vm389_vm7, %v384_v38, %v386_v37 }
  0xad   : > { %v456_v41 = vsel %vm438_vm1, %v379_v39, %v391_v40 }
  0xae   : > { %520 = vrot.lane.b32.xlu1 %v456_v41, %s1074_s17 }
  0xaf   : > { %v388_v42 = vpop.permute.xlu0 %387  ;;  %v370_v43 = vpop.permute.xlu1 %369 }
  0xb0   : > { %v462_v44 = vsel %vm438_vm1, %v376_v34, %v388_v42  ;;  %v378_v48 = vsel %vm377_vm6, %v370_v43, %v372_v28  ;;  %v392_v59 = vsel %vm389_vm7, %v386_v37, %v388_v42 }
  0xb1   : > { %524 = vrot.lane.b32.xlu0 %v462_v44, %s1074_s17  ;;  %v459_v1 = vsel %vm438_vm1, %v380_v62, %v392_v59  ;;  %v731_v62 = vld [vmem:[%s1335_s4] sm:$0x7] }
  0xb3   : > { %v382_v47 = vpop.permute.xlu0 %381  ;;  %v360_v51 = vpop.permute.xlu1 %359 }
  0xb4   : > { %v390_v49 = vsel %vm389_vm7, %v382_v47, %v384_v38 }
  0xb5   : > { %538 = vrot.lane.b32.xlu0 %v483_v50, %s1074_s17  ;;  %v453_v53 = vsel %vm438_vm1, %v378_v48, %v390_v49  ;;  %v733_v49 = vlaneseq }
  0xb6   : > { %518 = vrot.lane.b32.xlu1 %v453_v53, %s1074_s17 }
  0xb7   : > { %v362_v55 = vpop.permute.xlu0 %361  ;;  %v364_v61 = vpop.permute.xlu1 %363  ;;  %v734_v50 = vshrl.u32 %v733_v49, 7 }
  0xb8   : > { %v367_v56 = vsel %vm365_vm8, %v360_v51, %v362_v55 }
  0xb9   : > { %530 = vrot.lane.b32.xlu0 %v471_v57, %s1074_s17  ;;  %v444_v60 = vsel %vm438_vm1, %v1157_v3, %v367_v56  ;;  %v368_v3 = vsel %vm365_vm8, %v362_v55, %v364_v61  ;;  %v735_v55 = vsub.s32 0, %v734_v50  ;;  %v739_v57 = vsub.s32 1, %v734_v50 }
  0xba   : > { %512 = vrot.lane.b32.xlu1 %v444_v60, %s1074_s17  ;;  %v447_v9 = vsel %vm438_vm1, %v1161_v4, %v368_v3  ;;  %v743_v59 = vsub.s32 2, %v734_v50 }
  0xbb   : > { %v358_v63 = vpop.permute.xlu0 %357 }
  0xbc   : > { %v366_v0 = vsel %vm365_vm8, %v358_v63, %v360_v51 }
  0xbd   : > { %522 = vrot.lane.b32.xlu0 %v459_v1, %s1074_s17  ;;  %v441_v7 = vsel %vm438_vm1, %v1181_v5, %v366_v0  ;;  %v450_v5 = vsel %vm438_vm1, %v1155_v2, %v364_v61 }
  0xbe   : > { %510 = vrot.lane.b32.xlu1 %v441_v7, %s1074_s17 }
  0xc1   : > { %514 = vrot.lane.b32.xlu0 %v447_v9, %s1074_s17 }
  0xc2   : > { %679 = vperm.xlu1 %1018, %v675_v8  }
  0xc5   : > { %516 = vrot.lane.b32.xlu0 %v450_v5, %s1074_s17 }
  0xc6   : > { %697 = vperm.xlu1 %1018, %v693_v10   ;;  %v736_v10 = vrot.slane %v731_v62, %v735_v55 }
  0xc9   : > { %684 = vperm.xlu0 %1019, %v676_v11   ;;  %v740_v11 = vrot.slane %v731_v62, %v739_v57 }
  0xca   : > { %702 = vperm.xlu1 %1018, %v694_v12  }
  0xfa   : > { %v543_v13 = vpop.permute.xlu1 %542  ;;  %v549_v4 = vpop.permute.xlu0 %548 }
  0xff   : > { %v545_v14 = vpop.permute.xlu0 %544  ;;  %v547_v15 = vpop.permute.xlu1 %546 }
 0x100   : > { %v564_v16 = vsel %vm550_vm10, %v545_v14, %v547_v15  ;;  %v563_v17 = vsel %vm550_vm10, %v543_v13, %v545_v14  ;;  %v565_v18 = vsel %vm550_vm10, %v547_v15, %v549_v4  ;;  %v744_v13 = vrot.slane %v731_v62, %v743_v59 }
 0x101   : > { %931 = vmatprep.subr.msk.bf16.mxu0 %vm438_vm1, %v564_v16  ;;  %v583_v2 = vsel %vm438_vm1, %v563_v17, 0  ;;  %v589_v19 = vsel %vm438_vm1, %v565_v18, 0 }
 0x102   : > { %598 = vmatpush1.bf16.msra.mxu0 %v583_v2  ;;  %951 = vmatpush3.bf16.msra.mxu1 %v589_v19 }
 0x103   : > { %952 = vmatprep.subr.bf16.mxu1 %v1073_v6 }
 0x107   : > { %v535_v20 = vpop.permute.xlu1 %534 }
 0x10b   : > { %v541_v23 = vpop.permute.xlu0 %540 }
 0x113   : > { %v527_v21 = vpop.permute.xlu1 %526 }
 0x117   : > { %v537_v22 = vpop.permute.xlu1 %536  ;;  %v533_v25 = vpop.permute.xlu0 %532 }
 0x118   : > { %v560_v32 = vsel %vm550_vm10, %v535_v20, %v537_v22 }
 0x11b   : > { %v529_v24 = vpop.permute.xlu1 %528 }
 0x11c   : > { %v557_v37 = vsel %vm550_vm10, %v527_v21, %v529_v24 }
 0x120   : > { %v521_v27 = vpop.permute.xlu1 %520 }
 0x123   : > { %v525_v26 = vpop.permute.xlu0 %524 }
 0x127   : > { %v539_v28 = vpop.permute.xlu0 %538 }
 0x128   : > { %v519_v29 = vpop.permute.xlu1 %518  ;;  %v561_v30 = vsel %vm550_vm10, %v537_v22, %v539_v28  ;;  %v562_v31 = vsel %vm550_vm10, %v539_v28, %v541_v23 }
 0x129   : > { %599 = vmatprep.subr.bf16.mxu0 %v561_v30  ;;  %953 = vmatpush3.bf16.msra.mxu1 %v562_v31  ;;  %v554_v41 = vsel %vm550_vm10, %v519_v29, %v521_v27 }
 0x12a   : > { %600 = vmatpush1.bf16.msra.mxu0 %v560_v32  ;;  %954 = vmatprep.subr.bf16.mxu1 %v1073_v6 }
 0x12b   : > { %v531_v33 = vpop.permute.xlu0 %530 }
 0x12c   : > { %v513_v34 = vpop.permute.xlu1 %512  ;;  %v558_v35 = vsel %vm550_vm10, %v529_v24, %v531_v33  ;;  %v559_v36 = vsel %vm550_vm10, %v531_v33, %v533_v25 }
 0x12d   : > { %601 = vmatprep.subr.bf16.mxu0 %v558_v35  ;;  %955 = vmatpush3.bf16.msra.mxu1 %v559_v36 }
 0x12e   : > { %602 = vmatpush1.bf16.msra.mxu0 %v557_v37  ;;  %956 = vmatprep.subr.bf16.mxu1 %v1073_v6 }
 0x12f   : > { %v523_v38 = vpop.permute.xlu0 %522 }
 0x130   : > { %v555_v39 = vsel %vm550_vm10, %v521_v27, %v523_v38  ;;  %v556_v40 = vsel %vm550_vm10, %v523_v38, %v525_v26  ;;  %v511_v42 = vpop.permute.xlu1 %510 }
 0x131   : > { %603 = vmatprep.subr.bf16.mxu0 %v555_v39  ;;  %957 = vmatpush3.bf16.msra.mxu1 %v556_v40  ;;  %v551_v45 = vsel %vm550_vm10, %v511_v42, %v513_v34 }
 0x132   : > { %604 = vmatpush1.bf16.msra.mxu0 %v554_v41  ;;  %958 = vmatprep.subr.bf16.mxu1 %v1073_v6 }
 0x133   : > { %v515_v43 = vpop.permute.xlu0 %514 }
 0x134   : > { %v552_v44 = vsel %vm550_vm10, %v513_v34, %v515_v43 }
 0x135   : > { %605 = vmatprep.subr.bf16.mxu0 %v552_v44 }
 0x136   : > { %606 = vmatpush1.bf16.msra.mxu0 %v551_v45 }
 0x137   : > { %v517_v47 = vpop.permute.xlu0 %516 }
 0x138   : > { %v553_v48 = vsel %vm550_vm10, %v515_v43, %v517_v47 }
 0x139   : > { %932 = vmatmul.mubr.msk.bf16.vlgmr.msra.gmra.mxu0 %vm578_vm11, %v1024_v46  ;;  %959 = vmatpush3.bf16.msra.mxu1 %v553_v48 }
 0x13c   : > { %961 = vmatmul.mubr.msk.bf16.vlgmr.msra.gmra.mxu1 %vm578_vm11, %v1024_v46 }
 0x13d   : > { %v680_v6 = vpop.permute.xlu1 %679 }
 0x141   : > { %v698_v51 = vpop.permute.xlu1 %697 }
 0x144   : > { %v685_v60 = vpop.permute.xlu0 %684 }
 0x145   : > { %v703_v5 = vpop.permute.xlu1 %702 }
 0x1f9   : > { %v625_v52 = vpop.f32.mrf.mxu0 }
 0x1fa   : > { %v687_v53 = vmul.f32 %v680_v6, %v625_v52 }
 0x1fb   : > { %v627_v56 = vpop.f32.mrf.mxu0 }
 0x1fc   : > { %v705_v61 = vadd.f32 %v698_v51, %v687_v53  ;;  %v688_v63 = vmul.f32 %v680_v6, %v627_v56  ;;  %v668_v58 = vpop.f32.mrf.mxu1 }
 0x1fd   : > { %v689_v0 = vmul.f32 %v680_v6, %v668_v58  ;;  %v629_v1 = vpop.f32.mrf.mxu0 }
 0x1fe   : > { %vm712_vm15 = vcmp.ge.f32.partialorder %v705_v61, 0.0  ;;  %v719_v3 = vmul.f32 %v718_v54, %v705_v61  ;;  %v706_v7 = vadd.f32 %v698_v51, %v688_v63  ;;  %v690_v8 = vmul.f32 %v685_v60, %v629_v1  ;;  %v962_v9 = vpop.f32.mrf.mxu1 }
 0x1ff   : > { %v707_v12 = vadd.f32 %v698_v51, %v689_v0  ;;  %v631_v4 = vpop.f32.mrf.mxu0 }
 0x200   : > { %v725_v14 = vsel %vm712_vm15, %v705_v61, %v719_v3  ;;  %vm713_vm0 = vcmp.ge.f32.partialorder %v706_v7, 0.0  ;;  %v720_v15 = vmul.f32 %v718_v54, %v706_v7  ;;  %v708_v16 = vadd.f32 %v703_v5, %v690_v8  ;;  %v671_v17 = vpop.f32.mrf.mxu1 }
 0x201   : > { %vm714_vm1 = vcmp.ge.f32.partialorder %v707_v12, 0.0  ;;  %v721_v18 = vmul.f32 %v718_v54, %v707_v12  ;;  %v691_v2 = vmul.f32 %v685_v60, %v631_v4  ;;  %v692_v21 = vmul.f32 %v685_v60, %v671_v17 }
 0x202   : > { %v726_v19 = vsel %vm713_vm0, %v706_v7, %v720_v15  ;;  %vm715_vm2 = vcmp.ge.f32.partialorder %v708_v16, 0.0  ;;  %v722_v20 = vmul.f32 %v718_v54, %v708_v16  ;;  %v963_v22 = vpop.f32.mrf.mxu1  ;;  %v748_v23 = vmul.f32 %v736_v10, %v725_v14 }
 0x203   : > { %v749_v24 = vmul.f32 %v740_v11, %v726_v19  ;;  %v727_v25 = vsel %vm714_vm1, %v707_v12, %v721_v18  ;;  %v709_v26 = vadd.f32 %v703_v5, %v691_v2  ;;  %v710_v28 = vadd.f32 %v703_v5, %v692_v21 }
 0x204   : > { %v750_v27 = vmul.f32 %v744_v13, %v727_v25  ;;  %v728_v30 = vsel %vm715_vm2, %v708_v16, %v722_v20 }
 0x205   : > { %v940_v29 = vpack.c.bf16 %v749_v24, %v748_v23  ;;  %vm716_vm4 = vcmp.ge.f32.partialorder %v709_v26, 0.0  ;;  %v723_v31 = vmul.f32 %v718_v54, %v709_v26  ;;  %vm717_vm5 = vcmp.ge.f32.partialorder %v710_v28, 0.0 }
 0x206   : > { %v941_v32 = vpack.c.bf16 %v750_v27, %v750_v27  ;;  %v724_v33 = vmul.f32 %v718_v54, %v710_v28  ;;  %v751_v35 = vmul.f32 %v736_v10, %v728_v30 }
 0x207   : > { %781 = vst [vmem:[%s1253_s10 + $0x4] sm:$0xff] %v940_v29  ;;  %v729_v34 = vsel %vm716_vm4, %v709_v26, %v723_v31 }
 0x208   : > { %783 = vst.msk [vmem:[%s1253_s10 + $0xc] sm:$0xf] %vm782_vm3, %v941_v32  ;;  %v752_v36 = vmul.f32 %v740_v11, %v729_v34  ;;  %v730_v37 = vsel %vm717_vm5, %v710_v28, %v724_v33 }
 0x209   : > { %v753_v38 = vmul.f32 %v744_v13, %v730_v37 }
 0x20a   : > { %v942_v39 = vpack.c.bf16 %v752_v36, %v751_v35 }
 0x20b   : > { %v943_v40 = vpack.c.bf16 %v753_v38, %v753_v38 }
 0x20c   : > { %784 = vst [vmem:[%s1253_s10 + $0x18] sm:$0xff] %v942_v39 }
 0x20d   : > { %785 = vst.msk [vmem:[%s1253_s10 + $0x20] sm:$0xf] %vm782_vm3, %v943_v40 }
 0x20e PF: > { %s17_s27 = sadd.s32 1, %s1063_s27   ;;  %s1338_s23 = smov %s1055_s25 }
 0x20f   : > { %p14_p7 = scmp.ge.s32.totalorder %s17_s27, 6   ;;  %s1339_s24 = smov %s1059_s26 }
 0x210   : > { %s1340_s25 = smov %s1343_s5  ;;  %s1341_s26 = smov %s1347_s28 }
 0x211   :  { %16 = sbr.rel (!%p14_p7) target bundleno = 3 (0x3), region = 83 }

// kernel: srresnet_forward.12
= control target key start
LH: loop header
LB: loop body
LE: loop exit
PB: predicated region body
PF: predicated region fallthrough
CT: control target
= control target key end

     0   :  { %s1841_s23 = smov 0   ;;  %s1843_s24 = smov 0   ;;  %s2608_s0 = inlined_call_operand.vmem [shape: bf16[2,8,1412], index: 0, kind: input, shape index: {}]   ;;  %s2609_s1 = inlined_call_operand.vmem [shape: bf16[32,72], index: 1, kind: input, shape index: {}]   ;;  %s2610_s2 = inlined_call_operand.vmem [shape: f32[32,1], index: 2, kind: input, shape index: {}]   ;;  %s2611_s3 = inlined_call_operand.vmem [shape: f32[32,1], index: 3, kind: input, shape index: {}]   ;;  %s2612_s4 = inlined_call_operand.vmem [shape: f32[1,1156], index: 4, kind: input, shape index: {}]   ;;  %s2613_s5 = inlined_call_operand.<no memory space> [shape: f32[1,1], index: 5, kind: input, shape index: {}]   ;;  %s2614_s6 = inlined_call_operand.vmem [shape: bf16[2,32,1412], index: 6, kind: output, shape index: {}]  }
   0x1   :  { %11 = sst [smem:[#allocation2]] %s2613_s5  ;;  %s1845_s25 = smov 0  }
   0x2   :  { %s1847_s26 = smov 0   ;;  %s1849_s27 = smov 0  }
   0x3 LB: > { %s26_s5 = sadd.s32 1, %s1783_s25  ;;  %s29_s28 = sadd.s32 1, %s1787_s26  ;;  %s1791_s27 = sphi %s1849_s27, %s17_s27   ;;  %s1787_s26 = sphi %s1847_s26, %s2620_s26   ;;  %s1783_s25 = sphi %s1845_s25, %s2619_s25   ;;  %s1779_s24 = sphi %s1843_s24, %s2618_s24   ;;  %s1775_s23 = sphi %s1841_s23, %s2617_s23  }
   0x4   : > { %p27_p0 = scmp.ge.s32.totalorder %s26_s5, 2  ;;  %p1633_p1 = scmp.ge.s32.totalorder %s1791_s27, 1 }
   0x5   : > { %p260_p2 = scmp.lt.s32.totalorder %s1791_s27, 5 }
   0x6   : > { %s2622_s5 = smov (%p27_p0, %s26_s5), 0  ;;  %s2624_s28 = smov (!%p27_p0, %s29_s28), %s1787_s26 }
   0x7   : > { %p261_p3 = pnand %p1633_p1, %p260_p2  ;;  %p31_p4 = scmp.ge.s32.totalorder %s2624_s28, 2 }
   0x8   : > { %p310_p5 = scmp.lt.s32.totalorder (!%p261_p3), %s1779_s24, 1  ;;  %s1793_s9 = smov (!%p261_p3), 58  }
   0x9   : > { %s2626_s28 = smov (%p31_p4, %s2624_s28), 0  ;;  %264 = sbr.rel (%p261_p3) target bundleno = 631 (0x277), region = 44 }
   0xa   : > { %s1794_s10 = smov (!%p261_p3), 60   ;;  %s1795_s11 = smov (!%p261_p3), 59  }
   0xb   : > { %s1796_s12 = smov (!%p261_p3), 93   ;;  %s1797_s13 = smov (!%p261_p3), 92  }
   0xc   : > { %s1798_s14 = smov (!%p261_p3), 126   ;;  %s1799_s15 = smov (!%p261_p3), 94  }
   0xd   : > { %s1800_s16 = smov (!%p261_p3), 127   ;;  %s1801_s17 = smov (!%p261_p3), 35  }
   0xe   : > { %s2628_s24 = smov (!%p310_p5, %s1779_s24), 1  ;;  %vm612_vm0 = vcmask 474112   ;;  %vm582_vm1 = vcmask 482304   ;;  %vm552_vm2 = vcmask 490496   ;;  %vm622_vm3 = vcmask 1043456   ;;  %s1635_s18 = sshll.u32 %s1775_s23, 1 }
   0xf   : > { %s1687_s29 = smul.u32 48, %s2628_s24  ;;  %vm522_vm4 = vcmask 752640   ;;  %vm492_vm5 = vcmask 760832   ;;  %vm461_vm6 = vcmask 769024   ;;  %vm426_vm7 = vcmask 1031168   ;;  %p316_p6 = scmp.lt.s32.totalorder %s1635_s18, 3 }
  0x10   : > { %vm396_vm8 = vcmask 1039360   ;;  %vm890_vm9 = vcmask 285696   ;;  %vm976_vm10 = vcmask 588800   ;;  %vm1427_vm11 = vcmask 1043488  }
  0x11   : > { %s1881_s8 = scalar_lea.vmem %s2608_s0, %s1687_s29  ;;  %s2630_s18 = smov (!%p316_p6, %s1635_s18), 3  ;;  %vm1428_vm12 = vcmask 31748  }
  0x12   : > { %v346_v0 = vld [vmem:[%s1881_s8 + $0x8] sm:$0xff]  ;;  %v345_v1 = vld [vmem:[%s1881_s8] sm:$0xff]  ;;  %v347_v6 = vld [vmem:[%s1881_s8 + $0x10] sm:$0xff]  ;;  %s1636_s19 = sshll.u32 %s2630_s18, 2  ;;  %s1688_s23 = smul.u32 12, %s2630_s18 }
  0x13   : > { %v1885_v2 = vcombine.high %v346_v0, %v346_v0  ;;  %v1887_v3 = vcombine.high %v345_v1, %v345_v1  ;;  %v1893_v4 = vcombine.low %v346_v0, %v346_v0  ;;  %v1931_v5 = vcombine.low %v345_v1, %v345_v1  ;;  %v348_v8 = vld [vmem:[%s1881_s8 + $0x18] sm:$0xff]  ;;  %v349_v12 = vld [vmem:[%s1881_s8 + $0x20] sm:$0xff]  ;;  %v1751_v17 = vld [vmem:[%s1881_s8 + $0x28] ss:$0 sps:$4 sm:$0xff]   ;;  %s2173_s22 = scalar_lea.vmem %s2609_s1, %s1636_s19 }
  0x14   : > { %v1946_v7 = vcombine.low %v347_v6, %v347_v6  ;;  %v1953_v9 = vcombine.high %v347_v6, %v347_v6  ;;  %v1955_v10 = vcombine.low %v348_v8, %v348_v8  ;;  %v1961_v11 = vcombine.high %v348_v8, %v348_v8  ;;  %s340_s30 = sadd.s32 %s1688_s23, %s1687_s29  ;;  %s1638_s29 = sshll.u32 %s2630_s18, 3  ;;  %vm1429_vm13 = vmor %vm1428_vm12, %vm1427_vm11 }
  0x15   : > { %596 = vrot.lane.b32.xlu1 %v1885_v2, %s1793_s9  ;;  %592 = vrot.lane.b32.xlu0 %v1887_v3, %s1793_s9  ;;  %v2020_v13 = vcombine.low %v349_v12, %v349_v12  ;;  %v2028_v16 = vcombine.high %v349_v12, %v349_v12  ;;  %s1642_s7 = sshll.u32 %s340_s30, 2  ;;  %s1289_s18 = sld [smem:[#allocation2]] }
  0x16   : > { %s2200_s24 = scalar_lea.vmem %s2614_s6, %s1642_s7 }
  0x19   : > { %532 = vrot.lane.b32.xlu1 %v1887_v3, %s1794_s10  ;;  %594 = vrot.lane.b32.xlu0 %v1893_v4, %s1793_s9 }
  0x1d   : > { %536 = vrot.lane.b32.xlu1 %v1885_v2, %s1794_s10  ;;  %534 = vrot.lane.b32.xlu0 %v1893_v4, %s1794_s10 }
  0x21   : > { %564 = vrot.lane.b32.xlu1 %v1893_v4, %s1795_s11  ;;  %562 = vrot.lane.b32.xlu0 %v1887_v3, %s1795_s11 }
  0x25   : > { %472 = vrot.lane.b32.xlu1 %v1887_v3, %s1796_s12  ;;  %566 = vrot.lane.b32.xlu0 %v1885_v2, %s1795_s11 }
  0x29   : > { %476 = vrot.lane.b32.xlu1 %v1885_v2, %s1796_s12  ;;  %474 = vrot.lane.b32.xlu0 %v1893_v4, %s1796_s12 }
  0x2d   : > { %504 = vrot.lane.b32.xlu1 %v1893_v4, %s1797_s13  ;;  %502 = vrot.lane.b32.xlu0 %v1887_v3, %s1797_s13 }
  0x31   : > { %408 = vrot.lane.b32.xlu1 %v1887_v3, %s1798_s14  ;;  %506 = vrot.lane.b32.xlu0 %v1885_v2, %s1797_s13 }
  0x35   : > { %412 = vrot.lane.b32.xlu1 %v1885_v2, %s1798_s14  ;;  %410 = vrot.lane.b32.xlu0 %v1893_v4, %s1798_s14 }
  0x39   : > { %443 = vrot.lane.b32.xlu1 %v1893_v4, %s1799_s15  ;;  %441 = vrot.lane.b32.xlu0 %v1887_v3, %s1799_s15 }
  0x3d   : > { %445 = vrot.lane.b32.xlu0 %v1885_v2, %s1799_s15  ;;  %406 = vrot.lane.b32.xlu1 %v1931_v5, %s1798_s14 }
  0x41   : > { %439 = vrot.lane.b32.xlu0 %v1931_v5, %s1799_s15  ;;  %378 = vrot.lane.b32.xlu1 %v1887_v3, %s1800_s16 }
  0x45   : > { %380 = vrot.lane.b32.xlu0 %v1893_v4, %s1800_s16  ;;  %382 = vrot.lane.b32.xlu1 %v1885_v2, %s1800_s16 }
  0x49   : > { %376 = vrot.lane.b32.xlu0 %v1931_v5, %s1800_s16  ;;  %598 = vrot.lane.b32.xlu1 %v1946_v7, %s1793_s9 }
  0x4d   : > { %600 = vrot.lane.b32.xlu0 %v1953_v9, %s1793_s9  ;;  %602 = vrot.lane.b32.xlu1 %v1955_v10, %s1793_s9 }
  0x51   : > { %604 = vrot.lane.b32.xlu0 %v1961_v11, %s1793_s9  ;;  %538 = vrot.lane.b32.xlu1 %v1946_v7, %s1794_s10 }
  0x55   : > { %540 = vrot.lane.b32.xlu0 %v1953_v9, %s1794_s10  ;;  %542 = vrot.lane.b32.xlu1 %v1955_v10, %s1794_s10 }
  0x59   : > { %544 = vrot.lane.b32.xlu0 %v1961_v11, %s1794_s10  ;;  %568 = vrot.lane.b32.xlu1 %v1946_v7, %s1795_s11 }
  0x5d   : > { %570 = vrot.lane.b32.xlu0 %v1953_v9, %s1795_s11  ;;  %572 = vrot.lane.b32.xlu1 %v1955_v10, %s1795_s11 }
  0x61   : > { %574 = vrot.lane.b32.xlu0 %v1961_v11, %s1795_s11  ;;  %478 = vrot.lane.b32.xlu1 %v1946_v7, %s1796_s12 }
  0x65   : > { %480 = vrot.lane.b32.xlu0 %v1953_v9, %s1796_s12  ;;  %482 = vrot.lane.b32.xlu1 %v1955_v10, %s1796_s12 }
  0x69   : > { %484 = vrot.lane.b32.xlu0 %v1961_v11, %s1796_s12  ;;  %508 = vrot.lane.b32.xlu1 %v1946_v7, %s1797_s13 }
  0x6d   : > { %510 = vrot.lane.b32.xlu0 %v1953_v9, %s1797_s13  ;;  %512 = vrot.lane.b32.xlu1 %v1955_v10, %s1797_s13 }
  0x71   : > { %514 = vrot.lane.b32.xlu0 %v1961_v11, %s1797_s13  ;;  %414 = vrot.lane.b32.xlu1 %v1946_v7, %s1798_s14 }
  0x75   : > { %416 = vrot.lane.b32.xlu0 %v1953_v9, %s1798_s14  ;;  %418 = vrot.lane.b32.xlu1 %v1955_v10, %s1798_s14 }
  0x79   : > { %420 = vrot.lane.b32.xlu0 %v1961_v11, %s1798_s14  ;;  %447 = vrot.lane.b32.xlu1 %v1946_v7, %s1799_s15 }
  0x7d   : > { %449 = vrot.lane.b32.xlu0 %v1953_v9, %s1799_s15  ;;  %451 = vrot.lane.b32.xlu1 %v1955_v10, %s1799_s15 }
  0x81   : > { %453 = vrot.lane.b32.xlu0 %v1961_v11, %s1799_s15  ;;  %384 = vrot.lane.b32.xlu1 %v1946_v7, %s1800_s16 }
  0x85   : > { %386 = vrot.lane.b32.xlu0 %v1953_v9, %s1800_s16  ;;  %388 = vrot.lane.b32.xlu1 %v1955_v10, %s1800_s16 }
  0x87   : > { %v2022_v14 = vpop.permute.xlu1 %596  ;;  %v593_v15 = vpop.permute.xlu0 %592 }
  0x89   : > { %390 = vrot.lane.b32.xlu0 %v1961_v11, %s1800_s16  ;;  %606 = vrot.lane.b32.xlu1 %v2020_v13, %s1793_s9 }
  0x8b   : > { %v2031_v18 = vpop.permute.xlu1 %532  ;;  %v595_v19 = vpop.permute.xlu0 %594 }
  0x8c   : > { %v613_v42 = vsel %vm612_vm0, %v593_v15, %v595_v19  ;;  %v614_v43 = vsel %vm612_vm0, %v595_v19, %v2022_v14 }
  0x8d   : > { %608 = vrot.lane.b32.xlu0 %v2028_v16, %s1793_s9  ;;  %610 = vrot.lane.b32.xlu1 %v1751_v17, %s1793_s9 }
  0x8f   : > { %v2036_v20 = vpop.permute.xlu1 %536  ;;  %v535_v21 = vpop.permute.xlu0 %534 }
  0x90   : > { %v553_v46 = vsel %vm552_vm2, %v2031_v18, %v535_v21  ;;  %v554_v47 = vsel %vm552_vm2, %v535_v21, %v2036_v20 }
  0x91   : > { %546 = vrot.lane.b32.xlu0 %v2020_v13, %s1794_s10  ;;  %548 = vrot.lane.b32.xlu1 %v2028_v16, %s1794_s10 }
  0x93   : > { %v565_v22 = vpop.permute.xlu1 %564  ;;  %v2042_v23 = vpop.permute.xlu0 %562 }
  0x94   : > { %v583_v44 = vsel %vm582_vm1, %v2042_v23, %v565_v22  ;;  %v715_v56 = vsel %vm622_vm3, %v2031_v18, %v2042_v23 }
  0x95   : > { %576 = vrot.lane.b32.xlu0 %v2020_v13, %s1795_s11  ;;  %578 = vrot.lane.b32.xlu1 %v2028_v16, %s1795_s11  ;;  %v718_v50 = vsel %vm622_vm3, %v553_v46, %v583_v44 }
  0x97   : > { %v2048_v24 = vpop.permute.xlu1 %472  ;;  %v2050_v25 = vpop.permute.xlu0 %566 }
  0x98   : > { %v584_v45 = vsel %vm582_vm1, %v565_v22, %v2050_v25 }
  0x99   : > { %550 = vrot.lane.b32.xlu0 %v1751_v17, %s1794_s10  ;;  %580 = vrot.lane.b32.xlu1 %v1751_v17, %s1795_s11  ;;  %v721_v51 = vsel %vm622_vm3, %v554_v47, %v584_v45 }
  0x9b   : > { %v2054_v26 = vpop.permute.xlu1 %476  ;;  %v475_v27 = vpop.permute.xlu0 %474 }
  0x9c   : > { %v493_v53 = vsel %vm492_vm5, %v2048_v24, %v475_v27  ;;  %v494_v59 = vsel %vm492_vm5, %v475_v27, %v2054_v26 }
  0x9d   : > { %486 = vrot.lane.b32.xlu0 %v2020_v13, %s1796_s12  ;;  %488 = vrot.lane.b32.xlu1 %v2028_v16, %s1796_s12 }
  0x9f   : > { %v505_v28 = vpop.permute.xlu1 %504  ;;  %v503_v29 = vpop.permute.xlu0 %502 }
  0xa0   : > { %v523_v52 = vsel %vm522_vm4, %v503_v29, %v505_v28  ;;  %v685_v63 = vsel %vm622_vm3, %v2048_v24, %v503_v29 }
  0xa1   : > { %516 = vrot.lane.b32.xlu0 %v2020_v13, %s1797_s13  ;;  %518 = vrot.lane.b32.xlu1 %v2028_v16, %s1797_s13  ;;  %v688_v57 = vsel %vm622_vm3, %v493_v53, %v523_v52 }
  0xa3   : > { %v2064_v30 = vpop.permute.xlu1 %408  ;;  %v2066_v31 = vpop.permute.xlu0 %506 }
  0xa4   : > { %v524_v58 = vsel %vm522_vm4, %v505_v28, %v2066_v31 }
  0xa5   : > { %490 = vrot.lane.b32.xlu0 %v1751_v17, %s1796_s12  ;;  %520 = vrot.lane.b32.xlu1 %v1751_v17, %s1797_s13  ;;  %v691_v62 = vsel %vm622_vm3, %v494_v59, %v524_v58  ;;  %s325_s12 = scalar_lea.vmem %s2610_s2, %s1638_s29 }
  0xa7   : > { %v2070_v32 = vpop.permute.xlu1 %412  ;;  %v2072_v33 = vpop.permute.xlu0 %410 }
  0xa8   : > { %v428_v6 = vsel %vm426_vm7, %v2064_v30, %v2072_v33  ;;  %v429_v8 = vsel %vm426_vm7, %v2072_v33, %v2070_v32  ;;  %v1802_v33 = vmov 0  }
  0xa9   : > { %422 = vrot.lane.b32.xlu0 %v2020_v13, %s1798_s14  ;;  %424 = vrot.lane.b32.xlu1 %v2028_v16, %s1798_s14  ;;  %1425 = vst [vmem:[%s2200_s24] sm:$0xf] %v1802_v33  ;;  %1426 = vst [vmem:[%s2200_s24 + $0x30] sm:$0xf] %v1802_v33 }
  0xaa   : > { %1042 = vmatprep.mubr.bf16.mxu0 %v1802_v33  ;;  %1085 = vmatprep.mubr.bf16.mxu1 %v1802_v33  ;;  %1430 = vst.msk [vmem:[%s2200_s24 + $0x28] sm:$0xff] %vm1429_vm13, %v1802_v33  ;;  %1431 = vst.msk [vmem:[%s2200_s24 + $0x58] sm:$0xff] %vm1429_vm13, %v1802_v33 }
  0xab   : > { %v444_v34 = vpop.permute.xlu1 %443  ;;  %v2078_v35 = vpop.permute.xlu0 %441  ;;  %1739 = vset.pattern.permute.xlu1 %v1802_v33  ;;  %1740 = vset.pattern.permute.xlu0 %v1802_v33 }
  0xac   : > { %v463_v0 = vsel %vm461_vm6, %v2078_v35, %v444_v34 }
  0xad   : > { %455 = vrot.lane.b32.xlu0 %v2020_v13, %s1799_s15  ;;  %457 = vrot.lane.b32.xlu1 %v2028_v16, %s1799_s15 }
  0xaf   : > { %v2084_v36 = vpop.permute.xlu0 %445  ;;  %v2086_v37 = vpop.permute.xlu1 %406 }
  0xb0   : > { %v464_v1 = vsel %vm461_vm6, %v444_v34, %v2084_v36  ;;  %v427_v22 = vsel %vm426_vm7, %v2086_v37, %v2064_v30 }
  0xb1   : > { %459 = vrot.lane.b32.xlu0 %v1751_v17, %s1799_s15  ;;  %392 = vrot.lane.b32.xlu1 %v2020_v13, %s1800_s16  ;;  %v658_v17 = vsel %vm622_vm3, %v428_v6, %v463_v0  ;;  %v661_v18 = vsel %vm622_vm3, %v429_v8, %v464_v1  ;;  %s331_s15 = scalar_lea.vmem %s2611_s3, %s1638_s29 }
  0xb3   : > { %v440_v38 = vpop.permute.xlu0 %439  ;;  %v2091_v39 = vpop.permute.xlu1 %378 }
  0xb4   : > { %v462_v19 = vsel %vm461_vm6, %v440_v38, %v2078_v35 }
  0xb5   : > { %394 = vrot.lane.b32.xlu0 %v2028_v16, %s1800_s16  ;;  %870 = vrot.lane.b32.xlu1 %v593_v15, %s1801_s17  ;;  %v655_v27 = vsel %vm622_vm3, %v427_v22, %v462_v19 }
  0xb7   : > { %v381_v40 = vpop.permute.xlu0 %380  ;;  %v2096_v41 = vpop.permute.xlu1 %382 }
  0xb8   : > { %v398_v21 = vsel %vm396_vm8, %v2091_v39, %v381_v40  ;;  %v399_v29 = vsel %vm396_vm8, %v381_v40, %v2096_v41 }
  0xb9   : > { %872 = vrot.lane.b32.xlu0 %v613_v42, %s1801_s17  ;;  %874 = vrot.lane.b32.xlu1 %v614_v43, %s1801_s17  ;;  %v628_v28 = vsel %vm622_vm3, %v1887_v3, %v398_v21  ;;  %v631_v37 = vsel %vm622_vm3, %v1893_v4, %v399_v29 }
  0xbb   : > { %v377_v48 = vpop.permute.xlu0 %376  ;;  %v2111_v49 = vpop.permute.xlu1 %598 }
  0xbc   : > { %v397_v30 = vsel %vm396_vm8, %v377_v48, %v2091_v39  ;;  %v615_v39 = vsel %vm612_vm0, %v2022_v14, %v2111_v49 }
  0xbd   : > { %852 = vrot.lane.b32.xlu0 %v718_v50, %s1801_s17  ;;  %854 = vrot.lane.b32.xlu1 %v721_v51, %s1801_s17  ;;  %v625_v3 = vsel %vm622_vm3, %v1931_v5, %v397_v30 }
  0xbf   : > { %v2120_v54 = vpop.permute.xlu0 %600  ;;  %v2122_v55 = vpop.permute.xlu1 %602 }
  0xc0   : > { %v616_v4 = vsel %vm612_vm0, %v2111_v49, %v2120_v54  ;;  %v617_v44 = vsel %vm612_vm0, %v2120_v54, %v2122_v55 }
  0xc1   : > { %850 = vrot.lane.b32.xlu0 %v715_v56, %s1801_s17  ;;  %832 = vrot.lane.b32.xlu1 %v688_v57, %s1801_s17 }
  0xc3   : > { %v2134_v60 = vpop.permute.xlu0 %604  ;;  %v2136_v61 = vpop.permute.xlu1 %538 }
  0xc4   : > { %v618_v43 = vsel %vm612_vm0, %v2122_v55, %v2134_v60  ;;  %v555_v14 = vsel %vm552_vm2, %v2036_v20, %v2136_v61 }
  0xc5   : > { %834 = vrot.lane.b32.xlu0 %v691_v62, %s1801_s17  ;;  %830 = vrot.lane.b32.xlu1 %v685_v63, %s1801_s17 }
  0xc7   : > { %v541_v12 = vpop.permute.xlu0 %540  ;;  %v543_v15 = vpop.permute.xlu1 %542 }
  0xc8   : > { %v556_v47 = vsel %vm552_vm2, %v2136_v61, %v541_v12  ;;  %v557_v20 = vsel %vm552_vm2, %v541_v12, %v543_v15 }
  0xc9   : > { %812 = vrot.lane.b32.xlu0 %v658_v17, %s1801_s17  ;;  %814 = vrot.lane.b32.xlu1 %v661_v18, %s1801_s17 }
  0xcb   : > { %v2168_v23 = vpop.permute.xlu0 %544  ;;  %v569_v24 = vpop.permute.xlu1 %568 }
  0xcc   : > { %v585_v45 = vsel %vm582_vm1, %v2050_v25, %v569_v24  ;;  %v558_v53 = vsel %vm552_vm2, %v543_v15, %v2168_v23 }
  0xcd   : > { %810 = vrot.lane.b32.xlu0 %v655_v27, %s1801_s17  ;;  %792 = vrot.lane.b32.xlu1 %v628_v28, %s1801_s17  ;;  %v724_v25 = vsel %vm622_vm3, %v555_v14, %v585_v45 }
  0xcf   : > { %v571_v34 = vpop.permute.xlu0 %570  ;;  %v573_v35 = vpop.permute.xlu1 %572 }
  0xd0   : > { %v586_v46 = vsel %vm582_vm1, %v569_v24, %v571_v34  ;;  %v587_v51 = vsel %vm582_vm1, %v571_v34, %v573_v35 }
  0xd1   : > { %790 = vrot.lane.b32.xlu1 %v625_v3, %s1801_s17  ;;  %794 = vrot.lane.b32.xlu0 %v631_v37, %s1801_s17  ;;  %v727_v50 = vsel %vm622_vm3, %v556_v47, %v586_v46  ;;  %v730_v57 = vsel %vm622_vm3, %v557_v20, %v587_v51 }
  0xd3   : > { %v2206_v5 = vpop.permute.xlu0 %574  ;;  %v479_v38 = vpop.permute.xlu1 %478 }
  0xd4   : > { %v588_v52 = vsel %vm582_vm1, %v573_v35, %v2206_v5  ;;  %v495_v61 = vsel %vm492_vm5, %v2054_v26, %v479_v38 }
  0xd5   : > { %878 = vrot.lane.b32.xlu1 %v616_v4, %s1801_s17  ;;  %876 = vrot.lane.b32.xlu0 %v615_v39, %s1801_s17  ;;  %v733_v56 = vsel %vm622_vm3, %v558_v53, %v588_v52 }
  0xd7   : > { %v481_v40 = vpop.permute.xlu0 %480  ;;  %v483_v42 = vpop.permute.xlu1 %482 }
  0xd8   : > { %v496_v62 = vsel %vm492_vm5, %v479_v38, %v481_v40  ;;  %v497_v26 = vsel %vm492_vm5, %v481_v40, %v483_v42 }
  0xd9   : > { %882 = vrot.lane.b32.xlu1 %v618_v43, %s1801_s17  ;;  %880 = vrot.lane.b32.xlu0 %v617_v44, %s1801_s17 }
  0xdb   : > { %v2232_v48 = vpop.permute.xlu0 %484  ;;  %v509_v49 = vpop.permute.xlu1 %508 }
  0xdc   : > { %v525_v58 = vsel %vm522_vm4, %v2066_v31, %v509_v49  ;;  %v498_v12 = vsel %vm492_vm5, %v483_v42, %v2232_v48 }
  0xdd   : > { %858 = vrot.lane.b32.xlu1 %v727_v50, %s1801_s17  ;;  %856 = vrot.lane.b32.xlu0 %v724_v25, %s1801_s17  ;;  %v694_v6 = vsel %vm622_vm3, %v495_v61, %v525_v58 }
  0xdf   : > { %v511_v54 = vpop.permute.xlu0 %510  ;;  %v513_v55 = vpop.permute.xlu1 %512 }
  0xe0   : > { %v526_v59 = vsel %vm522_vm4, %v509_v49, %v511_v54  ;;  %v527_v31 = vsel %vm522_vm4, %v511_v54, %v513_v55 }
  0xe1   : > { %862 = vrot.lane.b32.xlu1 %v733_v56, %s1801_s17  ;;  %860 = vrot.lane.b32.xlu0 %v730_v57, %s1801_s17  ;;  %v697_v1 = vsel %vm622_vm3, %v496_v62, %v526_v59  ;;  %v700_v19 = vsel %vm622_vm3, %v497_v26, %v527_v31 }
  0xe3   : > { %v2254_v63 = vpop.permute.xlu0 %514  ;;  %v415_v0 = vpop.permute.xlu1 %414 }
  0xe4   : > { %v528_v8 = vsel %vm522_vm4, %v513_v55, %v2254_v63  ;;  %v430_v24 = vsel %vm426_vm7, %v2070_v32, %v415_v0 }
  0xe5   : > { %838 = vrot.lane.b32.xlu1 %v697_v1, %s1801_s17  ;;  %836 = vrot.lane.b32.xlu0 %v694_v6, %s1801_s17  ;;  %v703_v18 = vsel %vm622_vm3, %v498_v12, %v528_v8 }
  0xe7   : > { %v417_v15 = vpop.permute.xlu0 %416  ;;  %v419_v17 = vpop.permute.xlu1 %418 }
  0xe8   : > { %v431_v34 = vsel %vm426_vm7, %v415_v0, %v417_v15  ;;  %v432_v35 = vsel %vm426_vm7, %v417_v15, %v419_v17 }
  0xe9   : > { %842 = vrot.lane.b32.xlu1 %v703_v18, %s1801_s17  ;;  %840 = vrot.lane.b32.xlu0 %v700_v19, %s1801_s17 }
  0xeb   : > { %v2270_v21 = vpop.permute.xlu0 %420  ;;  %v448_v22 = vpop.permute.xlu1 %447 }
  0xec   : > { %v465_v27 = vsel %vm461_vm6, %v2084_v36, %v448_v22  ;;  %v433_v39 = vsel %vm426_vm7, %v419_v17, %v2270_v21 }
  0xed   : > { %v664_v28 = vsel %vm622_vm3, %v430_v24, %v465_v27 }
  0xee   : > { %816 = vrot.lane.b32.xlu0 %v664_v28, %s1801_s17 }
  0xef   : > { %v450_v29 = vpop.permute.xlu0 %449  ;;  %v452_v30 = vpop.permute.xlu1 %451 }
  0xf0   : > { %v466_v3 = vsel %vm461_vm6, %v448_v22, %v450_v29  ;;  %v467_v37 = vsel %vm461_vm6, %v450_v29, %v452_v30 }
  0xf1   : > { %v667_v38 = vsel %vm622_vm3, %v431_v34, %v466_v3  ;;  %v670_v32 = vsel %vm622_vm3, %v432_v35, %v467_v37 }
  0xf2   : > { %818 = vrot.lane.b32.xlu1 %v667_v38, %s1801_s17  ;;  %820 = vrot.lane.b32.xlu0 %v670_v32, %s1801_s17 }
  0xf3   : > { %v2286_v36 = vpop.permute.xlu0 %453  ;;  %v385_v4 = vpop.permute.xlu1 %384 }
  0xf4   : > { %v468_v40 = vsel %vm461_vm6, %v452_v30, %v2286_v36  ;;  %v400_v42 = vsel %vm396_vm8, %v2096_v41, %v385_v4 }
  0xf5   : > { %v673_v43 = vsel %vm622_vm3, %v433_v39, %v468_v40  ;;  %v634_v44 = vsel %vm622_vm3, %v1885_v2, %v400_v42 }
  0xf6   : > { %822 = vrot.lane.b32.xlu1 %v673_v43, %s1801_s17  ;;  %796 = vrot.lane.b32.xlu0 %v634_v44, %s1801_s17 }
  0xf7   : > { %v387_v45 = vpop.permute.xlu0 %386  ;;  %v389_v46 = vpop.permute.xlu1 %388 }
  0xf8   : > { %v401_v14 = vsel %vm396_vm8, %v385_v4, %v387_v45  ;;  %v402_v47 = vsel %vm396_vm8, %v387_v45, %v389_v46 }
  0xf9   : > { %v637_v49 = vsel %vm622_vm3, %v1946_v7, %v401_v14  ;;  %v640_v41 = vsel %vm622_vm3, %v1953_v9, %v402_v47 }
  0xfa   : > { %798 = vrot.lane.b32.xlu1 %v637_v49, %s1801_s17  ;;  %800 = vrot.lane.b32.xlu0 %v640_v41, %s1801_s17 }
  0xfb   : > { %v2307_v2 = vpop.permute.xlu0 %390  ;;  %v607_v50 = vpop.permute.xlu1 %606 }
  0xfc   : > { %v403_v25 = vsel %vm396_vm8, %v389_v46, %v2307_v2  ;;  %v619_v51 = vsel %vm612_vm0, %v2134_v60, %v607_v50 }
  0xfd   : > { %v643_v52 = vsel %vm622_vm3, %v1955_v10, %v403_v25 }
  0xfe   : > { %802 = vrot.lane.b32.xlu1 %v643_v52, %s1801_s17  ;;  %884 = vrot.lane.b32.xlu0 %v619_v51, %s1801_s17 }
  0xff   : > { %v609_v7 = vpop.permute.xlu0 %608  ;;  %v611_v9 = vpop.permute.xlu1 %610 }
 0x100   : > { %v620_v20 = vsel %vm612_vm0, %v607_v50, %v609_v7  ;;  %v621_v53 = vsel %vm612_vm0, %v609_v7, %v611_v9  ;;  %v1225_v50 = vld [vmem:[%s325_s12] sm:$0xff] }
 0x101   : > { %v1257_v9 = vld [vmem:[%s331_s15] sm:$0xff] }
 0x102   : > { %886 = vrot.lane.b32.xlu1 %v620_v20, %s1801_s17  ;;  %888 = vrot.lane.b32.xlu0 %v621_v53, %s1801_s17 }
 0x103   : > { %v547_v54 = vpop.permute.xlu0 %546  ;;  %v549_v55 = vpop.permute.xlu1 %548 }
 0x104   : > { %v559_v10 = vsel %vm552_vm2, %v2168_v23, %v547_v54  ;;  %v560_v57 = vsel %vm552_vm2, %v547_v54, %v549_v55 }
 0x107   : > { %v577_v60 = vpop.permute.xlu0 %576  ;;  %v579_v56 = vpop.permute.xlu1 %578 }
 0x108   : > { %v589_v58 = vsel %vm582_vm1, %v2206_v5, %v577_v60  ;;  %v590_v59 = vsel %vm582_vm1, %v577_v60, %v579_v56 }
 0x109   : > { %v736_v61 = vsel %vm622_vm3, %v559_v10, %v589_v58  ;;  %v739_v62 = vsel %vm622_vm3, %v560_v57, %v590_v59 }
 0x10a   : > { %864 = vrot.lane.b32.xlu1 %v736_v61, %s1801_s17  ;;  %866 = vrot.lane.b32.xlu0 %v739_v62, %s1801_s17 }
 0x10b   : > { %v551_v0 = vpop.permute.xlu0 %550  ;;  %v581_v1 = vpop.permute.xlu1 %580 }
 0x10c   : > { %v561_v6 = vsel %vm552_vm2, %v549_v55, %v551_v0  ;;  %v591_v23 = vsel %vm582_vm1, %v579_v56, %v581_v1  ;;  %v1258_v55 = vld [vmem:[%s331_s15 + $0x8] sm:$0xff] }
 0x10d   : > { %v742_v31 = vsel %vm622_vm3, %v561_v6, %v591_v23 }
 0x10e   : > { %868 = vrot.lane.b32.xlu1 %v742_v31, %s1801_s17 }
 0x10f   : > { %v487_v5 = vpop.permute.xlu0 %486  ;;  %v489_v8 = vpop.permute.xlu1 %488 }
 0x110   : > { %v499_v15 = vsel %vm492_vm5, %v2232_v48, %v487_v5  ;;  %v500_v17 = vsel %vm492_vm5, %v487_v5, %v489_v8 }
 0x113   : > { %v517_v26 = vpop.permute.xlu0 %516  ;;  %v519_v12 = vpop.permute.xlu1 %518 }
 0x114   : > { %v529_v18 = vsel %vm522_vm4, %v2254_v63, %v517_v26  ;;  %v530_v19 = vsel %vm522_vm4, %v517_v26, %v519_v12  ;;  %v2397_v26 = vld [vmem:[%s2173_s22] sm:$0xff]  }
 0x115   : > { %v706_v22 = vsel %vm622_vm3, %v499_v15, %v529_v18  ;;  %v709_v24 = vsel %vm622_vm3, %v500_v17, %v530_v19 }
 0x116   : > { %844 = vrot.lane.b32.xlu0 %v706_v22, %s1801_s17  ;;  %846 = vrot.lane.b32.xlu1 %v709_v24, %s1801_s17 }
 0x117   : > { %v491_v27 = vpop.permute.xlu0 %490  ;;  %v521_v28 = vpop.permute.xlu1 %520 }
 0x118   : > { %v501_v29 = vsel %vm492_vm5, %v489_v8, %v491_v27  ;;  %v531_v48 = vsel %vm522_vm4, %v519_v12, %v521_v28 }
 0x119   : > { %v712_v30 = vsel %vm622_vm3, %v501_v29, %v531_v48 }
 0x11a   : > { %848 = vrot.lane.b32.xlu0 %v712_v30, %s1801_s17 }
 0x11b   : > { %v423_v63 = vpop.permute.xlu0 %422  ;;  %v425_v34 = vpop.permute.xlu1 %424 }
 0x11c   : > { %v434_v37 = vsel %vm426_vm7, %v2270_v21, %v423_v63  ;;  %v435_v38 = vsel %vm426_vm7, %v423_v63, %v425_v34 }
 0x11f   : > { %v456_v35 = vpop.permute.xlu0 %455  ;;  %v458_v3 = vpop.permute.xlu1 %457 }
 0x120   : > { %v469_v32 = vsel %vm461_vm6, %v2286_v36, %v456_v35  ;;  %v470_v4 = vsel %vm461_vm6, %v456_v35, %v458_v3 }
 0x121   : > { %v676_v39 = vsel %vm622_vm3, %v434_v37, %v469_v32  ;;  %v679_v40 = vsel %vm622_vm3, %v435_v38, %v470_v4 }
 0x122   : > { %824 = vrot.lane.b32.xlu1 %v676_v39, %s1801_s17  ;;  %826 = vrot.lane.b32.xlu0 %v679_v40, %s1801_s17 }
 0x123   : > { %v460_v42 = vpop.permute.xlu0 %459  ;;  %v393_v43 = vpop.permute.xlu1 %392 }
 0x124   : > { %v471_v44 = vsel %vm461_vm6, %v458_v3, %v460_v42  ;;  %v404_v21 = vsel %vm396_vm8, %v2307_v2, %v393_v43 }
 0x125   : > { %v682_v45 = vsel %vm622_vm3, %v425_v34, %v471_v44  ;;  %v646_v36 = vsel %vm622_vm3, %v1961_v11, %v404_v21 }
 0x126   : > { %828 = vrot.lane.b32.xlu1 %v682_v45, %s1801_s17  ;;  %804 = vrot.lane.b32.xlu0 %v646_v36, %s1801_s17 }
 0x127   : > { %v395_v46 = vpop.permute.xlu0 %394  ;;  %v871_v14 = vpop.permute.xlu1 %870 }
 0x128   : > { %v405_v47 = vsel %vm396_vm8, %v393_v43, %v395_v46  ;;  %v652_v49 = vsel %vm622_vm3, %v2028_v16, %v395_v46  ;;  %v1226_v16 = vld [vmem:[%s325_s12 + $0x8] sm:$0xff] }
 0x129   : > { %v649_v41 = vsel %vm622_vm3, %v2020_v13, %v405_v47 }
 0x12a   : > { %806 = vrot.lane.b32.xlu1 %v649_v41, %s1801_s17  ;;  %808 = vrot.lane.b32.xlu0 %v652_v49, %s1801_s17 }
 0x12b   : > { %v873_v11 = vpop.permute.xlu0 %872  ;;  %v875_v2 = vpop.permute.xlu1 %874 }
 0x12c   : > { %v928_v25 = vsel %vm890_vm9, %v873_v11, %v875_v2  ;;  %v927_v51 = vsel %vm890_vm9, %v871_v14, %v873_v11 }
 0x12d   : > { %1655 = vmatprep.subr.msk.bf16.mxu0 %vm622_vm3, %v928_v25  ;;  %v981_v13 = vsel %vm622_vm3, %v927_v51, 0 }
 0x12e   : > { %1017 = vmatpush1.bf16.msra.mxu0 %v981_v13  ;;  %1229 = vperm.xlu1 %1739, %v1225_v50  }
 0x12f   : > { %v853_v52 = vpop.permute.xlu0 %852  ;;  %v855_v7 = vpop.permute.xlu1 %854  ;;  %1234 = vperm.xlu0 %1740, %v1226_v16  }
 0x130   : > { %v919_v20 = vsel %vm890_vm9, %v853_v52, %v855_v7 }
 0x131   : > { %1018 = vmatprep.subr.bf16.mxu0 %v919_v20 }
 0x132   : > { %1261 = vperm.xlu1 %1739, %v1257_v9  }
 0x133   : > { %v851_v53 = vpop.permute.xlu0 %850  ;;  %v833_v54 = vpop.permute.xlu1 %832 }
 0x134   : > { %v918_v60 = vsel %vm890_vm9, %v851_v53, %v853_v52 }
 0x135   : > { %1019 = vmatpush1.bf16.msra.mxu0 %v918_v60 }
 0x136   : > { %1266 = vperm.xlu1 %1739, %v1258_v55  }
 0x137   : > { %v835_v56 = vpop.permute.xlu0 %834  ;;  %v831_v10 = vpop.permute.xlu1 %830 }
 0x138   : > { %v910_v57 = vsel %vm890_vm9, %v833_v54, %v835_v56  ;;  %v909_v58 = vsel %vm890_vm9, %v831_v10, %v833_v54 }
 0x139   : > { %1020 = vmatprep.subr.bf16.mxu0 %v910_v57 }
 0x13a   : > { %1021 = vmatpush1.bf16.msra.mxu0 %v909_v58 }
 0x13b   : > { %v813_v59 = vpop.permute.xlu0 %812  ;;  %v815_v61 = vpop.permute.xlu1 %814 }
 0x13c   : > { %v901_v62 = vsel %vm890_vm9, %v813_v59, %v815_v61 }
 0x13d   : > { %1022 = vmatprep.subr.bf16.mxu0 %v901_v62 }
 0x13f   : > { %v811_v0 = vpop.permute.xlu0 %810  ;;  %v793_v1 = vpop.permute.xlu1 %792 }
 0x140   : > { %v900_v6 = vsel %vm890_vm9, %v811_v0, %v813_v59 }
 0x141   : > { %1023 = vmatpush1.bf16.msra.mxu0 %v900_v6 }
 0x143   : > { %v2391_v23 = vpop.permute.xlu0 %794  ;;  %v791_v31 = vpop.permute.xlu1 %790 }
 0x144   : > { %v892_v5 = vsel %vm890_vm9, %v793_v1, %v2391_v23  ;;  %v891_v8 = vsel %vm890_vm9, %v791_v31, %v793_v1 }
 0x145   : > { %1024 = vmatprep.subr.bf16.mxu0 %v892_v5 }
 0x146   : > { %1025 = vmatpush1.bf16.msra.mxu0 %v891_v8 }
 0x147   : > { %v877_v12 = vpop.permute.xlu0 %876  ;;  %v879_v15 = vpop.permute.xlu1 %878 }
 0x148   : > { %v930_v17 = vsel %vm890_vm9, %v877_v12, %v879_v15  ;;  %v929_v18 = vsel %vm890_vm9, %v875_v2, %v877_v12 }
 0x149   : > { %1657 = vmatprep.subr.msk.bf16.mxu1 %vm622_vm3, %v930_v17  ;;  %v987_v19 = vsel %vm622_vm3, %v929_v18, 0  ;;  %1656 = vmatmul.mubr.msk.bf16.vlgmr.msra.gmra.mxu0 %vm976_vm10, %v2397_v26 }
 0x14a   : > { %1060 = vmatpush1.bf16.msra.mxu1 %v987_v19  ;;  %1128 = vmatprep.mubr.bf16.mxu0 %v1802_v33 }
 0x14b   : > { %v881_v22 = vpop.permute.xlu0 %880  ;;  %v883_v24 = vpop.permute.xlu1 %882 }
 0x14c   : > { %v931_v27 = vsel %vm890_vm9, %v879_v15, %v881_v22  ;;  %v932_v28 = vsel %vm890_vm9, %v881_v22, %v883_v24 }
 0x14d   : > { %v993_v29 = vsel %vm622_vm3, %v931_v27, 0  ;;  %1659 = vmatprep.subr.msk.bf16.mxu0 %vm622_vm3, %v932_v28 }
 0x14e   : > { %1103 = vmatpush1.bf16.msra.mxu0 %v993_v29 }
 0x14f   : > { %v857_v48 = vpop.permute.xlu0 %856  ;;  %v859_v30 = vpop.permute.xlu1 %858 }
 0x150   : > { %v921_v63 = vsel %vm890_vm9, %v857_v48, %v859_v30  ;;  %v920_v34 = vsel %vm890_vm9, %v855_v7, %v857_v48 }
 0x151   : > { %1061 = vmatprep.subr.bf16.mxu1 %v921_v63  ;;  %v1355_v63 = vlaneseq }
 0x152   : > { %1062 = vmatpush1.bf16.msra.mxu1 %v920_v34 }
 0x153   : > { %v861_v35 = vpop.permute.xlu0 %860  ;;  %v863_v3 = vpop.permute.xlu1 %862  ;;  %v2456_v34 = vshrl.u32 %v1355_v63, 7 }
 0x154   : > { %v922_v37 = vsel %vm890_vm9, %v859_v30, %v861_v35  ;;  %v923_v38 = vsel %vm890_vm9, %v861_v35, %v863_v3 }
 0x155   : > { %1104 = vmatprep.subr.bf16.mxu0 %v923_v38  ;;  %v1381_v35 = vsub.s32 6, %v2456_v34  ;;  %v1385_v38 = vsub.s32 7, %v2456_v34 }
 0x156   : > { %1105 = vmatpush1.bf16.msra.mxu0 %v922_v37 }
 0x157   : > { %v837_v32 = vpop.permute.xlu0 %836  ;;  %v839_v4 = vpop.permute.xlu1 %838 }
 0x158   : > { %v912_v39 = vsel %vm890_vm9, %v837_v32, %v839_v4  ;;  %v911_v40 = vsel %vm890_vm9, %v835_v56, %v837_v32 }
 0x159   : > { %1063 = vmatprep.subr.bf16.mxu1 %v912_v39 }
 0x15a   : > { %1064 = vmatpush1.bf16.msra.mxu1 %v911_v40  ;;  %v1357_v40 = vsub.s32 0, %v2456_v34 }
 0x15b   : > { %v841_v42 = vpop.permute.xlu0 %840  ;;  %v843_v43 = vpop.permute.xlu1 %842 }
 0x15c   : > { %v913_v44 = vsel %vm890_vm9, %v839_v4, %v841_v42  ;;  %v914_v21 = vsel %vm890_vm9, %v841_v42, %v843_v43 }
 0x15d   : > { %1106 = vmatprep.subr.bf16.mxu0 %v914_v21  ;;  %v2484_v21 = vstv %s1289_s18 }
 0x15e   : > { %1107 = vmatpush1.bf16.msra.mxu0 %v913_v44 }
 0x160   : > { %v817_v45 = vpop.permute.xlu0 %816 }
 0x161   : > { %v902_v47 = vsel %vm890_vm9, %v815_v61, %v817_v45 }
 0x164   : > { %v821_v36 = vpop.permute.xlu0 %820  ;;  %v819_v46 = vpop.permute.xlu1 %818 }
 0x165   : > { %v903_v14 = vsel %vm890_vm9, %v817_v45, %v819_v46  ;;  %v904_v2 = vsel %vm890_vm9, %v819_v46, %v821_v36  ;;  %v1361_v45 = vsub.s32 1, %v2456_v34 }
 0x166   : > { %1065 = vmatprep.subr.bf16.mxu1 %v903_v14 }
 0x167   : > { %1066 = vmatpush1.bf16.msra.mxu1 %v902_v47 }
 0x168   : > { %v797_v49 = vpop.permute.xlu0 %796  ;;  %v823_v41 = vpop.permute.xlu1 %822 }
 0x169   : > { %v905_v11 = vsel %vm890_vm9, %v821_v36, %v823_v41  ;;  %v893_v16 = vsel %vm890_vm9, %v2391_v23, %v797_v49 }
 0x16a   : > { %1108 = vmatprep.subr.bf16.mxu0 %v905_v11 }
 0x16b   : > { %1109 = vmatpush1.bf16.msra.mxu0 %v904_v2 }
 0x16c   : > { %v801_v50 = vpop.permute.xlu0 %800  ;;  %v799_v25 = vpop.permute.xlu1 %798 }
 0x16d   : > { %v894_v51 = vsel %vm890_vm9, %v797_v49, %v799_v25  ;;  %v895_v9 = vsel %vm890_vm9, %v799_v25, %v801_v50 }
 0x16e   : > { %1067 = vmatprep.subr.bf16.mxu1 %v894_v51 }
 0x16f   : > { %1068 = vmatpush1.bf16.msra.mxu1 %v893_v16 }
 0x170   : > { %v885_v13 = vpop.permute.xlu0 %884  ;;  %v803_v52 = vpop.permute.xlu1 %802 }
 0x171   : > { %v896_v7 = vsel %vm890_vm9, %v801_v50, %v803_v52  ;;  %v933_v20 = vsel %vm890_vm9, %v883_v24, %v885_v13 }
 0x172   : > { %1110 = vmatprep.subr.bf16.mxu0 %v896_v7  ;;  %1658 = vmatmul.mubr.msk.bf16.vlgmr.msra.gmra.mxu1 %vm976_vm10, %v2397_v26  ;;  %v999_v56 = vsel %vm622_vm3, %v933_v20, 0 }
 0x173   : > { %1111 = vmatpush1.bf16.msra.mxu0 %v895_v9  ;;  %1171 = vmatprep.mubr.bf16.mxu1 %v1802_v33 }
 0x174   : > { %v889_v53 = vpop.permute.xlu0 %888  ;;  %v887_v54 = vpop.permute.xlu1 %886 }
 0x175   : > { %v934_v55 = vsel %vm890_vm9, %v885_v13, %v887_v54  ;;  %v935_v60 = vsel %vm890_vm9, %v887_v54, %v889_v53  ;;  %1663 = vmatprep.subr.msk.bf16.mxu0 %vm622_vm3, %v889_v53 }
 0x176   : > { %v1005_v10 = vsel %vm622_vm3, %v935_v60, 0  ;;  %1661 = vmatprep.subr.msk.bf16.mxu1 %vm622_vm3, %v934_v55  ;;  %1660 = vmatmul.mubr.msk.bf16.vlgmr.msra.gmra.mxu0 %vm976_vm10, %v2397_v26 }
 0x177   : > { %1146 = vmatpush1.bf16.msra.mxu1 %v999_v56  ;;  %1189 = vmatpush1.bf16.msra.mxu0 %v1005_v10 }
 0x178   : > { %1214 = vmatprep.mubr.bf16.mxu0 %v1802_v33 }
 0x17c   : > { %v867_v57 = vpop.permute.xlu0 %866  ;;  %v865_v58 = vpop.permute.xlu1 %864 }
 0x17d   : > { %v924_v59 = vsel %vm890_vm9, %v863_v3, %v865_v58  ;;  %v925_v61 = vsel %vm890_vm9, %v865_v58, %v867_v57  ;;  %v2462_v3 = vld [vmem:[%s2612_s4] sm:$0xff] }
 0x17e   : > { %1147 = vmatprep.subr.bf16.mxu1 %v925_v61  ;;  %v2465_v37 = vrot.slane %v2462_v3, %v1381_v35  ;;  %v2469_v32 = vrot.slane %v2462_v3, %v1385_v38  ;;  %v1358_v47 = vrot.slane %v2462_v3, %v1357_v40  ;;  %v1362_v50 = vrot.slane %v2462_v3, %v1361_v45 }
 0x17f   : > { %1148 = vmatpush1.bf16.msra.mxu1 %v924_v59  ;;  %v1365_v61 = vsub.s32 2, %v2456_v34 }
 0x180   : > { %v869_v62 = vpop.permute.xlu1 %868 }
 0x181   : > { %v926_v0 = vsel %vm890_vm9, %v867_v57, %v869_v62  ;;  %1190 = vmatprep.subr.bf16.mxu0 %v869_v62 }
 0x182   : > { %1191 = vmatpush1.bf16.msra.mxu0 %v926_v0  ;;  %v1373_v0 = vsub.s32 4, %v2456_v34 }
 0x188   : > { %v845_v1 = vpop.permute.xlu0 %844  ;;  %v847_v6 = vpop.permute.xlu1 %846 }
 0x189   : > { %v915_v23 = vsel %vm890_vm9, %v843_v43, %v845_v1  ;;  %v916_v31 = vsel %vm890_vm9, %v845_v1, %v847_v6 }
 0x18a   : > { %1149 = vmatprep.subr.bf16.mxu1 %v916_v31 }
 0x18b   : > { %1150 = vmatpush1.bf16.msra.mxu1 %v915_v23  ;;  %v1377_v23 = vsub.s32 5, %v2456_v34 }
 0x18c   : > { %v849_v5 = vpop.permute.xlu0 %848 }
 0x18d   : > { %v917_v8 = vsel %vm890_vm9, %v847_v6, %v849_v5  ;;  %1192 = vmatprep.subr.bf16.mxu0 %v849_v5  ;;  %v1369_v6 = vsub.s32 3, %v2456_v34 }
 0x18e   : > { %1193 = vmatpush1.bf16.msra.mxu0 %v917_v8  ;;  %v1366_v8 = vrot.slane %v2462_v3, %v1365_v61 }
 0x194   : > { %v827_v12 = vpop.permute.xlu0 %826  ;;  %v825_v15 = vpop.permute.xlu1 %824 }
 0x195   : > { %v906_v17 = vsel %vm890_vm9, %v823_v41, %v825_v15  ;;  %v907_v18 = vsel %vm890_vm9, %v825_v15, %v827_v12 }
 0x196   : > { %1151 = vmatprep.subr.bf16.mxu1 %v907_v18 }
 0x197   : > { %1152 = vmatpush1.bf16.msra.mxu1 %v906_v17 }
 0x198   : > { %v805_v19 = vpop.permute.xlu0 %804  ;;  %v829_v22 = vpop.permute.xlu1 %828 }
 0x199   : > { %v908_v24 = vsel %vm890_vm9, %v827_v12, %v829_v22  ;;  %1194 = vmatprep.subr.bf16.mxu0 %v829_v22  ;;  %v897_v30 = vsel %vm890_vm9, %v803_v52, %v805_v19  ;;  %v1374_v22 = vrot.slane %v2462_v3, %v1373_v0 }
 0x19a   : > { %1195 = vmatpush1.bf16.msra.mxu0 %v908_v24  ;;  %v1370_v24 = vrot.slane %v2462_v3, %v1369_v6 }
 0x19c   : > { %v809_v27 = vpop.permute.xlu0 %808  ;;  %v807_v28 = vpop.permute.xlu1 %806 }
 0x19d   : > { %v899_v29 = vsel %vm890_vm9, %v807_v28, %v809_v27  ;;  %1196 = vmatprep.subr.bf16.mxu0 %v809_v27  ;;  %v898_v48 = vsel %vm890_vm9, %v805_v19, %v807_v28  ;;  %v1378_v28 = vrot.slane %v2462_v3, %v1377_v23 }
 0x19e   : > { %1153 = vmatprep.subr.bf16.mxu1 %v898_v48  ;;  %1197 = vmatpush1.bf16.msra.mxu0 %v899_v29 }
 0x19f   : > { %1154 = vmatpush1.bf16.msra.mxu1 %v897_v30 }
 0x1a1   : > { %1664 = vmatmul.mubr.msk.bf16.vlgmr.msra.gmra.mxu0 %vm976_vm10, %v2397_v26 }
 0x1a2   : > { %1662 = vmatmul.mubr.msk.bf16.vlgmr.msra.gmra.mxu1 %vm976_vm10, %v2397_v26 }
 0x1a9   : > { %v2476_v26 = vpop.permute.xlu1 %1229 }
 0x1aa   : > { %v2482_v44 = vpop.permute.xlu0 %1234 }
 0x1ad   : > { %v2478_v4 = vpop.permute.xlu1 %1261 }
 0x1b1   : > { %v2489_v14 = vpop.permute.xlu1 %1266 }
 0x209   : > { %v1044_v39 = vpop.f32.mrf.mxu0 }
 0x20a   : > { %v1237_v42 = vmul.f32 %v2476_v26, %v1044_v39 }
 0x20b   : > { %v1046_v43 = vpop.f32.mrf.mxu0 }
 0x20c   : > { %v1238_v36 = vmul.f32 %v2476_v26, %v1046_v43  ;;  %v1269_v33 = vadd.f32 %v2478_v4, %v1237_v42 }
 0x20d   : > { %v1048_v46 = vpop.f32.mrf.mxu0 }
 0x20e   : > { %v1247_v49 = vmul.f32 %v2482_v44, %v1048_v46  ;;  %vm1290_vm14 = vcmp.ge.f32.partialorder %v1269_v33, 0.0  ;;  %v1311_v41 = vmul.f32 %v2484_v21, %v1269_v33  ;;  %v1270_v11 = vadd.f32 %v2478_v4, %v1238_v36 }
 0x20f   : > { %v1050_v2 = vpop.f32.mrf.mxu0 }
 0x210   : > { %v1248_v25 = vmul.f32 %v2482_v44, %v1050_v2  ;;  %v1279_v51 = vadd.f32 %v2489_v14, %v1247_v49  ;;  %v1331_v16 = vsel %vm1290_vm14, %v1269_v33, %v1311_v41  ;;  %vm1291_vm15 = vcmp.ge.f32.partialorder %v1270_v11, 0.0 }
 0x211   : > { %v1312_v13 = vmul.f32 %v2484_v21, %v1270_v11  ;;  %v1405_v7 = vmul.f32 %v1358_v47, %v1331_v16 }
 0x212   : > { %vm1300_vm0 = vcmp.ge.f32.partialorder %v1279_v51, 0.0  ;;  %v1321_v52 = vmul.f32 %v2484_v21, %v1279_v51  ;;  %v1280_v9 = vadd.f32 %v2489_v14, %v1248_v25 }
 0x213   : > { %v1332_v20 = vsel %vm1291_vm15, %v1270_v11, %v1312_v13 }
 0x214   : > { %v1341_v53 = vsel %vm1300_vm0, %v1279_v51, %v1321_v52  ;;  %vm1301_vm1 = vcmp.ge.f32.partialorder %v1280_v9, 0.0  ;;  %v1322_v54 = vmul.f32 %v2484_v21, %v1280_v9  ;;  %v1406_v55 = vmul.f32 %v1362_v50, %v1332_v20  ;;  %vm2571_vm0 = vmor %vm1428_vm12, %vm622_vm3 }
 0x215   : > { %v1415_v60 = vmul.f32 %v1358_v47, %v1341_v53 }
 0x216   : > { %v1342_v56 = vsel %vm1301_vm1, %v1280_v9, %v1322_v54  ;;  %v1677_v10 = vpack.c.bf16 %v1406_v55, %v1405_v7 }
 0x217   : > { %v1416_v57 = vmul.f32 %v1362_v50, %v1342_v56 }
 0x218   : > { %1492 = vst [vmem:[%s2200_s24 + $0x4] sm:$0xff] %v1677_v10 }
 0x219   : > { %v1682_v58 = vpack.c.bf16 %v1416_v57, %v1415_v60 }
 0x21b   : > { %1498 = vst [vmem:[%s2200_s24 + $0x34] sm:$0xff] %v1682_v58 }
 0x232   : > { %v1087_v59 = vpop.f32.mrf.mxu1 }
 0x233   : > { %v1239_v62 = vmul.f32 %v2476_v26, %v1087_v59 }
 0x234   : > { %v1089_v1 = vpop.f32.mrf.mxu1 }
 0x235   : > { %v1271_v31 = vadd.f32 %v2478_v4, %v1239_v62  ;;  %v1240_v5 = vmul.f32 %v2476_v26, %v1089_v1 }
 0x236   : > { %v1130_v12 = vpop.f32.mrf.mxu0  ;;  %v1091_v15 = vpop.f32.mrf.mxu1 }
 0x237   : > { %vm1292_vm2 = vcmp.ge.f32.partialorder %v1271_v31, 0.0  ;;  %v1313_v17 = vmul.f32 %v2484_v21, %v1271_v31  ;;  %v1241_v18 = vmul.f32 %v2476_v26, %v1130_v12  ;;  %v1272_v19 = vadd.f32 %v2478_v4, %v1240_v5  ;;  %v1352_v5 = vld [vmem:[%s2612_s4 + $0x8] sm:$0x3] }
 0x238   : > { %v1132_v27 = vpop.f32.mrf.mxu0  ;;  %v1249_v29 = vmul.f32 %v2482_v44, %v1091_v15  ;;  %v1093_v48 = vpop.f32.mrf.mxu1 }
 0x239   : > { %v1333_v30 = vsel %vm1292_vm2, %v1271_v31, %v1313_v17  ;;  %v1273_v63 = vadd.f32 %v2478_v4, %v1241_v18  ;;  %vm1293_vm4 = vcmp.ge.f32.partialorder %v1272_v19, 0.0  ;;  %v1314_v35 = vmul.f32 %v2484_v21, %v1272_v19 }
 0x23a   : > { %v1407_v38 = vmul.f32 %v1366_v8, %v1333_v30  ;;  %v1242_v39 = vmul.f32 %v2476_v26, %v1132_v27  ;;  %v1281_v42 = vadd.f32 %v2489_v14, %v1249_v29  ;;  %v1134_v43 = vpop.f32.mrf.mxu0  ;;  %v1250_v36 = vmul.f32 %v2482_v44, %v1093_v48 }
 0x23b   : > { %vm1294_vm5 = vcmp.ge.f32.partialorder %v1273_v63, 0.0  ;;  %v1315_v3 = vmul.f32 %v2484_v21, %v1273_v63  ;;  %v1334_v33 = vsel %vm1293_vm4, %v1272_v19, %v1314_v35  ;;  %v1251_v46 = vmul.f32 %v2482_v44, %v1134_v43 }
 0x23c   : > { %v1408_v47 = vmul.f32 %v1370_v24, %v1334_v33  ;;  %v1274_v49 = vadd.f32 %v2478_v4, %v1242_v39  ;;  %vm1302_vm6 = vcmp.ge.f32.partialorder %v1281_v42, 0.0  ;;  %v1323_v41 = vmul.f32 %v2484_v21, %v1281_v42  ;;  %v1136_v11 = vpop.f32.mrf.mxu0 }
 0x23d   : > { %v1335_v2 = vsel %vm1294_vm5, %v1273_v63, %v1315_v3  ;;  %v1283_v50 = vadd.f32 %v2489_v14, %v1251_v46  ;;  %v1282_v25 = vadd.f32 %v2489_v14, %v1250_v36  ;;  %v1252_v51 = vmul.f32 %v2482_v44, %v1136_v11 }
 0x23e   : > { %v1409_v16 = vmul.f32 %v1374_v22, %v1335_v2  ;;  %v1678_v13 = vpack.c.bf16 %v1408_v47, %v1407_v38  ;;  %vm1295_vm7 = vcmp.ge.f32.partialorder %v1274_v49, 0.0  ;;  %v1316_v52 = vmul.f32 %v2484_v21, %v1274_v49 }
 0x23f   : > { %v1343_v7 = vsel %vm1302_vm6, %v1281_v42, %v1323_v41  ;;  %vm1304_vm8 = vcmp.ge.f32.partialorder %v1283_v50, 0.0  ;;  %v1325_v9 = vmul.f32 %v2484_v21, %v1283_v50  ;;  %vm1303_vm9 = vcmp.ge.f32.partialorder %v1282_v25, 0.0 }
 0x240   : > { %1493 = vst [vmem:[%s2200_s24 + $0xc] sm:$0xff] %v1678_v13  ;;  %v1336_v20 = vsel %vm1295_vm7, %v1274_v49, %v1316_v52  ;;  %v1324_v53 = vmul.f32 %v2484_v21, %v1282_v25  ;;  %v1284_v54 = vadd.f32 %v2489_v14, %v1252_v51  ;;  %v1417_v60 = vmul.f32 %v1366_v8, %v1343_v7 }
 0x241   : > { %v1410_v55 = vmul.f32 %v1378_v28, %v1336_v20  ;;  %v1345_v56 = vsel %vm1304_vm8, %v1283_v50, %v1325_v9  ;;  %v1394_v27 = vrot.slane %v1352_v5, %v1361_v45 }
 0x242   : > { %v1344_v10 = vsel %vm1303_vm9, %v1282_v25, %v1324_v53  ;;  %vm1305_vm10 = vcmp.ge.f32.partialorder %v1284_v54, 0.0  ;;  %v1326_v57 = vmul.f32 %v2484_v21, %v1284_v54  ;;  %v1419_v59 = vmul.f32 %v1374_v22, %v1345_v56 }
 0x243   : > { %v1679_v58 = vpack.c.bf16 %v1410_v55, %v1409_v16  ;;  %v1418_v61 = vmul.f32 %v1370_v24, %v1344_v10  ;;  %v1390_v22 = vrot.slane %v1352_v5, %v1357_v40 }
 0x244   : > { %v1346_v62 = vsel %vm1305_vm10, %v1284_v54, %v1326_v57 }
 0x245   : > { %1494 = vst [vmem:[%s2200_s24 + $0x14] sm:$0xff] %v1679_v58  ;;  %v1683_v0 = vpack.c.bf16 %v1418_v61, %v1417_v60  ;;  %v1420_v1 = vmul.f32 %v1378_v28, %v1346_v62 }
 0x247   : > { %1499 = vst [vmem:[%s2200_s24 + $0x3c] sm:$0xff] %v1683_v0  ;;  %v1684_v6 = vpack.c.bf16 %v1420_v1, %v1419_v59 }
 0x249   : > { %1500 = vst [vmem:[%s2200_s24 + $0x44] sm:$0xff] %v1684_v6 }
 0x261   : > { %v1216_v23 = vpop.f32.mrf.mxu0 }
 0x262   : > { %v1245_v31 = vmul.f32 %v2476_v26, %v1216_v23  ;;  %v1173_v8 = vpop.f32.mrf.mxu1 }
 0x263   : > { %v1243_v12 = vmul.f32 %v2476_v26, %v1173_v8  ;;  %v1218_v15 = vpop.f32.mrf.mxu0 }
 0x264   : > { %v1277_v17 = vadd.f32 %v2478_v4, %v1245_v31  ;;  %v1246_v18 = vmul.f32 %v2476_v26, %v1218_v15  ;;  %v1175_v19 = vpop.f32.mrf.mxu1 }
 0x265   : > { %v1275_v24 = vadd.f32 %v2478_v4, %v1243_v12  ;;  %v1244_v28 = vmul.f32 %v2476_v26, %v1175_v19  ;;  %v1220_v29 = vpop.f32.mrf.mxu0 }
 0x266   : > { %vm1298_vm11 = vcmp.ge.f32.partialorder %v1277_v17, 0.0  ;;  %v1319_v48 = vmul.f32 %v2484_v21, %v1277_v17  ;;  %v1278_v30 = vadd.f32 %v2478_v4, %v1246_v18  ;;  %v1255_v63 = vmul.f32 %v2482_v44, %v1220_v29  ;;  %v1177_v35 = vpop.f32.mrf.mxu1 }
 0x267   : > { %vm1296_vm13 = vcmp.ge.f32.partialorder %v1275_v24, 0.0  ;;  %v1317_v38 = vmul.f32 %v2484_v21, %v1275_v24  ;;  %v1276_v40 = vadd.f32 %v2478_v4, %v1244_v28  ;;  %v1253_v39 = vmul.f32 %v2482_v44, %v1177_v35  ;;  %v1222_v42 = vpop.f32.mrf.mxu0 }
 0x268   : > { %v1339_v34 = vsel %vm1298_vm11, %v1277_v17, %v1319_v48  ;;  %vm1299_vm14 = vcmp.ge.f32.partialorder %v1278_v30, 0.0  ;;  %v1320_v26 = vmul.f32 %v2484_v21, %v1278_v30  ;;  %v1287_v45 = vadd.f32 %v2489_v14, %v1255_v63  ;;  %v1179_v3 = vpop.f32.mrf.mxu1 }
 0x269   : > { %v1337_v43 = vsel %vm1296_vm13, %v1275_v24, %v1317_v38  ;;  %vm1297_vm15 = vcmp.ge.f32.partialorder %v1276_v40, 0.0  ;;  %v1318_v36 = vmul.f32 %v2484_v21, %v1276_v40  ;;  %v1413_v33 = vmul.f32 %v1390_v22, %v1339_v34 }
 0x26a   : > { %v1340_v46 = vsel %vm1299_vm14, %v1278_v30, %v1320_v26  ;;  %v1285_v4 = vadd.f32 %v2489_v14, %v1253_v39  ;;  %v1256_v41 = vmul.f32 %v2482_v44, %v1222_v42  ;;  %v1411_v11 = vmul.f32 %v2465_v37, %v1337_v43 }
 0x26b   : > { %v1414_v47 = vmul.f32 %v1394_v27, %v1340_v46  ;;  %v1338_v49 = vsel %vm1297_vm15, %v1276_v40, %v1318_v36  ;;  %v1329_v25 = vmul.f32 %v2484_v21, %v1287_v45  ;;  %v1254_v51 = vmul.f32 %v2482_v44, %v1179_v3 }
 0x26c   : > { %v1412_v50 = vmul.f32 %v2469_v32, %v1338_v49  ;;  %vm1308_vm1 = vcmp.ge.f32.partialorder %v1287_v45, 0.0  ;;  %v1327_v13 = vmul.f32 %v2484_v21, %v1285_v4  ;;  %vm1306_vm2 = vcmp.ge.f32.partialorder %v1285_v4, 0.0 }
 0x26d   : > { %v1681_v16 = vpack.c.bf16 %v1414_v47, %v1413_v33  ;;  %v1288_v7 = vadd.f32 %v2489_v14, %v1256_v41  ;;  %v1286_v9 = vadd.f32 %v2489_v14, %v1254_v51  ;;  %v1349_v20 = vsel %vm1308_vm1, %v1287_v45, %v1329_v25 }
 0x26e   : > { %v1680_v52 = vpack.c.bf16 %v1412_v50, %v1411_v11  ;;  %v1347_v53 = vsel %vm1306_vm2, %v1285_v4, %v1327_v13  ;;  %v1423_v60 = vmul.f32 %v1390_v22, %v1349_v20 }
 0x26f   : > { %1497 = vst.msk [vmem:[%s2200_s24 + $0x24] sm:$0xff] %vm2571_vm0, %v1681_v16  ;;  %vm1309_vm3 = vcmp.ge.f32.partialorder %v1288_v7, 0.0  ;;  %v1330_v44 = vmul.f32 %v2484_v21, %v1288_v7  ;;  %vm1307_vm12 = vcmp.ge.f32.partialorder %v1286_v9, 0.0  ;;  %v1328_v54 = vmul.f32 %v2484_v21, %v1286_v9 }
 0x270   : > { %1495 = vst [vmem:[%s2200_s24 + $0x1c] sm:$0xff] %v1680_v52  ;;  %v1421_v14 = vmul.f32 %v2465_v37, %v1347_v53 }
 0x271   : > { %v1350_v55 = vsel %vm1309_vm3, %v1288_v7, %v1330_v44  ;;  %v1348_v10 = vsel %vm1307_vm12, %v1286_v9, %v1328_v54 }
 0x272   : > { %v1424_v56 = vmul.f32 %v1394_v27, %v1350_v55  ;;  %v1422_v57 = vmul.f32 %v2469_v32, %v1348_v10 }
 0x274   : > { %v1686_v58 = vpack.c.bf16 %v1424_v56, %v1423_v60  ;;  %v1685_v59 = vpack.c.bf16 %v1422_v57, %v1421_v14 }
 0x276   : > { %1502 = vst.msk [vmem:[%s2200_s24 + $0x54] sm:$0xff] %vm2571_vm0, %v1686_v58  ;;  %1501 = vst [vmem:[%s2200_s24 + $0x4c] sm:$0xff] %v1685_v59 }
 0x277 PF: > { %s17_s27 = sadd.s32 1, %s1791_s27   ;;  %s2617_s23 = smov %s1783_s25 }
 0x278   : > { %p14_p7 = scmp.ge.s32.totalorder %s17_s27, 6   ;;  %s2618_s24 = smov %s1787_s26 }
 0x279   : > { %s2619_s25 = smov %s2622_s5  ;;  %s2620_s26 = smov %s2626_s28 }
 0x27a   :  { %16 = sbr.rel (!%p14_p7) target bundleno = 3 (0x3), region = 83 }

// kernel: srresnet_forward.13
= control target key start
LH: loop header
LB: loop body
LE: loop exit
PB: predicated region body
PF: predicated region fallthrough
CT: control target
= control target key end

     0   :  { %s1950_s15 = smov 0   ;;  %s1952_s16 = smov 0   ;;  %s2277_s0 = inlined_call_operand.vmem [shape: bf16[2,8,4612], index: 0, kind: input, shape index: {}]   ;;  %s2278_s1 = inlined_call_operand.vmem [shape: bf16[3,8], index: 1, kind: input, shape index: {}]   ;;  %s2279_s2 = inlined_call_operand.vmem [shape: f32[3,1], index: 2, kind: input, shape index: {}]   ;;  %s2280_s3 = inlined_call_operand.vmem [shape: f32[3,1], index: 3, kind: input, shape index: {}]   ;;  %s2281_s4 = inlined_call_operand.vmem [shape: bf16[2,3,4612], index: 4, kind: output, shape index: {}]  }
   0x1   :  { %s1954_s17 = smov 0  }
   0x2 LB: > { %s26_s18 = sadd.s32 1, %s1915_s16  ;;  %p1731_p0 = scmp.ge.s32.totalorder %s1919_s17, 1  ;;  %s1919_s17 = sphi %s1954_s17, %s14_s17   ;;  %s1915_s16 = sphi %s1952_s16, %s2291_s16   ;;  %s1911_s15 = sphi %s1950_s15, %s2290_s15  }
   0x3   : > { %p28_p1 = scmp.ge.s32.totalorder %s26_s18, 2  ;;  %p203_p2 = scmp.lt.s32.totalorder %s1919_s17, 3 }
   0x5   : > { %s2293_s18 = smov (%p28_p1, %s26_s18), 0  ;;  %p204_p3 = pnand %p1731_p0, %p203_p2 }
   0x6   : > { %p245_p4 = scmp.lt.s32.totalorder (!%p204_p3), %s1911_s15, 1 }
   0x7   : > { %207 = sbr.rel (%p204_p3) target bundleno = 294 (0x126), region = 36 }
   0xc   : > { %v1921_v0 = vmov 0   ;;  %v1226_v1 = vld [vmem:[%s2279_s2] sm:$0x7]  ;;  %s2295_s15 = smov (!%p245_p4, %s1911_s15), 1  ;;  %vm383_vm0 = vcmask 1043456   ;;  %vm379_vm1 = vcmask 64512  }
   0xd   : > { %521 = vmatprep.mubr.bf16.mxu0 %v1921_v0  ;;  %562 = vmatprep.mubr.bf16.mxu1 %v1921_v0  ;;  %s1831_s21 = smul.u32 148, %s2295_s15  ;;  %v1267_v2 = vld [vmem:[%s2280_s3] sm:$0x7]  ;;  %vm1923_vm2 = vmmov 0   ;;  %vm1308_vm3 = vcmask 1041408   ;;  %vm1554_vm7 = vcmask 1043458  }
   0xe   : > { %1861 = vset.pattern.permute.xlu0 %v1921_v0  ;;  %v1999_v19 = vld [vmem:[%s2278_s1] sm:$0x3]  ;;  %vm1309_vm4 = vsmask.f32 1280  ;;  %vm1317_vm5 = vsmask.f32 3328 }
   0xf   : > { %1229 = vperm.xlu0 %1861, %v1226_v1   ;;  %s1983_s26 = scalar_lea.vmem %s2277_s0, %s1831_s21  ;;  %vm2094_vm6 = vmand %vm1308_vm3, %vm1309_vm4  ;;  %s1832_s29 = smul.u32 74, %s2295_s15  ;;  %vm1314_vm10 = vcmask 1041440   ;;  %vm1316_vm11 = vcmask 27650   ;;  %vm1558_vm15 = vsmask.f32 5376  ;;  %vm1557_vm3 = vcmask 1045508  }
  0x10   : > { %v273_v3 = vld [vmem:[%s1983_s26 + $0x8] sm:$0xff]  ;;  %v274_v4 = vld [vmem:[%s1983_s26 + $0x10] sm:$0xff]  ;;  %v1865_v8 = vld [vmem:[%s1983_s26 + $0x4] ss:$0 sps:$4 sm:$0xff]  }
  0x11   : > { %v1735_v5 = vcombine.low %v273_v3, %v273_v3  ;;  %v1737_v6 = vcombine.low %v274_v4, %v274_v4  ;;  %v1738_v7 = vcombine.high %v274_v4, %v274_v4  ;;  %v1736_v9 = vcombine.high %v273_v3, %v273_v3  ;;  %v275_v10 = vld [vmem:[%s1983_s26 + $0x18] sm:$0xff]  ;;  %v276_v11 = vld [vmem:[%s1983_s26 + $0x20] sm:$0xff]  ;;  %v277_v17 = vld [vmem:[%s1983_s26 + $0x28] sm:$0xff]  ;;  %s2110_s6 = scalar_lea.vmem %s2281_s4, %s1832_s29 }
  0x12   : > { %v1739_v12 = vcombine.low %v275_v10, %v275_v10  ;;  %v1741_v13 = vcombine.low %v276_v11, %v276_v11  ;;  %v1740_v14 = vcombine.high %v275_v10, %v275_v10  ;;  %v385_v15 = vsel %vm383_vm0, %v1865_v8, 0  ;;  %v278_v18 = vld [vmem:[%s1983_s26 + $0x30] sm:$0xff]  ;;  %v279_v26 = vld [vmem:[%s1983_s26 + $0x38] sm:$0xff]  ;;  %v280_v27 = vld [vmem:[%s1983_s26 + $0x40] sm:$0xff] }
  0x13   : > { %1270 = vperm.xlu0 %1861, %v1267_v2   ;;  %1769 = vmatprep.subr.msk.bf16.mxu0 %vm383_vm0, %v1735_v5  ;;  %v391_v16 = vsel %vm383_vm0, %v1736_v9, 0  ;;  %v397_v20 = vsel %vm383_vm0, %v1738_v7, 0  ;;  %v1743_v22 = vcombine.low %v277_v17, %v277_v17  ;;  %v1745_v23 = vcombine.low %v278_v18, %v278_v18  ;;  %v281_v34 = vld [vmem:[%s1983_s26 + $0x48] sm:$0xff]  ;;  %v282_v35 = vld [vmem:[%s1983_s26 + $0x50] sm:$0xff]  ;;  %v283_v42 = vld [vmem:[%s1983_s26 + $0x58] sm:$0xff] }
  0x14   : > { %1771 = vmatprep.subr.msk.bf16.mxu1 %vm383_vm0, %v1737_v6  ;;  %504 = vmatpush1.bf16.msra.mxu0 %v385_v15  ;;  %v403_v21 = vsel %vm383_vm0, %v1740_v14, 0  ;;  %v1742_v24 = vcombine.high %v276_v11, %v276_v11  ;;  %v1744_v25 = vcombine.high %v277_v17, %v277_v17  ;;  %v1747_v30 = vcombine.low %v279_v26, %v279_v26  ;;  %v284_v43 = vld [vmem:[%s1983_s26 + $0x60] sm:$0xff]  ;;  %v285_v50 = vld [vmem:[%s1983_s26 + $0x68] sm:$0xff]  ;;  %v286_v51 = vld [vmem:[%s1983_s26 + $0x70] sm:$0xff] }
  0x15   : > { %545 = vmatpush1.bf16.msra.mxu1 %v391_v16  ;;  %1773 = vmatprep.subr.msk.bf16.mxu0 %vm383_vm0, %v1739_v12  ;;  %v1749_v31 = vcombine.low %v280_v27, %v280_v27  ;;  %v1746_v32 = vcombine.high %v278_v18, %v278_v18  ;;  %v1748_v33 = vcombine.high %v279_v26, %v279_v26  ;;  %v287_v58 = vld [vmem:[%s1983_s26 + $0x78] sm:$0xff]  ;;  %v288_v59 = vld [vmem:[%s1983_s26 + $0x80] sm:$0xff]  ;;  %v289_v3 = vld [vmem:[%s1983_s26 + $0x88] sm:$0xff]  ;;  %v1922_v9 = vmov 0.0  }
  0x16   : > { %1775 = vmatprep.subr.msk.bf16.mxu1 %vm383_vm0, %v1741_v13  ;;  %v409_v28 = vsel %vm383_vm0, %v1742_v24, 0  ;;  %v415_v29 = vsel %vm383_vm0, %v1744_v25, 0  ;;  %v1751_v38 = vcombine.low %v281_v34, %v281_v34  ;;  %v1753_v39 = vcombine.low %v282_v35, %v282_v35  ;;  %vm2098_vm8 = vmand %vm1554_vm7, %vm1317_vm5  ;;  %v1320_v15 = vld [vmem:[%s2110_s6 + $0x46] sm:$0xf] }
  0x17   : > { %1770 = vmatmul.mubr.msk.bf16.vlgmr.msra.gmra.mxu0 %vm379_vm1, %v1999_v19  ;;  %v421_v36 = vsel %vm383_vm0, %v1746_v32, 0  ;;  %v427_v37 = vsel %vm383_vm0, %v1748_v33, 0  ;;  %v1750_v40 = vcombine.high %v280_v27, %v280_v27  ;;  %v1752_v41 = vcombine.high %v281_v34, %v281_v34  ;;  %vm1556_vm9 = vmor %vm2098_vm8, %vm2094_vm6 }
  0x18   : > { %1772 = vmatmul.mubr.msk.bf16.vlgmr.msra.gmra.mxu1 %vm379_vm1, %v1999_v19  ;;  %586 = vmatpush1.bf16.msra.mxu0 %v397_v20  ;;  %v1755_v46 = vcombine.low %v283_v42, %v283_v42  ;;  %v1757_v47 = vcombine.low %v284_v43, %v284_v43  ;;  %v1754_v48 = vcombine.high %v282_v35, %v282_v35  ;;  %vm1315_vm12 = vmand %vm1314_vm10, %vm1309_vm4  ;;  %vm1562_vm7 = vsmask.f32 7424 }
  0x19   : > { %627 = vmatpush1.bf16.msra.mxu1 %v403_v21  ;;  %603 = vmatprep.mubr.bf16.mxu0 %v1921_v0  ;;  %v433_v44 = vsel %vm383_vm0, %v1750_v40, 0  ;;  %v439_v45 = vsel %vm383_vm0, %v1752_v41, 0  ;;  %v1756_v49 = vcombine.high %v283_v42, %v283_v42  ;;  %v1759_v54 = vcombine.low %v285_v50, %v285_v50  ;;  %vm1318_vm13 = vmand %vm1316_vm11, %vm1317_vm5 }
  0x1a   : > { %644 = vmatprep.mubr.bf16.mxu1 %v1921_v0  ;;  %1777 = vmatprep.subr.msk.bf16.mxu0 %vm383_vm0, %v1743_v22  ;;  %v445_v52 = vsel %vm383_vm0, %v1754_v48, 0  ;;  %v1761_v55 = vcombine.low %v286_v51, %v286_v51  ;;  %v1758_v56 = vcombine.high %v284_v43, %v284_v43  ;;  %v1760_v57 = vcombine.high %v285_v50, %v285_v50  ;;  %vm1319_vm14 = vmor %vm1318_vm13, %vm1315_vm12 }
  0x1b   : > { %1779 = vmatprep.subr.msk.bf16.mxu1 %vm383_vm0, %v1745_v23  ;;  %v451_v53 = vsel %vm383_vm0, %v1756_v49, 0  ;;  %v1763_v62 = vcombine.low %v287_v58, %v287_v58  ;;  %v1765_v63 = vcombine.low %v288_v59, %v288_v59  ;;  %v1762_v1 = vcombine.high %v286_v51, %v286_v51  ;;  %vm1559_vm4 = vmand %vm1557_vm3, %vm1558_vm15 }
  0x1c   : > { %v457_v60 = vsel %vm383_vm0, %v1758_v56, 0  ;;  %v463_v61 = vsel %vm383_vm0, %v1760_v57, 0  ;;  %v1764_v2 = vcombine.high %v287_v58, %v287_v58  ;;  %v1767_v6 = vcombine.low %v289_v3, %v289_v3  ;;  %vm1560_vm10 = vmor %vm1559_vm4, %vm1556_vm9  ;;  %v1565_v56 = vld [vmem:[%s2110_s6 + $0x2] sm:$0xff] }
  0x1d   : > { %v469_v4 = vsel %vm383_vm0, %v1762_v1, 0  ;;  %v1766_v7 = vcombine.high %v288_v59, %v288_v59  ;;  %v1768_v8 = vcombine.high %v289_v3, %v289_v3  ;;  %v1321_v16 = vsel %vm1319_vm14, 0, %v1320_v15 }
  0x1e   : > { %v475_v5 = vsel %vm383_vm0, %v1764_v2, 0  ;;  %1322 = vst [vmem:[%s2110_s6 + $0x46] sm:$0xf] %v1321_v16  ;;  %v1398_v21 = vlaneseq  ;;  %vm1561_vm5 = vcmask 1047558  }
  0x1f   : > { %1774 = vmatmul.mubr.msk.bf16.vlgmr.msra.gmra.mxu0 %vm379_vm1, %v1999_v19  ;;  %v481_v10 = vsel %vm383_vm0, %v1766_v7, 0  ;;  %v487_v11 = vsel %vm383_vm0, %v1768_v8, 0  ;;  %vm1563_vm11 = vmand %vm1561_vm5, %vm1562_vm7 }
  0x20   : > { %1776 = vmatmul.mubr.msk.bf16.vlgmr.msra.gmra.mxu1 %vm379_vm1, %v1999_v19  ;;  %668 = vmatpush1.bf16.msra.mxu0 %v409_v28  ;;  %v1399_v25 = vshrl.u32 %v1398_v21, 7 }
  0x21   : > { %709 = vmatpush1.bf16.msra.mxu1 %v415_v29  ;;  %685 = vmatprep.mubr.bf16.mxu0 %v1921_v0 }
  0x22   : > { %726 = vmatprep.mubr.bf16.mxu1 %v1921_v0  ;;  %1781 = vmatprep.subr.msk.bf16.mxu0 %vm383_vm0, %v1747_v30 }
  0x23   : > { %1783 = vmatprep.subr.msk.bf16.mxu1 %vm383_vm0, %v1749_v31 }
  0x27   : > { %1778 = vmatmul.mubr.msk.bf16.vlgmr.msra.gmra.mxu0 %vm379_vm1, %v1999_v19 }
  0x28   : > { %1780 = vmatmul.mubr.msk.bf16.vlgmr.msra.gmra.mxu1 %vm379_vm1, %v1999_v19  ;;  %750 = vmatpush1.bf16.msra.mxu0 %v421_v36 }
  0x29   : > { %791 = vmatpush1.bf16.msra.mxu1 %v427_v37  ;;  %767 = vmatprep.mubr.bf16.mxu0 %v1921_v0 }
  0x2a   : > { %808 = vmatprep.mubr.bf16.mxu1 %v1921_v0  ;;  %1785 = vmatprep.subr.msk.bf16.mxu0 %vm383_vm0, %v1751_v38 }
  0x2b   : > { %1787 = vmatprep.subr.msk.bf16.mxu1 %vm383_vm0, %v1753_v39 }
  0x2f   : > { %1782 = vmatmul.mubr.msk.bf16.vlgmr.msra.gmra.mxu0 %vm379_vm1, %v1999_v19 }
  0x30   : > { %1784 = vmatmul.mubr.msk.bf16.vlgmr.msra.gmra.mxu1 %vm379_vm1, %v1999_v19  ;;  %832 = vmatpush1.bf16.msra.mxu0 %v433_v44 }
  0x31   : > { %873 = vmatpush1.bf16.msra.mxu1 %v439_v45  ;;  %849 = vmatprep.mubr.bf16.mxu0 %v1921_v0 }
  0x32   : > { %890 = vmatprep.mubr.bf16.mxu1 %v1921_v0  ;;  %1789 = vmatprep.subr.msk.bf16.mxu0 %vm383_vm0, %v1755_v46 }
  0x33   : > { %1791 = vmatprep.subr.msk.bf16.mxu1 %vm383_vm0, %v1757_v47 }
  0x37   : > { %1786 = vmatmul.mubr.msk.bf16.vlgmr.msra.gmra.mxu0 %vm379_vm1, %v1999_v19 }
  0x38   : > { %1788 = vmatmul.mubr.msk.bf16.vlgmr.msra.gmra.mxu1 %vm379_vm1, %v1999_v19  ;;  %914 = vmatpush1.bf16.msra.mxu0 %v445_v52 }
  0x39   : > { %955 = vmatpush1.bf16.msra.mxu1 %v451_v53  ;;  %931 = vmatprep.mubr.bf16.mxu0 %v1921_v0 }
  0x3a   : > { %972 = vmatprep.mubr.bf16.mxu1 %v1921_v0  ;;  %1793 = vmatprep.subr.msk.bf16.mxu0 %vm383_vm0, %v1759_v54 }
  0x3b   : > { %1795 = vmatprep.subr.msk.bf16.mxu1 %vm383_vm0, %v1761_v55 }
  0x3f   : > { %1790 = vmatmul.mubr.msk.bf16.vlgmr.msra.gmra.mxu0 %vm379_vm1, %v1999_v19 }
  0x40   : > { %1792 = vmatmul.mubr.msk.bf16.vlgmr.msra.gmra.mxu1 %vm379_vm1, %v1999_v19  ;;  %996 = vmatpush1.bf16.msra.mxu0 %v457_v60 }
  0x41   : > { %1037 = vmatpush1.bf16.msra.mxu1 %v463_v61  ;;  %1013 = vmatprep.mubr.bf16.mxu0 %v1921_v0 }
  0x42   : > { %1054 = vmatprep.mubr.bf16.mxu1 %v1921_v0  ;;  %1797 = vmatprep.subr.msk.bf16.mxu0 %vm383_vm0, %v1763_v62 }
  0x43   : > { %1799 = vmatprep.subr.msk.bf16.mxu1 %vm383_vm0, %v1765_v63 }
  0x47   : > { %1794 = vmatmul.mubr.msk.bf16.vlgmr.msra.gmra.mxu0 %vm379_vm1, %v1999_v19 }
  0x48   : > { %1796 = vmatmul.mubr.msk.bf16.vlgmr.msra.gmra.mxu1 %vm379_vm1, %v1999_v19  ;;  %1078 = vmatpush1.bf16.msra.mxu0 %v469_v4 }
  0x49   : > { %1119 = vmatpush1.bf16.msra.mxu1 %v475_v5  ;;  %1095 = vmatprep.mubr.bf16.mxu0 %v1921_v0 }
  0x4a   : > { %1136 = vmatprep.mubr.bf16.mxu1 %v1921_v0  ;;  %1801 = vmatprep.subr.msk.bf16.mxu0 %vm383_vm0, %v1767_v6  ;;  %vm1589_vm0 = vcmask 29700  }
  0x4b   : > { %1825 = vmatprep.subr.bf16.mxu1 %v1922_v9 }
  0x4f   : > { %1798 = vmatmul.mubr.msk.bf16.vlgmr.msra.gmra.mxu0 %vm379_vm1, %v1999_v19 }
  0x50   : > { %1800 = vmatmul.mubr.msk.bf16.vlgmr.msra.gmra.mxu1 %vm379_vm1, %v1999_v19  ;;  %1160 = vmatpush1.bf16.msra.mxu0 %v481_v10 }
  0x51   : > { %1826 = vmatpush3.bf16.msra.mxu1 %v487_v11  ;;  %1177 = vmatprep.mubr.bf16.mxu0 %v1921_v0  ;;  %v1311_v0 = vld [vmem:[%s2110_s6] sm:$0x3]  ;;  %v1568_v11 = vld [vmem:[%s2110_s6 + $0xa] sm:$0xff] }
  0x52   : > { %1827 = vmatprep.mubr.msk.bf16.mxu1 %vm1923_vm2, %v1922_v9  ;;  %v1312_v14 = vsel %vm2094_vm6, 0, %v1311_v0  ;;  %vm2155_vm6 = vmor %vm1563_vm11, %vm1560_vm10 }
  0x53   : > { %1313 = vst [vmem:[%s2110_s6] sm:$0x3] %v1312_v14 }
  0x57   : > { %1802 = vmatmul.mubr.msk.bf16.vlgmr.msra.gmra.mxu0 %vm379_vm1, %v1999_v19 }
  0x58   : > { %1828 = vmatmul.mubr.msk.bf16.vlgmr.msra.gmra.mxu1 %vm379_vm1, %v1999_v19  ;;  %vm1590_vm1 = vmand %vm1589_vm0, %vm1558_vm15  ;;  %v1924_v19 = vmov 1983009808  }
  0x59   : > { %vm2124_vm2 = vmor %vm1590_vm1, %vm1556_vm9  ;;  %v1396_v20 = vunpack.c.l.s4 %v1924_v19 }
  0x5b   : > { %v1397_v24 = vunpack.c.0.s8 %v1396_v20 }
  0x5d   : > { %v2137_v36 = vsub.s32 %v1397_v24, %v1399_v25 }
  0x8a   : > { %v2128_v18 = vpop.permute.xlu0 %1229 }
  0x8e   : > { %v2132_v28 = vpop.permute.xlu0 %1270 }
  0xd7   : > { %v523_v22 = vpop.f32.mrf.mxu0 }
  0xd8   : > { %v564_v23 = vpop.f32.mrf.mxu1  ;;  %v1232_v26 = vmul.f32 %v2128_v18, %v523_v22 }
  0xd9   : > { %v1234_v27 = vmul.f32 %v2128_v18, %v564_v23  ;;  %v525_v29 = vpop.f32.mrf.mxu0 }
  0xda   : > { %v566_v30 = vpop.f32.mrf.mxu1  ;;  %v1233_v31 = vmul.f32 %v2128_v18, %v525_v29  ;;  %v1273_v37 = vadd.f32 %v2132_v28, %v1232_v26 }
  0xdb   : > { %v1235_v32 = vmul.f32 %v2128_v18, %v566_v30  ;;  %v1275_v33 = vadd.f32 %v2132_v28, %v1234_v27  ;;  %v527_v34 = vpop.f32.mrf.mxu0 }
  0xdc   : > { %v568_v35 = vpop.f32.mrf.mxu1  ;;  %v1274_v38 = vadd.f32 %v2132_v28, %v1233_v31 }
  0xdd   : > { %v1276_v39 = vadd.f32 %v2132_v28, %v1235_v32  ;;  %v528_v40 = vpop.f32.mrf.mxu0 }
  0xde   : > { %v569_v41 = vpop.f32.mrf.mxu1  ;;  %v1804_v42 = vpack.c.bf16 %v1274_v38, %v1273_v37 }
  0xdf   : > { %v1805_v43 = vpack.c.bf16 %v1276_v39, %v1275_v33  ;;  %v605_v44 = vpop.f32.mrf.mxu0  ;;  %v1571_v39 = vld [vmem:[%s2110_s6 + $0x12] sm:$0xff] }
  0xe0   : > { %v646_v45 = vpop.f32.mrf.mxu1  ;;  %v1236_v46 = vmul.f32 %v2128_v18, %v605_v44  ;;  %v1401_v48 = vrot.slane %v1804_v42, %v2137_v36 }
  0xe1   : > { %v1238_v47 = vmul.f32 %v2128_v18, %v646_v45  ;;  %v1408_v49 = vrot.slane %v1805_v43, %v2137_v36  ;;  %v607_v50 = vpop.f32.mrf.mxu0 }
  0xe2   : > { %v648_v51 = vpop.f32.mrf.mxu1  ;;  %v1237_v53 = vmul.f32 %v2128_v18, %v607_v50  ;;  %v1277_v60 = vadd.f32 %v2132_v28, %v1236_v46 }
  0xe3   : > { %v1279_v52 = vadd.f32 %v2132_v28, %v1238_v47  ;;  %v1239_v54 = vmul.f32 %v2128_v18, %v648_v51  ;;  %v1409_v57 = vcombine.low %v1401_v48, %v1408_v49  ;;  %v609_v58 = vpop.f32.mrf.mxu0 }
  0xe4   : > { %v650_v59 = vpop.f32.mrf.mxu1  ;;  %v1278_v61 = vadd.f32 %v2132_v28, %v1237_v53 }
  0xe5   : > { %v1280_v62 = vadd.f32 %v2132_v28, %v1239_v54  ;;  %v1566_v63 = vsel %vm2155_vm6, %v1409_v57, %v1565_v56  ;;  %v610_v1 = vpop.f32.mrf.mxu0 }
  0xe6   : > { %v651_v2 = vpop.f32.mrf.mxu1  ;;  %v1806_v3 = vpack.c.bf16 %v1278_v61, %v1277_v60  ;;  %1567 = vst [vmem:[%s2110_s6 + $0x2] sm:$0xff] %v1566_v63  ;;  %v1574_v61 = vld [vmem:[%s2110_s6 + $0x1a] sm:$0xff] }
  0xe7   : > { %v1807_v4 = vpack.c.bf16 %v1280_v62, %v1279_v52  ;;  %v687_v5 = vpop.f32.mrf.mxu0 }
  0xe8   : > { %v728_v6 = vpop.f32.mrf.mxu1  ;;  %v1418_v7 = vrot.slane %v1806_v3, %v2137_v36  ;;  %v1240_v9 = vmul.f32 %v2128_v18, %v687_v5 }
  0xe9   : > { %v1425_v8 = vrot.slane %v1807_v4, %v2137_v36  ;;  %v1242_v10 = vmul.f32 %v2128_v18, %v728_v6  ;;  %v689_v12 = vpop.f32.mrf.mxu0 }
  0xea   : > { %v730_v13 = vpop.f32.mrf.mxu1  ;;  %v1241_v14 = vmul.f32 %v2128_v18, %v689_v12  ;;  %v1281_v22 = vadd.f32 %v2132_v28, %v1240_v9 }
  0xeb   : > { %v1426_v0 = vcombine.low %v1418_v7, %v1425_v8  ;;  %v1283_v15 = vadd.f32 %v2132_v28, %v1242_v10  ;;  %v1243_v16 = vmul.f32 %v2128_v18, %v730_v13  ;;  %v691_v19 = vpop.f32.mrf.mxu0 }
  0xec   : > { %v732_v20 = vpop.f32.mrf.mxu1  ;;  %v1282_v23 = vadd.f32 %v2132_v28, %v1241_v14 }
  0xed   : > { %v1569_v21 = vsel %vm2155_vm6, %v1426_v0, %v1568_v11  ;;  %v1284_v24 = vadd.f32 %v2132_v28, %v1243_v16  ;;  %v692_v25 = vpop.f32.mrf.mxu0 }
  0xee   : > { %1570 = vst [vmem:[%s2110_s6 + $0xa] sm:$0xff] %v1569_v21  ;;  %v733_v26 = vpop.f32.mrf.mxu1  ;;  %v1808_v27 = vpack.c.bf16 %v1282_v23, %v1281_v22 }
  0xef   : > { %v1809_v29 = vpack.c.bf16 %v1284_v24, %v1283_v15  ;;  %v769_v30 = vpop.f32.mrf.mxu0  ;;  %v1577_v24 = vld [vmem:[%s2110_s6 + $0x22] sm:$0xff] }
  0xf0   : > { %v810_v31 = vpop.f32.mrf.mxu1  ;;  %v1435_v32 = vrot.slane %v1808_v27, %v2137_v36  ;;  %v1244_v33 = vmul.f32 %v2128_v18, %v769_v30 }
  0xf1   : > { %v1246_v34 = vmul.f32 %v2128_v18, %v810_v31  ;;  %v1442_v35 = vrot.slane %v1809_v29, %v2137_v36  ;;  %v771_v37 = vpop.f32.mrf.mxu0 }
  0xf2   : > { %v812_v38 = vpop.f32.mrf.mxu1  ;;  %v1245_v41 = vmul.f32 %v2128_v18, %v771_v37  ;;  %v1285_v46 = vadd.f32 %v2132_v28, %v1244_v33 }
  0xf3   : > { %v1287_v40 = vadd.f32 %v2132_v28, %v1246_v34  ;;  %v1247_v42 = vmul.f32 %v2128_v18, %v812_v38  ;;  %v1443_v43 = vcombine.low %v1435_v32, %v1442_v35  ;;  %v773_v44 = vpop.f32.mrf.mxu0 }
  0xf4   : > { %v814_v45 = vpop.f32.mrf.mxu1  ;;  %v1286_v47 = vadd.f32 %v2132_v28, %v1245_v41 }
  0xf5   : > { %v1288_v48 = vadd.f32 %v2132_v28, %v1247_v42  ;;  %v1572_v49 = vsel %vm2155_vm6, %v1443_v43, %v1571_v39  ;;  %v774_v50 = vpop.f32.mrf.mxu0 }
  0xf6   : > { %v815_v51 = vpop.f32.mrf.mxu1  ;;  %1573 = vst [vmem:[%s2110_s6 + $0x12] sm:$0xff] %v1572_v49  ;;  %v1810_v52 = vpack.c.bf16 %v1286_v47, %v1285_v46  ;;  %v1580_v47 = vld [vmem:[%s2110_s6 + $0x2a] sm:$0xff] }
  0xf7   : > { %v1811_v53 = vpack.c.bf16 %v1288_v48, %v1287_v40  ;;  %v851_v54 = vpop.f32.mrf.mxu0 }
  0xf8   : > { %v892_v56 = vpop.f32.mrf.mxu1  ;;  %v1452_v57 = vrot.slane %v1810_v52, %v2137_v36  ;;  %v1248_v59 = vmul.f32 %v2128_v18, %v851_v54 }
  0xf9   : > { %v1459_v58 = vrot.slane %v1811_v53, %v2137_v36  ;;  %v1250_v60 = vmul.f32 %v2128_v18, %v892_v56  ;;  %v853_v62 = vpop.f32.mrf.mxu0 }
  0xfa   : > { %v894_v63 = vpop.f32.mrf.mxu1  ;;  %v1249_v2 = vmul.f32 %v2128_v18, %v853_v62  ;;  %v1289_v8 = vadd.f32 %v2132_v28, %v1248_v59 }
  0xfb   : > { %v1460_v1 = vcombine.low %v1452_v57, %v1459_v58  ;;  %v1291_v3 = vadd.f32 %v2132_v28, %v1250_v60  ;;  %v1251_v4 = vmul.f32 %v2128_v18, %v894_v63  ;;  %v855_v5 = vpop.f32.mrf.mxu0 }
  0xfc   : > { %v896_v6 = vpop.f32.mrf.mxu1  ;;  %v1290_v9 = vadd.f32 %v2132_v28, %v1249_v2 }
  0xfd   : > { %v1575_v7 = vsel %vm2155_vm6, %v1460_v1, %v1574_v61  ;;  %v1292_v10 = vadd.f32 %v2132_v28, %v1251_v4  ;;  %v856_v11 = vpop.f32.mrf.mxu0 }
  0xfe   : > { %1576 = vst [vmem:[%s2110_s6 + $0x1a] sm:$0xff] %v1575_v7  ;;  %v897_v12 = vpop.f32.mrf.mxu1  ;;  %v1812_v13 = vpack.c.bf16 %v1290_v9, %v1289_v8 }
  0xff   : > { %v1813_v0 = vpack.c.bf16 %v1292_v10, %v1291_v3  ;;  %v933_v14 = vpop.f32.mrf.mxu0  ;;  %v1583_v10 = vld [vmem:[%s2110_s6 + $0x32] sm:$0xff] }
 0x100   : > { %v974_v15 = vpop.f32.mrf.mxu1  ;;  %v1469_v16 = vrot.slane %v1812_v13, %v2137_v36  ;;  %v1252_v19 = vmul.f32 %v2128_v18, %v933_v14 }
 0x101   : > { %v1254_v20 = vmul.f32 %v2128_v18, %v974_v15  ;;  %v1476_v21 = vrot.slane %v1813_v0, %v2137_v36  ;;  %v935_v22 = vpop.f32.mrf.mxu0 }
 0x102   : > { %v976_v23 = vpop.f32.mrf.mxu1  ;;  %v1253_v26 = vmul.f32 %v2128_v18, %v935_v22  ;;  %v1293_v32 = vadd.f32 %v2132_v28, %v1252_v19 }
 0x103   : > { %v1295_v25 = vadd.f32 %v2132_v28, %v1254_v20  ;;  %v1255_v27 = vmul.f32 %v2128_v18, %v976_v23  ;;  %v1477_v29 = vcombine.low %v1469_v16, %v1476_v21  ;;  %v937_v30 = vpop.f32.mrf.mxu0 }
 0x104   : > { %v978_v31 = vpop.f32.mrf.mxu1  ;;  %v1294_v33 = vadd.f32 %v2132_v28, %v1253_v26 }
 0x105   : > { %v1296_v34 = vadd.f32 %v2132_v28, %v1255_v27  ;;  %v1578_v35 = vsel %vm2155_vm6, %v1477_v29, %v1577_v24  ;;  %v938_v37 = vpop.f32.mrf.mxu0 }
 0x106   : > { %v979_v38 = vpop.f32.mrf.mxu1  ;;  %1579 = vst [vmem:[%s2110_s6 + $0x22] sm:$0xff] %v1578_v35  ;;  %v1814_v39 = vpack.c.bf16 %v1294_v33, %v1293_v32  ;;  %v1586_v33 = vld [vmem:[%s2110_s6 + $0x3a] sm:$0xff] }
 0x107   : > { %v1815_v40 = vpack.c.bf16 %v1296_v34, %v1295_v25  ;;  %v1015_v41 = vpop.f32.mrf.mxu0 }
 0x108   : > { %v1056_v42 = vpop.f32.mrf.mxu1  ;;  %v1486_v43 = vrot.slane %v1814_v39, %v2137_v36  ;;  %v1256_v45 = vmul.f32 %v2128_v18, %v1015_v41 }
 0x109   : > { %v1493_v44 = vrot.slane %v1815_v40, %v2137_v36  ;;  %v1258_v46 = vmul.f32 %v2128_v18, %v1056_v42  ;;  %v1017_v48 = vpop.f32.mrf.mxu0 }
 0x10a   : > { %v1058_v49 = vpop.f32.mrf.mxu1  ;;  %v1257_v51 = vmul.f32 %v2128_v18, %v1017_v48  ;;  %v1297_v58 = vadd.f32 %v2132_v28, %v1256_v45 }
 0x10b   : > { %v1494_v50 = vcombine.low %v1486_v43, %v1493_v44  ;;  %v1299_v52 = vadd.f32 %v2132_v28, %v1258_v46  ;;  %v1259_v53 = vmul.f32 %v2128_v18, %v1058_v49  ;;  %v1019_v54 = vpop.f32.mrf.mxu0 }
 0x10c   : > { %v1060_v56 = vpop.f32.mrf.mxu1  ;;  %v1298_v59 = vadd.f32 %v2132_v28, %v1257_v51 }
 0x10d   : > { %v1581_v57 = vsel %vm2155_vm6, %v1494_v50, %v1580_v47  ;;  %v1300_v60 = vadd.f32 %v2132_v28, %v1259_v53  ;;  %v1020_v61 = vpop.f32.mrf.mxu0 }
 0x10e   : > { %1582 = vst [vmem:[%s2110_s6 + $0x2a] sm:$0xff] %v1581_v57  ;;  %v1061_v62 = vpop.f32.mrf.mxu1  ;;  %v1816_v63 = vpack.c.bf16 %v1298_v59, %v1297_v58 }
 0x10f   : > { %v1817_v1 = vpack.c.bf16 %v1300_v60, %v1299_v52  ;;  %v1097_v2 = vpop.f32.mrf.mxu0 }
 0x110   : > { %v1138_v3 = vpop.f32.mrf.mxu1  ;;  %v1503_v4 = vrot.slane %v1816_v63, %v2137_v36  ;;  %v1260_v5 = vmul.f32 %v2128_v18, %v1097_v2 }
 0x111   : > { %v1262_v6 = vmul.f32 %v2128_v18, %v1138_v3  ;;  %v1510_v7 = vrot.slane %v1817_v1, %v2137_v36  ;;  %v1099_v8 = vpop.f32.mrf.mxu0 }
 0x112   : > { %v1140_v9 = vpop.f32.mrf.mxu1  ;;  %v1261_v12 = vmul.f32 %v2128_v18, %v1099_v8  ;;  %v1301_v16 = vadd.f32 %v2132_v28, %v1260_v5 }
 0x113   : > { %v1303_v11 = vadd.f32 %v2132_v28, %v1262_v6  ;;  %v1263_v13 = vmul.f32 %v2128_v18, %v1140_v9  ;;  %v1511_v0 = vcombine.low %v1503_v4, %v1510_v7  ;;  %v1101_v14 = vpop.f32.mrf.mxu0 }
 0x114   : > { %v1142_v15 = vpop.f32.mrf.mxu1  ;;  %v1302_v19 = vadd.f32 %v2132_v28, %v1261_v12 }
 0x115   : > { %v1304_v20 = vadd.f32 %v2132_v28, %v1263_v13  ;;  %v1584_v21 = vsel %vm2155_vm6, %v1511_v0, %v1583_v10  ;;  %v1102_v22 = vpop.f32.mrf.mxu0 }
 0x116   : > { %v1143_v23 = vpop.f32.mrf.mxu1  ;;  %1585 = vst [vmem:[%s2110_s6 + $0x32] sm:$0xff] %v1584_v21  ;;  %v1818_v24 = vpack.c.bf16 %v1302_v19, %v1301_v16 }
 0x117   : > { %v1819_v25 = vpack.c.bf16 %v1304_v20, %v1303_v11  ;;  %v1179_v26 = vpop.f32.mrf.mxu0 }
 0x118   : > { %v1220_v27 = vpop.f32.mrf.mxu1  ;;  %v1520_v29 = vrot.slane %v1818_v24, %v2137_v36  ;;  %v1264_v31 = vmul.f32 %v2128_v18, %v1179_v26 }
 0x119   : > { %v1527_v30 = vrot.slane %v1819_v25, %v2137_v36  ;;  %v1266_v32 = vmul.f32 %v2128_v18, %v1220_v27  ;;  %v1181_v34 = vpop.f32.mrf.mxu0 }
 0x11a   : > { %v1829_v35 = vpop.f32.mrf.mxu1  ;;  %v1265_v39 = vmul.f32 %v2128_v18, %v1181_v34  ;;  %v1305_v43 = vadd.f32 %v2132_v28, %v1264_v31  ;;  %v1592_v18 = vld [vmem:[%s2110_s6 + $0x42] sm:$0x3f] }
 0x11b   : > { %v1528_v37 = vcombine.low %v1520_v29, %v1527_v30  ;;  %v1307_v38 = vadd.f32 %v2132_v28, %v1266_v32  ;;  %v1183_v40 = vpop.f32.mrf.mxu0 }
 0x11c   : > { %v1223_v41 = vpop.f32.mrf.mxu1  ;;  %v1306_v45 = vadd.f32 %v2132_v28, %v1265_v39 }
 0x11d   : > { %v1587_v42 = vsel %vm2155_vm6, %v1528_v37, %v1586_v33  ;;  %v1357_v44 = vpack.c.bf16 %v1307_v38, %v1307_v38  ;;  %v1184_v46 = vpop.f32.mrf.mxu0 }
 0x11e   : > { %1588 = vst [vmem:[%s2110_s6 + $0x3a] sm:$0xff] %v1587_v42  ;;  %v1830_v47 = vpop.f32.mrf.mxu1  ;;  %v1820_v49 = vpack.c.bf16 %v1306_v45, %v1305_v43 }
 0x11f   : > { %v1543_v48 = vrot.slane %v1357_v44, %v2137_v36 }
 0x120   : > { %v1536_v50 = vrot.slane %v1820_v49, %v2137_v36 }
 0x122   : > { %v1544_v51 = vcombine.low %v1536_v50, %v1543_v48 }
 0x124   : > { %v1593_v52 = vsel %vm2124_vm2, %v1544_v51, %v1592_v18 }
 0x125   : > { %1594 = vst [vmem:[%s2110_s6 + $0x42] sm:$0x3f] %v1593_v52 }
 0x126 PF: > { %s14_s17 = sadd.s32 1, %s1919_s17   ;;  %s2290_s15 = smov %s1915_s16 }
 0x127   : > { %p11_p5 = scmp.ge.s32.totalorder %s14_s17, 4   ;;  %s2291_s16 = smov %s2293_s18 }
 0x129   :  { %13 = sbr.rel (!%p11_p5) target bundleno = 2 (0x2), region = 75 }

</bundles_post_ra>
